<compile_context>
chip_gen: v7x
topology: tpu7x:2x2x1
jax: 0.10.0
libtpu: 0.0.40
codegen_flags: <defaults>
</compile_context>

<pallas_src>
import math
import functools

import jax
import jax.numpy as jnp
from jax.experimental import pallas as pl
from jax.experimental.pallas import tpu as pltpu


# ----------------------------- helpers ---------------------------------------
def _layernorm(x, g, b, eps):
    mu = jnp.mean(x, axis=-1, keepdims=True)
    var = jnp.mean((x - mu) ** 2, axis=-1, keepdims=True)
    return (x - mu) * jax.lax.rsqrt(var + eps) * g + b


def _gelu_tanh(x):
    # matches the module's GELU: 0.5*x*(1+tanh(sqrt(2/pi)*(x+0.044715*x^3)))
    return 0.5 * x * (1.0 + jnp.tanh(math.sqrt(2.0 / math.pi) * (x + 0.044715 * x * x * x)))


def _largest_tile(n, cap):
    """Largest divisor of n that is <= cap (n, cap are positive Python ints)."""
    t = min(n, cap)
    while n % t:
        t -= 1
    return t


# ----------------------------- Pallas kernel ---------------------------------
def transformer_block_kernel(
    x_ref, bias_ref,
    wq_ref, bq_ref, wk_ref, bk_ref, wv_ref, bv_ref, wo_ref, bo_ref,
    ln1_g_ref, ln1_b_ref,
    w1_ref, b1_ref, w2_ref, b2_ref,
    ln2_g_ref, ln2_b_ref,
    o_ref,
    *, num_heads, kv_tile, dff_tile,
):
    # One batch element per grid step.
    x = x_ref[0]              # (S, H) f32
    mask_bias = bias_ref[0]   # (1, S) f32 additive key-mask bias: 0 = attend, -1e9 = masked

    S, H = x.shape
    nh = num_heads
    dk = H // nh
    scale = 1.0 / math.sqrt(dk)

    # Hoisted parameter loads (biases broadcast once).
    bq = bq_ref[...]
    bk = bk_ref[...]
    bv = bv_ref[...]
    bo = bo_ref[...]

    # ---- input_sublayer: x + Attention(LayerNorm(x)) ----
    h = _layernorm(x, ln1_g_ref[...], ln1_b_ref[...], 1e-5)
    hb = h.astype(jnp.bfloat16)

    # Projections: bf16 operands on the MXU, f32 accumulation, f32 bias add.
    q = jnp.dot(hb, wq_ref[...], preferred_element_type=jnp.float32) + bq   # (S, H)
    k = jnp.dot(hb, wk_ref[...], preferred_element_type=jnp.float32) + bk
    v = jnp.dot(hb, wv_ref[...], preferred_element_type=jnp.float32) + bv

    # (S, H) -> (nh, S, dk).  This is a genuine layout change feeding the batched
    # dot_generals below; kept explicit (O(S*H), small vs. the matmuls).
    def to_heads(t):
        return jnp.transpose(t.reshape(S, nh, dk), (1, 0, 2))

    qh = to_heads(q).astype(jnp.bfloat16)
    kh = to_heads(k).astype(jnp.bfloat16)
    vh = to_heads(v).astype(jnp.bfloat16)

    # Online-softmax over key tiles: caps the live (nh, S, kv_tile) score temporary so the
    # fused block fits v7x's 64 MiB VMEM at BERT-base scale; with a single tile it is
    # mathematically identical to the one-shot softmax.
    n_kv = S // kv_tile
    neg_big = jnp.float32(-1e30)
    m_i = jnp.full((nh, S, 1), neg_big, jnp.float32)
    l_i = jnp.zeros((nh, S, 1), jnp.float32)
    acc = jnp.zeros((nh, S, dk), jnp.float32)
    for t in range(n_kv):
        k0 = t * kv_tile
        k_t = kh[:, k0:k0 + kv_tile, :]                                      # (nh, kv, dk)
        v_t = vh[:, k0:k0 + kv_tile, :]
        s_t = jnp.einsum("hqd,hkd->hqk", qh, k_t,
                         preferred_element_type=jnp.float32) * scale         # (nh, S, kv)
        # additive key mask (matches PyTorch masked_fill(mask == 0, -1e9) semantics)
        s_t = s_t + mask_bias[:, k0:k0 + kv_tile][None, :, :]
        m_new = jnp.maximum(m_i, jnp.max(s_t, axis=-1, keepdims=True))
        alpha = jnp.exp(m_i - m_new)                                         # f32 on EUP
        p_t = jnp.exp(s_t - m_new)
        l_i = alpha * l_i + jnp.sum(p_t, axis=-1, keepdims=True)
        acc = alpha * acc + jnp.einsum("hqk,hkd->hqd", p_t.astype(jnp.bfloat16), v_t,
                                       preferred_element_type=jnp.float32)
        m_i = m_new

    ctx = acc * pl.reciprocal(l_i, approx=True)                              # (nh, S, dk)
    ctx = jnp.transpose(ctx, (1, 0, 2)).reshape(S, H)                        # (S, H)

    attn_out = jnp.dot(ctx.astype(jnp.bfloat16), wo_ref[...],
                       preferred_element_type=jnp.float32) + bo
    x = x + attn_out

    # ---- output_sublayer: x + FFN(LayerNorm(x)), tiled over d_ff ----
    h2 = _layernorm(x, ln2_g_ref[...], ln2_b_ref[...], 1e-5)
    h2b = h2.astype(jnp.bfloat16)
    d_ff = w1_ref.shape[1]
    n_ff = d_ff // dff_tile
    ffn = jnp.zeros((S, H), jnp.float32)
    for c in range(n_ff):
        c0 = c * dff_tile
        f = jnp.dot(h2b, w1_ref[:, c0:c0 + dff_tile],
                    preferred_element_type=jnp.float32) + b1_ref[:, c0:c0 + dff_tile]
        f = _gelu_tanh(f)                                                    # f32 elementwise
        ffn = ffn + jnp.dot(f.astype(jnp.bfloat16), w2_ref[c0:c0 + dff_tile, :],
                            preferred_element_type=jnp.float32)
    ffn = ffn + b2_ref[...]
    x = x + ffn

    o_ref[0] = x


# ----------------------------- wrapper ----------------------------------------
_SINGLE_BUFFER_WEIGHTS = True   # pl.Buffered(1) on constant-index parameter specs


def _transformer_block_call(x, mask_bias, bp, *, num_heads, single_buffer):
    B, S, H = x.shape
    d_ff = bp["w1"].shape[1]
    nh = num_heads
    dk = H // nh

    kv_tile = _largest_tile(S, 256)
    dff_tile = _largest_tile(d_ff, 512)

    # Parameters (weights / biases / LN) have a constant index_map -> fetched once per call;
    # single-buffering them halves their VMEM footprint.
    def param_spec(shape):
        n = len(shape)
        if single_buffer:
            return pl.BlockSpec(shape, lambda b, _n=n: (0,) * _n,
                                pipeline_mode=pl.Buffered(1))
        return pl.BlockSpec(shape, lambda b, _n=n: (0,) * _n)

    in_specs = [
        pl.BlockSpec((1, S, H), lambda b: (b, 0, 0)),    # x
        pl.BlockSpec((1, 1, S), lambda b: (b, 0, 0)),    # additive key-mask bias
        param_spec((H, H)), param_spec((1, H)),          # wq, bq
        param_spec((H, H)), param_spec((1, H)),          # wk, bk
        param_spec((H, H)), param_spec((1, H)),          # wv, bv
        param_spec((H, H)), param_spec((1, H)),          # wo, bo
        param_spec((1, H)), param_spec((1, H)),          # ln1 gamma, beta
        param_spec((H, d_ff)), param_spec((1, d_ff)),    # w1, b1
        param_spec((d_ff, H)), param_spec((1, H)),       # w2, b2
        param_spec((1, H)), param_spec((1, H)),          # ln2 gamma, beta
    ]

    # Explicit VMEM budget: single-buffered bf16 weights + activation blocks + attention /
    # FFN chunk temporaries, with headroom.  Clamped to v7x's 64 MiB physical VMEM.
    bytes_weights = (4 * H * H + 2 * H * d_ff) * 2                 # bf16 weights
    bytes_params = (9 * H + d_ff) * 4                              # f32 biases + LN params
    bytes_act = 2 * 2 * (S * H * 4)                                # x in + out, double-buffered
    bytes_attn = (3 * S * H * 4 + 3 * S * H * 2                    # q/k/v f32 + bf16 head copies
                  + 4 * nh * S * kv_tile * 4                       # score-chunk temporaries
                  + 2 * nh * S * dk * 4)                           # acc + ctx
    bytes_ffn = 3 * S * dff_tile * 4
    est = bytes_weights + bytes_params + bytes_act + bytes_attn + bytes_ffn
    vmem_limit = int(min(max(int(est * 1.5) + (8 << 20), 24 << 20), 64 << 20))

    # Advisory cost estimate: weights are DMA'd once per call (constant index_map),
    # activations once per batch element.
    flops = B * (2 * S * H * H * 4                # q/k/v/out projections
                 + 4 * S * S * H                  # scores + context
                 + 2 * S * H * d_ff * 2)          # FFN
    transc = B * (nh * S * S + S * d_ff + 2 * S)
    bytes_accessed = bytes_weights + bytes_params + B * (2 * S * H * 4 + S * 4)
    cost = pl.CostEstimate(flops=flops, transcendentals=transc,
                           bytes_accessed=bytes_accessed)

    return pl.pallas_call(
        functools.partial(transformer_block_kernel, num_heads=nh,
                          kv_tile=kv_tile, dff_tile=dff_tile),
        out_shape=jax.ShapeDtypeStruct((B, S, H), jnp.float32),
        grid_spec=pltpu.PrefetchScalarGridSpec(
            num_scalar_prefetch=0,
            grid=(B,),
            in_specs=in_specs,
            out_specs=pl.BlockSpec((1, S, H), lambda b: (b, 0, 0)),
        ),
        compiler_params=pltpu.CompilerParams(
            dimension_semantics=("parallel",),   # megacore shards over batch
            vmem_limit_bytes=vmem_limit,
        ),
        cost_estimate=cost,
    )(
        x, mask_bias,
        bp["wq"], bp["bq"], bp["wk"], bp["bk"], bp["wv"], bp["bv"], bp["wo"], bp["bo"],
        bp["ln1_g"], bp["ln1_b"],
        bp["w1"], bp["b1"], bp["w2"], bp["b2"],
        bp["ln2_g"], bp["ln2_b"],
    )


def transformer_block(x, mask_bias, bp, *, num_heads):
    """x: (B,S,H) f32, mask_bias: (B,1,S) f32 additive bias. Returns (B,S,H) f32."""
    global _SINGLE_BUFFER_WEIGHTS
    if _SINGLE_BUFFER_WEIGHTS:
        try:
            return _transformer_block_call(x, mask_bias, bp,
                                           num_heads=num_heads, single_buffer=True)
        except Exception:
            # Fallback if this jax build rejects pipeline_mode / Buffered(1): keep running
            # with default double-buffered parameter specs.
            _SINGLE_BUFFER_WEIGHTS = False
    return _transformer_block_call(x, mask_bias, bp,
                                   num_heads=num_heads, single_buffer=False)


# ------------------------------ BERT wrapper ----------------------------------
def init_params(key, *, vocab_size, max_len, hidden, n_layers):
    d_ff = hidden * 4
    keys = jax.random.split(key, 4 + n_layers)

    tok_emb = 0.02 * jax.random.normal(keys[0], (vocab_size, hidden), jnp.float32)
    tok_emb = tok_emb.at[0].set(0.0)  # padding_idx=0
    pos_emb = 0.02 * jax.random.normal(keys[1], (max_len, hidden), jnp.float32)

    blocks = []
    for li in range(n_layers):
        ks = jax.random.split(keys[4 + li], 8)
        s = 0.02
        blocks.append(dict(
            wq=s * jax.random.normal(ks[0], (hidden, hidden), jnp.float32), bq=jnp.zeros((1, hidden), jnp.float32),
            wk=s * jax.random.normal(ks[1], (hidden, hidden), jnp.float32), bk=jnp.zeros((1, hidden), jnp.float32),
            wv=s * jax.random.normal(ks[2], (hidden, hidden), jnp.float32), bv=jnp.zeros((1, hidden), jnp.float32),
            wo=s * jax.random.normal(ks[3], (hidden, hidden), jnp.float32), bo=jnp.zeros((1, hidden), jnp.float32),
            ln1_g=jnp.ones((1, hidden), jnp.float32), ln1_b=jnp.zeros((1, hidden), jnp.float32),
            w1=s * jax.random.normal(ks[4], (hidden, hidden * 4), jnp.float32), b1=jnp.zeros((1, hidden * 4), jnp.float32),
            w2=s * jax.random.normal(ks[5], (hidden * 4, hidden), jnp.float32), b2=jnp.zeros((1, hidden), jnp.float32),
            ln2_g=jnp.ones((1, hidden), jnp.float32), ln2_b=jnp.zeros((1, hidden), jnp.float32),
        ))
    return dict(tok_emb=tok_emb, pos_emb=pos_emb, blocks=blocks)


def prepare_params(params):
    """One-time inference prep: cache bf16 copies of the matmul weights (biases / LN stay f32)."""
    blocks = []
    for bp in params["blocks"]:
        nbp = dict(bp)
        for name in ("wq", "wk", "wv", "wo", "w1", "w2"):
            nbp[name] = bp[name].astype(jnp.bfloat16)
        blocks.append(nbp)
    return dict(params, blocks=blocks)


def bert_forward(x_ids, params, *, num_heads, is_mp=False):
    """Faithful port of BERT.forward (eval mode, dropout = identity).

    x_ids: (B, S) int32 token ids, S == max_len.
    """
    B, S = x_ids.shape

    # The PyTorch mask (x>0).unsqueeze(1).repeat(1,S,1).unsqueeze(1) is a pure key-mask
    # broadcast over queries/heads -> pass an additive (B,1,S) bias (0 attend / -1e9 masked).
    mask_bias = jnp.where(x_ids > 0, 0.0, -1e9).astype(jnp.float32)[:, None, :]   # (B,1,S)

    # BERTEmbedding: token + positional (positional repeated over batch), dropout = identity
    h = params["tok_emb"][x_ids] + params["pos_emb"][None, :, :]                  # (B, S, H)

    # Loop mirrors BERT.forward: only even-index entries of transformer_blocks execute
    # (with is_mp=False the odd-index TransformerBlocks are silently skipped, as in the source).
    for i, bp in enumerate(params["blocks"]):
        if i % 2 == 0:
            h = transformer_block(h, mask_bias, bp, num_heads=num_heads)
        elif is_mp:
            # TODO(synk): bottle_net.forward returns None (bare `return`), so the original
            # module would crash on this path; is_mp=True is not reproducible.
            pass
    return h


# ---------------------------------- main ---------------------------------------
if __name__ == "__main__":
    # Small, module-consistent config:
    #   max_len=8, block_num=4 (-> n_layers=4, heads=4), num_embedding=50 (vocab=51),
    #   hidden_size=32, is_mp=False, dropout inactive (eval).
    # Note: at these tiny dims the kernel is dominated by (8,128) tile padding; the
    # structural optimizations pay off at real BERT dimensions (H>=512, S>=128).
    MAX_LEN, BLOCK_NUM, NUM_EMB, HIDDEN = 8, 4, 50, 32
    BATCH = 2

    key = jax.random.PRNGKey(0)
    pkey, xkey = jax.random.split(key)

    params = init_params(
        pkey, vocab_size=NUM_EMB + 1, max_len=MAX_LEN, hidden=HIDDEN, n_layers=BLOCK_NUM
    )
    params = prepare_params(params)   # one-time bf16 weight caching (not per forward)

    # token ids in [0, vocab); include some zeros so the padding mask is exercised
    x_ids = jax.random.randint(xkey, (BATCH, MAX_LEN), 0, NUM_EMB + 1, dtype=jnp.int32)
    x_ids = x_ids.at[:, -2:].set(0)   # pad tail positions

    out = bert_forward(x_ids, params, num_heads=BLOCK_NUM, is_mp=False)
    out = jax.block_until_ready(out)

    assert out.shape == (BATCH, MAX_LEN, HIDDEN), out.shape
    assert jnp.all(jnp.isfinite(out)), "non-finite output"
    print("KERNEL_OK")
</pallas_src>

<mosaic_0001>
module attributes {stable_mosaic.version = 11 : i64} {
  func.func @transformer_block_kernel(%arg0: i32, %arg1: memref<1x8x32xf32, #tpu.memory_space<vmem>>, %arg2: memref<1x1x8xf32, #tpu.memory_space<vmem>>, %arg3: memref<32x32xbf16, #tpu.memory_space<vmem>>, %arg4: memref<1x32xf32, #tpu.memory_space<vmem>>, %arg5: memref<32x32xbf16, #tpu.memory_space<vmem>>, %arg6: memref<1x32xf32, #tpu.memory_space<vmem>>, %arg7: memref<32x32xbf16, #tpu.memory_space<vmem>>, %arg8: memref<1x32xf32, #tpu.memory_space<vmem>>, %arg9: memref<32x32xbf16, #tpu.memory_space<vmem>>, %arg10: memref<1x32xf32, #tpu.memory_space<vmem>>, %arg11: memref<1x32xf32, #tpu.memory_space<vmem>>, %arg12: memref<1x32xf32, #tpu.memory_space<vmem>>, %arg13: memref<32x128xbf16, #tpu.memory_space<vmem>>, %arg14: memref<1x128xf32, #tpu.memory_space<vmem>>, %arg15: memref<128x32xbf16, #tpu.memory_space<vmem>>, %arg16: memref<1x32xf32, #tpu.memory_space<vmem>>, %arg17: memref<1x32xf32, #tpu.memory_space<vmem>>, %arg18: memref<1x32xf32, #tpu.memory_space<vmem>>, %arg19: memref<1x8x32xf32, #tpu.memory_space<vmem>>) attributes {dimension_semantics = [#tpu.dimension_semantics<parallel>], iteration_bounds = array<i64: 2>, scalar_prefetch = 0 : i64, scratch_operands = 0 : i64, tpu.core_type = #tpu.core_type<tc>, window_params = [{transform_indices = @transform_0, window_bounds = array<i64: 1, 8, 32>}, {transform_indices = @transform_1, window_bounds = array<i64: 1, 1, 8>}, {pipeline_mode = #tpu.pipeline_mode<synchronous>, transform_indices = @transform_2, window_bounds = array<i64: 32, 32>}, {pipeline_mode = #tpu.pipeline_mode<synchronous>, transform_indices = @transform_3, window_bounds = array<i64: 1, 32>}, {pipeline_mode = #tpu.pipeline_mode<synchronous>, transform_indices = @transform_4, window_bounds = array<i64: 32, 32>}, {pipeline_mode = #tpu.pipeline_mode<synchronous>, transform_indices = @transform_5, window_bounds = array<i64: 1, 32>}, {pipeline_mode = #tpu.pipeline_mode<synchronous>, transform_indices = @transform_6, window_bounds = array<i64: 32, 32>}, {pipeline_mode = #tpu.pipeline_mode<synchronous>, transform_indices = @transform_7, window_bounds = array<i64: 1, 32>}, {pipeline_mode = #tpu.pipeline_mode<synchronous>, transform_indices = @transform_8, window_bounds = array<i64: 32, 32>}, {pipeline_mode = #tpu.pipeline_mode<synchronous>, transform_indices = @transform_9, window_bounds = array<i64: 1, 32>}, {pipeline_mode = #tpu.pipeline_mode<synchronous>, transform_indices = @transform_10, window_bounds = array<i64: 1, 32>}, {pipeline_mode = #tpu.pipeline_mode<synchronous>, transform_indices = @transform_11, window_bounds = array<i64: 1, 32>}, {pipeline_mode = #tpu.pipeline_mode<synchronous>, transform_indices = @transform_12, window_bounds = array<i64: 32, 128>}, {pipeline_mode = #tpu.pipeline_mode<synchronous>, transform_indices = @transform_13, window_bounds = array<i64: 1, 128>}, {pipeline_mode = #tpu.pipeline_mode<synchronous>, transform_indices = @transform_14, window_bounds = array<i64: 128, 32>}, {pipeline_mode = #tpu.pipeline_mode<synchronous>, transform_indices = @transform_15, window_bounds = array<i64: 1, 32>}, {pipeline_mode = #tpu.pipeline_mode<synchronous>, transform_indices = @transform_16, window_bounds = array<i64: 1, 32>}, {pipeline_mode = #tpu.pipeline_mode<synchronous>, transform_indices = @transform_17, window_bounds = array<i64: 1, 32>}, {transform_indices = @transform_18, window_bounds = array<i64: 1, 8, 32>}]} {
    %c0 = arith.constant 0 : index
    %c0_0 = arith.constant 0 : index
    %c0_1 = arith.constant 0 : index
    %0 = vector.load %arg1[%c0, %c0_0, %c0_1] : memref<1x8x32xf32, #tpu.memory_space<vmem>>, vector<1x8x32xf32>
    %1 = vector.shape_cast %0 : vector<1x8x32xf32> to vector<8x32xf32>
    %c0_2 = arith.constant 0 : index
    %c0_3 = arith.constant 0 : index
    %c0_4 = arith.constant 0 : index
    %2 = vector.load %arg2[%c0_2, %c0_3, %c0_4] : memref<1x1x8xf32, #tpu.memory_space<vmem>>, vector<1x1x8xf32>
    %3 = vector.shape_cast %2 : vector<1x1x8xf32> to vector<1x8xf32>
    %c0_5 = arith.constant 0 : index
    %c0_6 = arith.constant 0 : index
    %4 = vector.load %arg4[%c0_5, %c0_6] : memref<1x32xf32, #tpu.memory_space<vmem>>, vector<1x32xf32>
    %c0_7 = arith.constant 0 : index
    %c0_8 = arith.constant 0 : index
    %5 = vector.load %arg6[%c0_7, %c0_8] : memref<1x32xf32, #tpu.memory_space<vmem>>, vector<1x32xf32>
    %c0_9 = arith.constant 0 : index
    %c0_10 = arith.constant 0 : index
    %6 = vector.load %arg8[%c0_9, %c0_10] : memref<1x32xf32, #tpu.memory_space<vmem>>, vector<1x32xf32>
    %c0_11 = arith.constant 0 : index
    %c0_12 = arith.constant 0 : index
    %7 = vector.load %arg10[%c0_11, %c0_12] : memref<1x32xf32, #tpu.memory_space<vmem>>, vector<1x32xf32>
    %c0_13 = arith.constant 0 : index
    %c0_14 = arith.constant 0 : index
    %8 = vector.load %arg11[%c0_13, %c0_14] : memref<1x32xf32, #tpu.memory_space<vmem>>, vector<1x32xf32>
    %c0_15 = arith.constant 0 : index
    %c0_16 = arith.constant 0 : index
    %9 = vector.load %arg12[%c0_15, %c0_16] : memref<1x32xf32, #tpu.memory_space<vmem>>, vector<1x32xf32>
    %cst = arith.constant dense<0.000000e+00> : vector<8xf32>
    %10 = vector.multi_reduction <add>, %1, %cst [1] : vector<8x32xf32> to vector<8xf32>
    %11 = vector.shape_cast %10 : vector<8xf32> to vector<8x1xf32>
    %cst_17 = arith.constant 3.200000e+01 : f32
    %12 = vector.broadcast %cst_17 : f32 to vector<8x1xf32>
    %13 = arith.divf %11, %12 : vector<8x1xf32>
    %14 = vector.broadcast %13 : vector<8x1xf32> to vector<8x32xf32>
    %15 = arith.subf %1, %14 : vector<8x32xf32>
    %16 = arith.mulf %15, %15 : vector<8x32xf32>
    %cst_18 = arith.constant dense<0.000000e+00> : vector<8xf32>
    %17 = vector.multi_reduction <add>, %16, %cst_18 [1] : vector<8x32xf32> to vector<8xf32>
    %18 = vector.shape_cast %17 : vector<8xf32> to vector<8x1xf32>
    %cst_19 = arith.constant 3.200000e+01 : f32
    %19 = vector.broadcast %cst_19 : f32 to vector<8x1xf32>
    %20 = arith.divf %18, %19 : vector<8x1xf32>
    %21 = vector.broadcast %13 : vector<8x1xf32> to vector<8x32xf32>
    %22 = arith.subf %1, %21 : vector<8x32xf32>
    %cst_20 = arith.constant 9.99999974E-6 : f32
    %23 = vector.broadcast %cst_20 : f32 to vector<8x1xf32>
    %24 = arith.addf %20, %23 : vector<8x1xf32>
    %25 = math.rsqrt %24 : vector<8x1xf32>
    %26 = vector.broadcast %25 : vector<8x1xf32> to vector<8x32xf32>
    %27 = arith.mulf %22, %26 : vector<8x32xf32>
    %28 = vector.broadcast %8 : vector<1x32xf32> to vector<8x32xf32>
    %29 = arith.mulf %27, %28 : vector<8x32xf32>
    %30 = vector.broadcast %9 : vector<1x32xf32> to vector<8x32xf32>
    %31 = arith.addf %29, %30 : vector<8x32xf32>
    %32 = arith.truncf %31 : vector<8x32xf32> to vector<8x32xbf16>
    %c0_21 = arith.constant 0 : index
    %c0_22 = arith.constant 0 : index
    %33 = vector.load %arg3[%c0_21, %c0_22] : memref<32x32xbf16, #tpu.memory_space<vmem>>, vector<32x32xbf16>
    %cst_23 = arith.constant dense<0.000000e+00> : vector<8x32xf32>
    %34 = tpu.matmul %32, %33, %cst_23 {dimension_numbers = #tpu.dot_dimension_numbers<[1], [0], [0], [1], [0, 0, 1, 1], [], []>} : vector<8x32xbf16>, vector<32x32xbf16>, vector<8x32xf32> -> vector<8x32xf32>
    %35 = vector.broadcast %4 : vector<1x32xf32> to vector<8x32xf32>
    %36 = arith.addf %34, %35 : vector<8x32xf32>
    %c0_24 = arith.constant 0 : index
    %c0_25 = arith.constant 0 : index
    %37 = vector.load %arg5[%c0_24, %c0_25] : memref<32x32xbf16, #tpu.memory_space<vmem>>, vector<32x32xbf16>
    %cst_26 = arith.constant dense<0.000000e+00> : vector<8x32xf32>
    %38 = tpu.matmul %32, %37, %cst_26 {dimension_numbers = #tpu.dot_dimension_numbers<[1], [0], [0], [1], [0, 0, 1, 1], [], []>} : vector<8x32xbf16>, vector<32x32xbf16>, vector<8x32xf32> -> vector<8x32xf32>
    %39 = vector.broadcast %5 : vector<1x32xf32> to vector<8x32xf32>
    %40 = arith.addf %38, %39 : vector<8x32xf32>
    %c0_27 = arith.constant 0 : index
    %c0_28 = arith.constant 0 : index
    %41 = vector.load %arg7[%c0_27, %c0_28] : memref<32x32xbf16, #tpu.memory_space<vmem>>, vector<32x32xbf16>
    %cst_29 = arith.constant dense<0.000000e+00> : vector<8x32xf32>
    %42 = tpu.matmul %32, %41, %cst_29 {dimension_numbers = #tpu.dot_dimension_numbers<[1], [0], [0], [1], [0, 0, 1, 1], [], []>} : vector<8x32xbf16>, vector<32x32xbf16>, vector<8x32xf32> -> vector<8x32xf32>
    %43 = vector.broadcast %6 : vector<1x32xf32> to vector<8x32xf32>
    %44 = arith.addf %42, %43 : vector<8x32xf32>
    %45 = vector.shape_cast %36 : vector<8x32xf32> to vector<8x4x8xf32>
    %46 = tpu.transpose %45, [1, 0, 2] : vector<8x4x8xf32> -> vector<4x8x8xf32>
    %47 = arith.truncf %46 : vector<4x8x8xf32> to vector<4x8x8xbf16>
    %48 = vector.shape_cast %40 : vector<8x32xf32> to vector<8x4x8xf32>
    %49 = tpu.transpose %48, [1, 0, 2] : vector<8x4x8xf32> -> vector<4x8x8xf32>
    %50 = arith.truncf %49 : vector<4x8x8xf32> to vector<4x8x8xbf16>
    %51 = vector.shape_cast %44 : vector<8x32xf32> to vector<8x4x8xf32>
    %52 = tpu.transpose %51, [1, 0, 2] : vector<8x4x8xf32> -> vector<4x8x8xf32>
    %53 = arith.truncf %52 : vector<4x8x8xf32> to vector<4x8x8xbf16>
    %cst_30 = arith.constant -1.000000e+30 : f32
    %54 = vector.broadcast %cst_30 : f32 to vector<4x8x1xf32>
    %cst_31 = arith.constant 0.000000e+00 : f32
    %55 = vector.broadcast %cst_31 : f32 to vector<4x8x1xf32>
    %cst_32 = arith.constant 0.000000e+00 : f32
    %56 = vector.broadcast %cst_32 : f32 to vector<4x8x8xf32>
    "tpu.trace_start"() <{level = 10 : i32, message = "hqd,hkd->hqk"}> : () -> ()
    %cst_33 = arith.constant dense<0.000000e+00> : vector<4x8x8xf32>
    %57 = tpu.matmul %47, %50, %cst_33 {dimension_numbers = #tpu.dot_dimension_numbers<[2], [2], [1], [1], [0, 0, 0, 1, 1, 1], [0], [0]>} : vector<4x8x8xbf16>, vector<4x8x8xbf16>, vector<4x8x8xf32> -> vector<4x8x8xf32>
    "tpu.trace_stop"() : () -> ()
    %cst_34 = arith.constant 0.353553385 : f32
    %58 = vector.broadcast %cst_34 : f32 to vector<4x8x8xf32>
    %59 = arith.mulf %57, %58 : vector<4x8x8xf32>
    %60 = vector.shape_cast %3 : vector<1x8xf32> to vector<1x1x8xf32>
    %61 = vector.broadcast %60 : vector<1x1x8xf32> to vector<4x8x8xf32>
    %62 = arith.addf %59, %61 : vector<4x8x8xf32>
    %cst_35 = arith.constant dense<0xFF800000> : vector<4x8xf32>
    %63 = vector.multi_reduction <maximumf>, %62, %cst_35 [2] : vector<4x8x8xf32> to vector<4x8xf32>
    %64 = vector.shape_cast %63 : vector<4x8xf32> to vector<4x8x1xf32>
    %65 = arith.maximumf %54, %64 : vector<4x8x1xf32>
    %66 = arith.subf %54, %65 : vector<4x8x1xf32>
    %67 = math.exp %66 : vector<4x8x1xf32>
    %68 = vector.broadcast %65 : vector<4x8x1xf32> to vector<4x8x8xf32>
    %69 = arith.subf %62, %68 : vector<4x8x8xf32>
    %70 = math.exp %69 : vector<4x8x8xf32>
    %71 = arith.mulf %67, %55 : vector<4x8x1xf32>
    %cst_36 = arith.constant dense<0.000000e+00> : vector<4x8xf32>
    %72 = vector.multi_reduction <add>, %70, %cst_36 [2] : vector<4x8x8xf32> to vector<4x8xf32>
    %73 = vector.shape_cast %72 : vector<4x8xf32> to vector<4x8x1xf32>
    %74 = arith.addf %71, %73 : vector<4x8x1xf32>
    %75 = vector.broadcast %67 : vector<4x8x1xf32> to vector<4x8x8xf32>
    %76 = arith.mulf %75, %56 : vector<4x8x8xf32>
    %77 = arith.truncf %70 : vector<4x8x8xf32> to vector<4x8x8xbf16>
    "tpu.trace_start"() <{level = 10 : i32, message = "hqk,hkd->hqd"}> : () -> ()
    %cst_37 = arith.constant dense<0.000000e+00> : vector<4x8x8xf32>
    %78 = tpu.matmul %77, %53, %cst_37 {dimension_numbers = #tpu.dot_dimension_numbers<[2], [1], [1], [2], [0, 0, 0, 1, 1, 2], [0], [0]>} : vector<4x8x8xbf16>, vector<4x8x8xbf16>, vector<4x8x8xf32> -> vector<4x8x8xf32>
    "tpu.trace_stop"() : () -> ()
    %79 = arith.addf %76, %78 : vector<4x8x8xf32>
    %80 = tpu.reciprocal %74 {approx = true} : vector<4x8x1xf32> -> vector<4x8x1xf32>
    %81 = vector.broadcast %80 : vector<4x8x1xf32> to vector<4x8x8xf32>
    %82 = arith.mulf %79, %81 : vector<4x8x8xf32>
    %83 = tpu.transpose %82, [1, 0, 2] : vector<4x8x8xf32> -> vector<8x4x8xf32>
    %84 = vector.shape_cast %83 : vector<8x4x8xf32> to vector<8x32xf32>
    %85 = arith.truncf %84 : vector<8x32xf32> to vector<8x32xbf16>
    %c0_38 = arith.constant 0 : index
    %c0_39 = arith.constant 0 : index
    %86 = vector.load %arg9[%c0_38, %c0_39] : memref<32x32xbf16, #tpu.memory_space<vmem>>, vector<32x32xbf16>
    %cst_40 = arith.constant dense<0.000000e+00> : vector<8x32xf32>
    %87 = tpu.matmul %85, %86, %cst_40 {dimension_numbers = #tpu.dot_dimension_numbers<[1], [0], [0], [1], [0, 0, 1, 1], [], []>} : vector<8x32xbf16>, vector<32x32xbf16>, vector<8x32xf32> -> vector<8x32xf32>
    %88 = vector.broadcast %7 : vector<1x32xf32> to vector<8x32xf32>
    %89 = arith.addf %87, %88 : vector<8x32xf32>
    %90 = arith.addf %1, %89 : vector<8x32xf32>
    %c0_41 = arith.constant 0 : index
    %c0_42 = arith.constant 0 : index
    %91 = vector.load %arg17[%c0_41, %c0_42] : memref<1x32xf32, #tpu.memory_space<vmem>>, vector<1x32xf32>
    %c0_43 = arith.constant 0 : index
    %c0_44 = arith.constant 0 : index
    %92 = vector.load %arg18[%c0_43, %c0_44] : memref<1x32xf32, #tpu.memory_space<vmem>>, vector<1x32xf32>
    %cst_45 = arith.constant dense<0.000000e+00> : vector<8xf32>
    %93 = vector.multi_reduction <add>, %90, %cst_45 [1] : vector<8x32xf32> to vector<8xf32>
    %94 = vector.shape_cast %93 : vector<8xf32> to vector<8x1xf32>
    %cst_46 = arith.constant 3.200000e+01 : f32
    %95 = vector.broadcast %cst_46 : f32 to vector<8x1xf32>
    %96 = arith.divf %94, %95 : vector<8x1xf32>
    %97 = vector.broadcast %96 : vector<8x1xf32> to vector<8x32xf32>
    %98 = arith.subf %90, %97 : vector<8x32xf32>
    %99 = arith.mulf %98, %98 : vector<8x32xf32>
    %cst_47 = arith.constant dense<0.000000e+00> : vector<8xf32>
    %100 = vector.multi_reduction <add>, %99, %cst_47 [1] : vector<8x32xf32> to vector<8xf32>
    %101 = vector.shape_cast %100 : vector<8xf32> to vector<8x1xf32>
    %cst_48 = arith.constant 3.200000e+01 : f32
    %102 = vector.broadcast %cst_48 : f32 to vector<8x1xf32>
    %103 = arith.divf %101, %102 : vector<8x1xf32>
    %104 = vector.broadcast %96 : vector<8x1xf32> to vector<8x32xf32>
    %105 = arith.subf %90, %104 : vector<8x32xf32>
    %cst_49 = arith.constant 9.99999974E-6 : f32
    %106 = vector.broadcast %cst_49 : f32 to vector<8x1xf32>
    %107 = arith.addf %103, %106 : vector<8x1xf32>
    %108 = math.rsqrt %107 : vector<8x1xf32>
    %109 = vector.broadcast %108 : vector<8x1xf32> to vector<8x32xf32>
    %110 = arith.mulf %105, %109 : vector<8x32xf32>
    %111 = vector.broadcast %91 : vector<1x32xf32> to vector<8x32xf32>
    %112 = arith.mulf %110, %111 : vector<8x32xf32>
    %113 = vector.broadcast %92 : vector<1x32xf32> to vector<8x32xf32>
    %114 = arith.addf %112, %113 : vector<8x32xf32>
    %115 = arith.truncf %114 : vector<8x32xf32> to vector<8x32xbf16>
    %cst_50 = arith.constant 0.000000e+00 : f32
    %116 = vector.broadcast %cst_50 : f32 to vector<8x32xf32>
    %c0_51 = arith.constant 0 : index
    %c0_52 = arith.constant 0 : index
    %117 = vector.load %arg13[%c0_51, %c0_52] : memref<32x128xbf16, #tpu.memory_space<vmem>>, vector<32x128xbf16>
    %cst_53 = arith.constant dense<0.000000e+00> : vector<8x128xf32>
    %118 = tpu.matmul %115, %117, %cst_53 {dimension_numbers = #tpu.dot_dimension_numbers<[1], [0], [0], [1], [0, 0, 1, 1], [], []>} : vector<8x32xbf16>, vector<32x128xbf16>, vector<8x128xf32> -> vector<8x128xf32>
    %c0_54 = arith.constant 0 : index
    %c0_55 = arith.constant 0 : index
    %119 = vector.load %arg14[%c0_54, %c0_55] : memref<1x128xf32, #tpu.memory_space<vmem>>, vector<1x128xf32>
    %120 = vector.broadcast %119 : vector<1x128xf32> to vector<8x128xf32>
    %121 = arith.addf %118, %120 : vector<8x128xf32>
    %cst_56 = arith.constant 5.000000e-01 : f32
    %122 = vector.broadcast %cst_56 : f32 to vector<8x128xf32>
    %123 = arith.mulf %122, %121 : vector<8x128xf32>
    %cst_57 = arith.constant 4.471500e-02 : f32
    %124 = vector.broadcast %cst_57 : f32 to vector<8x128xf32>
    %125 = arith.mulf %124, %121 : vector<8x128xf32>
    %126 = arith.mulf %125, %121 : vector<8x128xf32>
    %127 = arith.mulf %126, %121 : vector<8x128xf32>
    %128 = arith.addf %121, %127 : vector<8x128xf32>
    %cst_58 = arith.constant 0.797884583 : f32
    %129 = vector.broadcast %cst_58 : f32 to vector<8x128xf32>
    %130 = arith.mulf %129, %128 : vector<8x128xf32>
    %131 = math.tanh %130 : vector<8x128xf32>
    %cst_59 = arith.constant 1.000000e+00 : f32
    %132 = vector.broadcast %cst_59 : f32 to vector<8x128xf32>
    %133 = arith.addf %132, %131 : vector<8x128xf32>
    %134 = arith.mulf %123, %133 : vector<8x128xf32>
    %135 = arith.truncf %134 : vector<8x128xf32> to vector<8x128xbf16>
    %c0_60 = arith.constant 0 : index
    %c0_61 = arith.constant 0 : index
    %136 = vector.load %arg15[%c0_60, %c0_61] : memref<128x32xbf16, #tpu.memory_space<vmem>>, vector<128x32xbf16>
    %cst_62 = arith.constant dense<0.000000e+00> : vector<8x32xf32>
    %137 = tpu.matmul %135, %136, %cst_62 {dimension_numbers = #tpu.dot_dimension_numbers<[1], [0], [0], [1], [0, 0, 1, 1], [], []>} : vector<8x128xbf16>, vector<128x32xbf16>, vector<8x32xf32> -> vector<8x32xf32>
    %138 = arith.addf %116, %137 : vector<8x32xf32>
    %c0_63 = arith.constant 0 : index
    %c0_64 = arith.constant 0 : index
    %139 = vector.load %arg16[%c0_63, %c0_64] : memref<1x32xf32, #tpu.memory_space<vmem>>, vector<1x32xf32>
    %140 = vector.broadcast %139 : vector<1x32xf32> to vector<8x32xf32>
    %141 = arith.addf %138, %140 : vector<8x32xf32>
    %142 = arith.addf %90, %141 : vector<8x32xf32>
    %c0_65 = arith.constant 0 : index
    %c0_66 = arith.constant 0 : index
    %c0_67 = arith.constant 0 : index
    %143 = vector.load %arg19[%c0_65, %c0_66, %c0_67] : memref<1x8x32xf32, #tpu.memory_space<vmem>>, vector<1x8x32xf32>
    %144 = vector.shape_cast %143 : vector<1x8x32xf32> to vector<8x32xf32>
    %145 = vector.shape_cast %142 : vector<8x32xf32> to vector<1x8x32xf32>
    tpu.vector_store %arg19[%c0_65, %c0_66, %c0_67], %145 {strides = array<i32>} : memref<1x8x32xf32, #tpu.memory_space<vmem>>, vector<1x8x32xf32>,
    return
  }
  func.func @transform_0(%arg0: i32) -> (i32, i32, i32) {
    %c0_i32 = arith.constant 0 : i32
    %c0_i32_0 = arith.constant 0 : i32
    %c0_i32_1 = arith.constant 0 : i32
    return %arg0, %c0_i32, %c0_i32_0 : i32, i32, i32
  }
  func.func @transform_1(%arg0: i32) -> (i32, i32, i32) {
    %c0_i32 = arith.constant 0 : i32
    %c0_i32_0 = arith.constant 0 : i32
    %c0_i32_1 = arith.constant 0 : i32
    return %arg0, %c0_i32, %c0_i32_0 : i32, i32, i32
  }
  func.func @transform_2(%arg0: i32) -> (i32, i32) {
    %c0_i32 = arith.constant 0 : i32
    %c0_i32_0 = arith.constant 0 : i32
    %c0_i32_1 = arith.constant 0 : i32
    return %c0_i32, %c0_i32_0 : i32, i32
  }
  func.func @transform_3(%arg0: i32) -> (i32, i32) {
    %c0_i32 = arith.constant 0 : i32
    %c0_i32_0 = arith.constant 0 : i32
    %c0_i32_1 = arith.constant 0 : i32
    return %c0_i32, %c0_i32_0 : i32, i32
  }
  func.func @transform_4(%arg0: i32) -> (i32, i32) {
    %c0_i32 = arith.constant 0 : i32
    %c0_i32_0 = arith.constant 0 : i32
    %c0_i32_1 = arith.constant 0 : i32
    return %c0_i32, %c0_i32_0 : i32, i32
  }
  func.func @transform_5(%arg0: i32) -> (i32, i32) {
    %c0_i32 = arith.constant 0 : i32
    %c0_i32_0 = arith.constant 0 : i32
    %c0_i32_1 = arith.constant 0 : i32
    return %c0_i32, %c0_i32_0 : i32, i32
  }
  func.func @transform_6(%arg0: i32) -> (i32, i32) {
    %c0_i32 = arith.constant 0 : i32
    %c0_i32_0 = arith.constant 0 : i32
    %c0_i32_1 = arith.constant 0 : i32
    return %c0_i32, %c0_i32_0 : i32, i32
  }
  func.func @transform_7(%arg0: i32) -> (i32, i32) {
    %c0_i32 = arith.constant 0 : i32
    %c0_i32_0 = arith.constant 0 : i32
    %c0_i32_1 = arith.constant 0 : i32
    return %c0_i32, %c0_i32_0 : i32, i32
  }
  func.func @transform_8(%arg0: i32) -> (i32, i32) {
    %c0_i32 = arith.constant 0 : i32
    %c0_i32_0 = arith.constant 0 : i32
    %c0_i32_1 = arith.constant 0 : i32
    return %c0_i32, %c0_i32_0 : i32, i32
  }
  func.func @transform_9(%arg0: i32) -> (i32, i32) {
    %c0_i32 = arith.constant 0 : i32
    %c0_i32_0 = arith.constant 0 : i32
    %c0_i32_1 = arith.constant 0 : i32
    return %c0_i32, %c0_i32_0 : i32, i32
  }
  func.func @transform_10(%arg0: i32) -> (i32, i32) {
    %c0_i32 = arith.constant 0 : i32
    %c0_i32_0 = arith.constant 0 : i32
    %c0_i32_1 = arith.constant 0 : i32
    return %c0_i32, %c0_i32_0 : i32, i32
  }
  func.func @transform_11(%arg0: i32) -> (i32, i32) {
    %c0_i32 = arith.constant 0 : i32
    %c0_i32_0 = arith.constant 0 : i32
    %c0_i32_1 = arith.constant 0 : i32
    return %c0_i32, %c0_i32_0 : i32, i32
  }
  func.func @transform_12(%arg0: i32) -> (i32, i32) {
    %c0_i32 = arith.constant 0 : i32
    %c0_i32_0 = arith.constant 0 : i32
    %c0_i32_1 = arith.constant 0 : i32
    return %c0_i32, %c0_i32_0 : i32, i32
  }
  func.func @transform_13(%arg0: i32) -> (i32, i32) {
    %c0_i32 = arith.constant 0 : i32
    %c0_i32_0 = arith.constant 0 : i32
    %c0_i32_1 = arith.constant 0 : i32
    return %c0_i32, %c0_i32_0 : i32, i32
  }
  func.func @transform_14(%arg0: i32) -> (i32, i32) {
    %c0_i32 = arith.constant 0 : i32
    %c0_i32_0 = arith.constant 0 : i32
    %c0_i32_1 = arith.constant 0 : i32
    return %c0_i32, %c0_i32_0 : i32, i32
  }
  func.func @transform_15(%arg0: i32) -> (i32, i32) {
    %c0_i32 = arith.constant 0 : i32
    %c0_i32_0 = arith.constant 0 : i32
    %c0_i32_1 = arith.constant 0 : i32
    return %c0_i32, %c0_i32_0 : i32, i32
  }
  func.func @transform_16(%arg0: i32) -> (i32, i32) {
    %c0_i32 = arith.constant 0 : i32
    %c0_i32_0 = arith.constant 0 : i32
    %c0_i32_1 = arith.constant 0 : i32
    return %c0_i32, %c0_i32_0 : i32, i32
  }
  func.func @transform_17(%arg0: i32) -> (i32, i32) {
    %c0_i32 = arith.constant 0 : i32
    %c0_i32_0 = arith.constant 0 : i32
    %c0_i32_1 = arith.constant 0 : i32
    return %c0_i32, %c0_i32_0 : i32, i32
  }
  func.func @transform_18(%arg0: i32) -> (i32, i32, i32) {
    %c0_i32 = arith.constant 0 : i32
    %c0_i32_0 = arith.constant 0 : i32
    %c0_i32_1 = arith.constant 0 : i32
    return %arg0, %c0_i32, %c0_i32_0 : i32, i32, i32
  }
}

module attributes {stable_mosaic.version = 11 : i64} {
  func.func @transformer_block_kernel(%arg0: i32, %arg1: memref<1x8x32xf32, #tpu.memory_space<vmem>>, %arg2: memref<1x1x8xf32, #tpu.memory_space<vmem>>, %arg3: memref<32x32xbf16, #tpu.memory_space<vmem>>, %arg4: memref<1x32xf32, #tpu.memory_space<vmem>>, %arg5: memref<32x32xbf16, #tpu.memory_space<vmem>>, %arg6: memref<1x32xf32, #tpu.memory_space<vmem>>, %arg7: memref<32x32xbf16, #tpu.memory_space<vmem>>, %arg8: memref<1x32xf32, #tpu.memory_space<vmem>>, %arg9: memref<32x32xbf16, #tpu.memory_space<vmem>>, %arg10: memref<1x32xf32, #tpu.memory_space<vmem>>, %arg11: memref<1x32xf32, #tpu.memory_space<vmem>>, %arg12: memref<1x32xf32, #tpu.memory_space<vmem>>, %arg13: memref<32x128xbf16, #tpu.memory_space<vmem>>, %arg14: memref<1x128xf32, #tpu.memory_space<vmem>>, %arg15: memref<128x32xbf16, #tpu.memory_space<vmem>>, %arg16: memref<1x32xf32, #tpu.memory_space<vmem>>, %arg17: memref<1x32xf32, #tpu.memory_space<vmem>>, %arg18: memref<1x32xf32, #tpu.memory_space<vmem>>, %arg19: memref<1x8x32xf32, #tpu.memory_space<vmem>>) attributes {dimension_semantics = [#tpu.dimension_semantics<parallel>], iteration_bounds = array<i64: 2>, scalar_prefetch = 0 : i64, scratch_operands = 0 : i64, tpu.core_type = #tpu.core_type<tc>, window_params = [{transform_indices = @transform_0, window_bounds = array<i64: 1, 8, 32>}, {transform_indices = @transform_1, window_bounds = array<i64: 1, 1, 8>}, {pipeline_mode = #tpu.pipeline_mode<synchronous>, transform_indices = @transform_2, window_bounds = array<i64: 32, 32>}, {pipeline_mode = #tpu.pipeline_mode<synchronous>, transform_indices = @transform_3, window_bounds = array<i64: 1, 32>}, {pipeline_mode = #tpu.pipeline_mode<synchronous>, transform_indices = @transform_4, window_bounds = array<i64: 32, 32>}, {pipeline_mode = #tpu.pipeline_mode<synchronous>, transform_indices = @transform_5, window_bounds = array<i64: 1, 32>}, {pipeline_mode = #tpu.pipeline_mode<synchronous>, transform_indices = @transform_6, window_bounds = array<i64: 32, 32>}, {pipeline_mode = #tpu.pipeline_mode<synchronous>, transform_indices = @transform_7, window_bounds = array<i64: 1, 32>}, {pipeline_mode = #tpu.pipeline_mode<synchronous>, transform_indices = @transform_8, window_bounds = array<i64: 32, 32>}, {pipeline_mode = #tpu.pipeline_mode<synchronous>, transform_indices = @transform_9, window_bounds = array<i64: 1, 32>}, {pipeline_mode = #tpu.pipeline_mode<synchronous>, transform_indices = @transform_10, window_bounds = array<i64: 1, 32>}, {pipeline_mode = #tpu.pipeline_mode<synchronous>, transform_indices = @transform_11, window_bounds = array<i64: 1, 32>}, {pipeline_mode = #tpu.pipeline_mode<synchronous>, transform_indices = @transform_12, window_bounds = array<i64: 32, 128>}, {pipeline_mode = #tpu.pipeline_mode<synchronous>, transform_indices = @transform_13, window_bounds = array<i64: 1, 128>}, {pipeline_mode = #tpu.pipeline_mode<synchronous>, transform_indices = @transform_14, window_bounds = array<i64: 128, 32>}, {pipeline_mode = #tpu.pipeline_mode<synchronous>, transform_indices = @transform_15, window_bounds = array<i64: 1, 32>}, {pipeline_mode = #tpu.pipeline_mode<synchronous>, transform_indices = @transform_16, window_bounds = array<i64: 1, 32>}, {pipeline_mode = #tpu.pipeline_mode<synchronous>, transform_indices = @transform_17, window_bounds = array<i64: 1, 32>}, {transform_indices = @transform_18, window_bounds = array<i64: 1, 8, 32>}]} {
    %c0 = arith.constant 0 : index
    %c0_0 = arith.constant 0 : index
    %c0_1 = arith.constant 0 : index
    %0 = vector.load %arg1[%c0, %c0_0, %c0_1] : memref<1x8x32xf32, #tpu.memory_space<vmem>>, vector<1x8x32xf32>
    %1 = vector.shape_cast %0 : vector<1x8x32xf32> to vector<8x32xf32>
    %c0_2 = arith.constant 0 : index
    %c0_3 = arith.constant 0 : index
    %c0_4 = arith.constant 0 : index
    %2 = vector.load %arg2[%c0_2, %c0_3, %c0_4] : memref<1x1x8xf32, #tpu.memory_space<vmem>>, vector<1x1x8xf32>
    %3 = vector.shape_cast %2 : vector<1x1x8xf32> to vector<1x8xf32>
    %c0_5 = arith.constant 0 : index
    %c0_6 = arith.constant 0 : index
    %4 = vector.load %arg4[%c0_5, %c0_6] : memref<1x32xf32, #tpu.memory_space<vmem>>, vector<1x32xf32>
    %c0_7 = arith.constant 0 : index
    %c0_8 = arith.constant 0 : index
    %5 = vector.load %arg6[%c0_7, %c0_8] : memref<1x32xf32, #tpu.memory_space<vmem>>, vector<1x32xf32>
    %c0_9 = arith.constant 0 : index
    %c0_10 = arith.constant 0 : index
    %6 = vector.load %arg8[%c0_9, %c0_10] : memref<1x32xf32, #tpu.memory_space<vmem>>, vector<1x32xf32>
    %c0_11 = arith.constant 0 : index
    %c0_12 = arith.constant 0 : index
    %7 = vector.load %arg10[%c0_11, %c0_12] : memref<1x32xf32, #tpu.memory_space<vmem>>, vector<1x32xf32>
    %c0_13 = arith.constant 0 : index
    %c0_14 = arith.constant 0 : index
    %8 = vector.load %arg11[%c0_13, %c0_14] : memref<1x32xf32, #tpu.memory_space<vmem>>, vector<1x32xf32>
    %c0_15 = arith.constant 0 : index
    %c0_16 = arith.constant 0 : index
    %9 = vector.load %arg12[%c0_15, %c0_16] : memref<1x32xf32, #tpu.memory_space<vmem>>, vector<1x32xf32>
    %cst = arith.constant dense<0.000000e+00> : vector<8xf32>
    %10 = vector.multi_reduction <add>, %1, %cst [1] : vector<8x32xf32> to vector<8xf32>
    %11 = vector.shape_cast %10 : vector<8xf32> to vector<8x1xf32>
    %cst_17 = arith.constant 3.200000e+01 : f32
    %12 = vector.broadcast %cst_17 : f32 to vector<8x1xf32>
    %13 = arith.divf %11, %12 : vector<8x1xf32>
    %14 = vector.broadcast %13 : vector<8x1xf32> to vector<8x32xf32>
    %15 = arith.subf %1, %14 : vector<8x32xf32>
    %16 = arith.mulf %15, %15 : vector<8x32xf32>
    %cst_18 = arith.constant dense<0.000000e+00> : vector<8xf32>
    %17 = vector.multi_reduction <add>, %16, %cst_18 [1] : vector<8x32xf32> to vector<8xf32>
    %18 = vector.shape_cast %17 : vector<8xf32> to vector<8x1xf32>
    %cst_19 = arith.constant 3.200000e+01 : f32
    %19 = vector.broadcast %cst_19 : f32 to vector<8x1xf32>
    %20 = arith.divf %18, %19 : vector<8x1xf32>
    %21 = vector.broadcast %13 : vector<8x1xf32> to vector<8x32xf32>
    %22 = arith.subf %1, %21 : vector<8x32xf32>
    %cst_20 = arith.constant 9.99999974E-6 : f32
    %23 = vector.broadcast %cst_20 : f32 to vector<8x1xf32>
    %24 = arith.addf %20, %23 : vector<8x1xf32>
    %25 = math.rsqrt %24 : vector<8x1xf32>
    %26 = vector.broadcast %25 : vector<8x1xf32> to vector<8x32xf32>
    %27 = arith.mulf %22, %26 : vector<8x32xf32>
    %28 = vector.broadcast %8 : vector<1x32xf32> to vector<8x32xf32>
    %29 = arith.mulf %27, %28 : vector<8x32xf32>
    %30 = vector.broadcast %9 : vector<1x32xf32> to vector<8x32xf32>
    %31 = arith.addf %29, %30 : vector<8x32xf32>
    %32 = arith.truncf %31 : vector<8x32xf32> to vector<8x32xbf16>
    %c0_21 = arith.constant 0 : index
    %c0_22 = arith.constant 0 : index
    %33 = vector.load %arg3[%c0_21, %c0_22] : memref<32x32xbf16, #tpu.memory_space<vmem>>, vector<32x32xbf16>
    %cst_23 = arith.constant dense<0.000000e+00> : vector<8x32xf32>
    %34 = tpu.matmul %32, %33, %cst_23 {dimension_numbers = #tpu.dot_dimension_numbers<[1], [0], [0], [1], [0, 0, 1, 1], [], []>} : vector<8x32xbf16>, vector<32x32xbf16>, vector<8x32xf32> -> vector<8x32xf32>
    %35 = vector.broadcast %4 : vector<1x32xf32> to vector<8x32xf32>
    %36 = arith.addf %34, %35 : vector<8x32xf32>
    %c0_24 = arith.constant 0 : index
    %c0_25 = arith.constant 0 : index
    %37 = vector.load %arg5[%c0_24, %c0_25] : memref<32x32xbf16, #tpu.memory_space<vmem>>, vector<32x32xbf16>
    %cst_26 = arith.constant dense<0.000000e+00> : vector<8x32xf32>
    %38 = tpu.matmul %32, %37, %cst_26 {dimension_numbers = #tpu.dot_dimension_numbers<[1], [0], [0], [1], [0, 0, 1, 1], [], []>} : vector<8x32xbf16>, vector<32x32xbf16>, vector<8x32xf32> -> vector<8x32xf32>
    %39 = vector.broadcast %5 : vector<1x32xf32> to vector<8x32xf32>
    %40 = arith.addf %38, %39 : vector<8x32xf32>
    %c0_27 = arith.constant 0 : index
    %c0_28 = arith.constant 0 : index
    %41 = vector.load %arg7[%c0_27, %c0_28] : memref<32x32xbf16, #tpu.memory_space<vmem>>, vector<32x32xbf16>
    %cst_29 = arith.constant dense<0.000000e+00> : vector<8x32xf32>
    %42 = tpu.matmul %32, %41, %cst_29 {dimension_numbers = #tpu.dot_dimension_numbers<[1], [0], [0], [1], [0, 0, 1, 1], [], []>} : vector<8x32xbf16>, vector<32x32xbf16>, vector<8x32xf32> -> vector<8x32xf32>
    %43 = vector.broadcast %6 : vector<1x32xf32> to vector<8x32xf32>
    %44 = arith.addf %42, %43 : vector<8x32xf32>
    %45 = vector.shape_cast %36 : vector<8x32xf32> to vector<8x4x8xf32>
    %46 = tpu.transpose %45, [1, 0, 2] : vector<8x4x8xf32> -> vector<4x8x8xf32>
    %47 = arith.truncf %46 : vector<4x8x8xf32> to vector<4x8x8xbf16>
    %48 = vector.shape_cast %40 : vector<8x32xf32> to vector<8x4x8xf32>
    %49 = tpu.transpose %48, [1, 0, 2] : vector<8x4x8xf32> -> vector<4x8x8xf32>
    %50 = arith.truncf %49 : vector<4x8x8xf32> to vector<4x8x8xbf16>
    %51 = vector.shape_cast %44 : vector<8x32xf32> to vector<8x4x8xf32>
    %52 = tpu.transpose %51, [1, 0, 2] : vector<8x4x8xf32> -> vector<4x8x8xf32>
    %53 = arith.truncf %52 : vector<4x8x8xf32> to vector<4x8x8xbf16>
    %cst_30 = arith.constant -1.000000e+30 : f32
    %54 = vector.broadcast %cst_30 : f32 to vector<4x8x1xf32>
    %cst_31 = arith.constant 0.000000e+00 : f32
    %55 = vector.broadcast %cst_31 : f32 to vector<4x8x1xf32>
    %cst_32 = arith.constant 0.000000e+00 : f32
    %56 = vector.broadcast %cst_32 : f32 to vector<4x8x8xf32>
    "tpu.trace_start"() <{level = 10 : i32, message = "hqd,hkd->hqk"}> : () -> ()
    %cst_33 = arith.constant dense<0.000000e+00> : vector<4x8x8xf32>
    %57 = tpu.matmul %47, %50, %cst_33 {dimension_numbers = #tpu.dot_dimension_numbers<[2], [2], [1], [1], [0, 0, 0, 1, 1, 1], [0], [0]>} : vector<4x8x8xbf16>, vector<4x8x8xbf16>, vector<4x8x8xf32> -> vector<4x8x8xf32>
    "tpu.trace_stop"() : () -> ()
    %cst_34 = arith.constant 0.353553385 : f32
    %58 = vector.broadcast %cst_34 : f32 to vector<4x8x8xf32>
    %59 = arith.mulf %57, %58 : vector<4x8x8xf32>
    %60 = vector.shape_cast %3 : vector<1x8xf32> to vector<1x1x8xf32>
    %61 = vector.broadcast %60 : vector<1x1x8xf32> to vector<4x8x8xf32>
    %62 = arith.addf %59, %61 : vector<4x8x8xf32>
    %cst_35 = arith.constant dense<0xFF800000> : vector<4x8xf32>
    %63 = vector.multi_reduction <maximumf>, %62, %cst_35 [2] : vector<4x8x8xf32> to vector<4x8xf32>
    %64 = vector.shape_cast %63 : vector<4x8xf32> to vector<4x8x1xf32>
    %65 = arith.maximumf %54, %64 : vector<4x8x1xf32>
    %66 = arith.subf %54, %65 : vector<4x8x1xf32>
    %67 = math.exp %66 : vector<4x8x1xf32>
    %68 = vector.broadcast %65 : vector<4x8x1xf32> to vector<4x8x8xf32>
    %69 = arith.subf %62, %68 : vector<4x8x8xf32>
    %70 = math.exp %69 : vector<4x8x8xf32>
    %71 = arith.mulf %67, %55 : vector<4x8x1xf32>
    %cst_36 = arith.constant dense<0.000000e+00> : vector<4x8xf32>
    %72 = vector.multi_reduction <add>, %70, %cst_36 [2] : vector<4x8x8xf32> to vector<4x8xf32>
    %73 = vector.shape_cast %72 : vector<4x8xf32> to vector<4x8x1xf32>
    %74 = arith.addf %71, %73 : vector<4x8x1xf32>
    %75 = vector.broadcast %67 : vector<4x8x1xf32> to vector<4x8x8xf32>
    %76 = arith.mulf %75, %56 : vector<4x8x8xf32>
    %77 = arith.truncf %70 : vector<4x8x8xf32> to vector<4x8x8xbf16>
    "tpu.trace_start"() <{level = 10 : i32, message = "hqk,hkd->hqd"}> : () -> ()
    %cst_37 = arith.constant dense<0.000000e+00> : vector<4x8x8xf32>
    %78 = tpu.matmul %77, %53, %cst_37 {dimension_numbers = #tpu.dot_dimension_numbers<[2], [1], [1], [2], [0, 0, 0, 1, 1, 2], [0], [0]>} : vector<4x8x8xbf16>, vector<4x8x8xbf16>, vector<4x8x8xf32> -> vector<4x8x8xf32>
    "tpu.trace_stop"() : () -> ()
    %79 = arith.addf %76, %78 : vector<4x8x8xf32>
    %80 = tpu.reciprocal %74 {approx = true} : vector<4x8x1xf32> -> vector<4x8x1xf32>
    %81 = vector.broadcast %80 : vector<4x8x1xf32> to vector<4x8x8xf32>
    %82 = arith.mulf %79, %81 : vector<4x8x8xf32>
    %83 = tpu.transpose %82, [1, 0, 2] : vector<4x8x8xf32> -> vector<8x4x8xf32>
    %84 = vector.shape_cast %83 : vector<8x4x8xf32> to vector<8x32xf32>
    %85 = arith.truncf %84 : vector<8x32xf32> to vector<8x32xbf16>
    %c0_38 = arith.constant 0 : index
    %c0_39 = arith.constant 0 : index
    %86 = vector.load %arg9[%c0_38, %c0_39] : memref<32x32xbf16, #tpu.memory_space<vmem>>, vector<32x32xbf16>
    %cst_40 = arith.constant dense<0.000000e+00> : vector<8x32xf32>
    %87 = tpu.matmul %85, %86, %cst_40 {dimension_numbers = #tpu.dot_dimension_numbers<[1], [0], [0], [1], [0, 0, 1, 1], [], []>} : vector<8x32xbf16>, vector<32x32xbf16>, vector<8x32xf32> -> vector<8x32xf32>
    %88 = vector.broadcast %7 : vector<1x32xf32> to vector<8x32xf32>
    %89 = arith.addf %87, %88 : vector<8x32xf32>
    %90 = arith.addf %1, %89 : vector<8x32xf32>
    %c0_41 = arith.constant 0 : index
    %c0_42 = arith.constant 0 : index
    %91 = vector.load %arg17[%c0_41, %c0_42] : memref<1x32xf32, #tpu.memory_space<vmem>>, vector<1x32xf32>
    %c0_43 = arith.constant 0 : index
    %c0_44 = arith.constant 0 : index
    %92 = vector.load %arg18[%c0_43, %c0_44] : memref<1x32xf32, #tpu.memory_space<vmem>>, vector<1x32xf32>
    %cst_45 = arith.constant dense<0.000000e+00> : vector<8xf32>
    %93 = vector.multi_reduction <add>, %90, %cst_45 [1] : vector<8x32xf32> to vector<8xf32>
    %94 = vector.shape_cast %93 : vector<8xf32> to vector<8x1xf32>
    %cst_46 = arith.constant 3.200000e+01 : f32
    %95 = vector.broadcast %cst_46 : f32 to vector<8x1xf32>
    %96 = arith.divf %94, %95 : vector<8x1xf32>
    %97 = vector.broadcast %96 : vector<8x1xf32> to vector<8x32xf32>
    %98 = arith.subf %90, %97 : vector<8x32xf32>
    %99 = arith.mulf %98, %98 : vector<8x32xf32>
    %cst_47 = arith.constant dense<0.000000e+00> : vector<8xf32>
    %100 = vector.multi_reduction <add>, %99, %cst_47 [1] : vector<8x32xf32> to vector<8xf32>
    %101 = vector.shape_cast %100 : vector<8xf32> to vector<8x1xf32>
    %cst_48 = arith.constant 3.200000e+01 : f32
    %102 = vector.broadcast %cst_48 : f32 to vector<8x1xf32>
    %103 = arith.divf %101, %102 : vector<8x1xf32>
    %104 = vector.broadcast %96 : vector<8x1xf32> to vector<8x32xf32>
    %105 = arith.subf %90, %104 : vector<8x32xf32>
    %cst_49 = arith.constant 9.99999974E-6 : f32
    %106 = vector.broadcast %cst_49 : f32 to vector<8x1xf32>
    %107 = arith.addf %103, %106 : vector<8x1xf32>
    %108 = math.rsqrt %107 : vector<8x1xf32>
    %109 = vector.broadcast %108 : vector<8x1xf32> to vector<8x32xf32>
    %110 = arith.mulf %105, %109 : vector<8x32xf32>
    %111 = vector.broadcast %91 : vector<1x32xf32> to vector<8x32xf32>
    %112 = arith.mulf %110, %111 : vector<8x32xf32>
    %113 = vector.broadcast %92 : vector<1x32xf32> to vector<8x32xf32>
    %114 = arith.addf %112, %113 : vector<8x32xf32>
    %115 = arith.truncf %114 : vector<8x32xf32> to vector<8x32xbf16>
    %cst_50 = arith.constant 0.000000e+00 : f32
    %116 = vector.broadcast %cst_50 : f32 to vector<8x32xf32>
    %c0_51 = arith.constant 0 : index
    %c0_52 = arith.constant 0 : index
    %117 = vector.load %arg13[%c0_51, %c0_52] : memref<32x128xbf16, #tpu.memory_space<vmem>>, vector<32x128xbf16>
    %cst_53 = arith.constant dense<0.000000e+00> : vector<8x128xf32>
    %118 = tpu.matmul %115, %117, %cst_53 {dimension_numbers = #tpu.dot_dimension_numbers<[1], [0], [0], [1], [0, 0, 1, 1], [], []>} : vector<8x32xbf16>, vector<32x128xbf16>, vector<8x128xf32> -> vector<8x128xf32>
    %c0_54 = arith.constant 0 : index
    %c0_55 = arith.constant 0 : index
    %119 = vector.load %arg14[%c0_54, %c0_55] : memref<1x128xf32, #tpu.memory_space<vmem>>, vector<1x128xf32>
    %120 = vector.broadcast %119 : vector<1x128xf32> to vector<8x128xf32>
    %121 = arith.addf %118, %120 : vector<8x128xf32>
    %cst_56 = arith.constant 5.000000e-01 : f32
    %122 = vector.broadcast %cst_56 : f32 to vector<8x128xf32>
    %123 = arith.mulf %122, %121 : vector<8x128xf32>
    %cst_57 = arith.constant 4.471500e-02 : f32
    %124 = vector.broadcast %cst_57 : f32 to vector<8x128xf32>
    %125 = arith.mulf %124, %121 : vector<8x128xf32>
    %126 = arith.mulf %125, %121 : vector<8x128xf32>
    %127 = arith.mulf %126, %121 : vector<8x128xf32>
    %128 = arith.addf %121, %127 : vector<8x128xf32>
    %cst_58 = arith.constant 0.797884583 : f32
    %129 = vector.broadcast %cst_58 : f32 to vector<8x128xf32>
    %130 = arith.mulf %129, %128 : vector<8x128xf32>
    %131 = math.tanh %130 : vector<8x128xf32>
    %cst_59 = arith.constant 1.000000e+00 : f32
    %132 = vector.broadcast %cst_59 : f32 to vector<8x128xf32>
    %133 = arith.addf %132, %131 : vector<8x128xf32>
    %134 = arith.mulf %123, %133 : vector<8x128xf32>
    %135 = arith.truncf %134 : vector<8x128xf32> to vector<8x128xbf16>
    %c0_60 = arith.constant 0 : index
    %c0_61 = arith.constant 0 : index
    %136 = vector.load %arg15[%c0_60, %c0_61] : memref<128x32xbf16, #tpu.memory_space<vmem>>, vector<128x32xbf16>
    %cst_62 = arith.constant dense<0.000000e+00> : vector<8x32xf32>
    %137 = tpu.matmul %135, %136, %cst_62 {dimension_numbers = #tpu.dot_dimension_numbers<[1], [0], [0], [1], [0, 0, 1, 1], [], []>} : vector<8x128xbf16>, vector<128x32xbf16>, vector<8x32xf32> -> vector<8x32xf32>
    %138 = arith.addf %116, %137 : vector<8x32xf32>
    %c0_63 = arith.constant 0 : index
    %c0_64 = arith.constant 0 : index
    %139 = vector.load %arg16[%c0_63, %c0_64] : memref<1x32xf32, #tpu.memory_space<vmem>>, vector<1x32xf32>
    %140 = vector.broadcast %139 : vector<1x32xf32> to vector<8x32xf32>
    %141 = arith.addf %138, %140 : vector<8x32xf32>
    %142 = arith.addf %90, %141 : vector<8x32xf32>
    %c0_65 = arith.constant 0 : index
    %c0_66 = arith.constant 0 : index
    %c0_67 = arith.constant 0 : index
    %143 = vector.load %arg19[%c0_65, %c0_66, %c0_67] : memref<1x8x32xf32, #tpu.memory_space<vmem>>, vector<1x8x32xf32>
    %144 = vector.shape_cast %143 : vector<1x8x32xf32> to vector<8x32xf32>
    %145 = vector.shape_cast %142 : vector<8x32xf32> to vector<1x8x32xf32>
    tpu.vector_store %arg19[%c0_65, %c0_66, %c0_67], %145 {strides = array<i32>} : memref<1x8x32xf32, #tpu.memory_space<vmem>>, vector<1x8x32xf32>,
    return
  }
  func.func @transform_0(%arg0: i32) -> (i32, i32, i32) {
    %c0_i32 = arith.constant 0 : i32
    %c0_i32_0 = arith.constant 0 : i32
    %c0_i32_1 = arith.constant 0 : i32
    return %arg0, %c0_i32, %c0_i32_0 : i32, i32, i32
  }
  func.func @transform_1(%arg0: i32) -> (i32, i32, i32) {
    %c0_i32 = arith.constant 0 : i32
    %c0_i32_0 = arith.constant 0 : i32
    %c0_i32_1 = arith.constant 0 : i32
    return %arg0, %c0_i32, %c0_i32_0 : i32, i32, i32
  }
  func.func @transform_2(%arg0: i32) -> (i32, i32) {
    %c0_i32 = arith.constant 0 : i32
    %c0_i32_0 = arith.constant 0 : i32
    %c0_i32_1 = arith.constant 0 : i32
    return %c0_i32, %c0_i32_0 : i32, i32
  }
  func.func @transform_3(%arg0: i32) -> (i32, i32) {
    %c0_i32 = arith.constant 0 : i32
    %c0_i32_0 = arith.constant 0 : i32
    %c0_i32_1 = arith.constant 0 : i32
    return %c0_i32, %c0_i32_0 : i32, i32
  }
  func.func @transform_4(%arg0: i32) -> (i32, i32) {
    %c0_i32 = arith.constant 0 : i32
    %c0_i32_0 = arith.constant 0 : i32
    %c0_i32_1 = arith.constant 0 : i32
    return %c0_i32, %c0_i32_0 : i32, i32
  }
  func.func @transform_5(%arg0: i32) -> (i32, i32) {
    %c0_i32 = arith.constant 0 : i32
    %c0_i32_0 = arith.constant 0 : i32
    %c0_i32_1 = arith.constant 0 : i32
    return %c0_i32, %c0_i32_0 : i32, i32
  }
  func.func @transform_6(%arg0: i32) -> (i32, i32) {
    %c0_i32 = arith.constant 0 : i32
    %c0_i32_0 = arith.constant 0 : i32
    %c0_i32_1 = arith.constant 0 : i32
    return %c0_i32, %c0_i32_0 : i32, i32
  }
  func.func @transform_7(%arg0: i32) -> (i32, i32) {
    %c0_i32 = arith.constant 0 : i32
    %c0_i32_0 = arith.constant 0 : i32
    %c0_i32_1 = arith.constant 0 : i32
    return %c0_i32, %c0_i32_0 : i32, i32
  }
  func.func @transform_8(%arg0: i32) -> (i32, i32) {
    %c0_i32 = arith.constant 0 : i32
    %c0_i32_0 = arith.constant 0 : i32
    %c0_i32_1 = arith.constant 0 : i32
    return %c0_i32, %c0_i32_0 : i32, i32
  }
  func.func @transform_9(%arg0: i32) -> (i32, i32) {
    %c0_i32 = arith.constant 0 : i32
    %c0_i32_0 = arith.constant 0 : i32
    %c0_i32_1 = arith.constant 0 : i32
    return %c0_i32, %c0_i32_0 : i32, i32
  }
  func.func @transform_10(%arg0: i32) -> (i32, i32) {
    %c0_i32 = arith.constant 0 : i32
    %c0_i32_0 = arith.constant 0 : i32
    %c0_i32_1 = arith.constant 0 : i32
    return %c0_i32, %c0_i32_0 : i32, i32
  }
  func.func @transform_11(%arg0: i32) -> (i32, i32) {
    %c0_i32 = arith.constant 0 : i32
    %c0_i32_0 = arith.constant 0 : i32
    %c0_i32_1 = arith.constant 0 : i32
    return %c0_i32, %c0_i32_0 : i32, i32
  }
  func.func @transform_12(%arg0: i32) -> (i32, i32) {
    %c0_i32 = arith.constant 0 : i32
    %c0_i32_0 = arith.constant 0 : i32
    %c0_i32_1 = arith.constant 0 : i32
    return %c0_i32, %c0_i32_0 : i32, i32
  }
  func.func @transform_13(%arg0: i32) -> (i32, i32) {
    %c0_i32 = arith.constant 0 : i32
    %c0_i32_0 = arith.constant 0 : i32
    %c0_i32_1 = arith.constant 0 : i32
    return %c0_i32, %c0_i32_0 : i32, i32
  }
  func.func @transform_14(%arg0: i32) -> (i32, i32) {
    %c0_i32 = arith.constant 0 : i32
    %c0_i32_0 = arith.constant 0 : i32
    %c0_i32_1 = arith.constant 0 : i32
    return %c0_i32, %c0_i32_0 : i32, i32
  }
  func.func @transform_15(%arg0: i32) -> (i32, i32) {
    %c0_i32 = arith.constant 0 : i32
    %c0_i32_0 = arith.constant 0 : i32
    %c0_i32_1 = arith.constant 0 : i32
    return %c0_i32, %c0_i32_0 : i32, i32
  }
  func.func @transform_16(%arg0: i32) -> (i32, i32) {
    %c0_i32 = arith.constant 0 : i32
    %c0_i32_0 = arith.constant 0 : i32
    %c0_i32_1 = arith.constant 0 : i32
    return %c0_i32, %c0_i32_0 : i32, i32
  }
  func.func @transform_17(%arg0: i32) -> (i32, i32) {
    %c0_i32 = arith.constant 0 : i32
    %c0_i32_0 = arith.constant 0 : i32
    %c0_i32_1 = arith.constant 0 : i32
    return %c0_i32, %c0_i32_0 : i32, i32
  }
  func.func @transform_18(%arg0: i32) -> (i32, i32, i32) {
    %c0_i32 = arith.constant 0 : i32
    %c0_i32_0 = arith.constant 0 : i32
    %c0_i32_1 = arith.constant 0 : i32
    return %arg0, %c0_i32, %c0_i32_0 : i32, i32, i32
  }
}

</mosaic_0001>

<bundles_post_ra>
// kernel: tpu_custom_call.1
= control target key start
LH: loop header
LB: loop body
LE: loop exit
PB: predicated region body
PF: predicated region fallthrough
CT: control target
= control target key end

     0   :  { %s3505_s0 = inlined_call_operand.vmem [shape: f32[2,8,32], index: 0, kind: input, shape index: {}]   ;;  %s3506_s1 = inlined_call_operand.vmem [shape: f32[2,1,8], index: 1, kind: input, shape index: {}]   ;;  %s3507_s2 = inlined_call_operand.vmem [shape: bf16[32,32], index: 2, kind: input, shape index: {}]   ;;  %s3508_s3 = inlined_call_operand.hbm [shape: f32[1,32], index: 3, kind: input, shape index: {}]   ;;  %s3509_s4 = inlined_call_operand.vmem [shape: bf16[32,32], index: 4, kind: input, shape index: {}]   ;;  %s3510_s5 = inlined_call_operand.hbm [shape: f32[1,32], index: 5, kind: input, shape index: {}]   ;;  %s3511_s6 = inlined_call_operand.vmem [shape: bf16[32,32], index: 6, kind: input, shape index: {}]   ;;  %s3512_s7 = inlined_call_operand.hbm [shape: f32[1,32], index: 7, kind: input, shape index: {}]   ;;  %s3513_s8 = inlined_call_operand.vmem [shape: bf16[32,32], index: 8, kind: input, shape index: {}]   ;;  %s3514_s9 = inlined_call_operand.hbm [shape: f32[1,32], index: 9, kind: input, shape index: {}]   ;;  %s3515_s10 = inlined_call_operand.vmem [shape: f32[1,32], index: 10, kind: input, shape index: {}]   ;;  %s3516_s11 = inlined_call_operand.vmem [shape: f32[1,32], index: 11, kind: input, shape index: {}]   ;;  %s3517_s12 = inlined_call_operand.vmem [shape: bf16[32,128], index: 12, kind: input, shape index: {}]   ;;  %s3518_s13 = inlined_call_operand.vmem [shape: f32[1,128], index: 13, kind: input, shape index: {}]   ;;  %s3519_s14 = inlined_call_operand.vmem [shape: bf16[128,32], index: 14, kind: input, shape index: {}]   ;;  %s3520_s15 = inlined_call_operand.vmem [shape: f32[1,32], index: 15, kind: input, shape index: {}]   ;;  %s3521_s16 = inlined_call_operand.vmem [shape: f32[1,32], index: 16, kind: input, shape index: {}]   ;;  %s3522_s17 = inlined_call_operand.vmem [shape: f32[1,32], index: 17, kind: input, shape index: {}]   ;;  %s3523_s18 = inlined_call_operand.hbm [shape: f32[2,8,32], index: 18, kind: output, shape index: {}]  }
   0x1   :  { %3537 = sst [smem:[#allocation22_spill]] %s3505_s0 }
   0x2   :  { %3538 = sst [smem:[#allocation23_spill]] %s3506_s1 }
   0x3   :  { %3539 = sst [smem:[#allocation24_spill]] %s3507_s2 }
   0x4   :  { %3540 = sst [smem:[#allocation25_spill]] %s3520_s15 }
   0x5   :  { %3541 = sst [smem:[#allocation26_spill]] %s3523_s18 }
   0x6   :  { %23 = vsyncpa [#allocation3], 0 }
   0x7   :  { %24 = vsyncpa [#allocation6], 0 }
   0x8   :  { %25 = vsyncpa [#allocation9], 0 }
   0x9   :  { %26 = vsyncpa [#allocation4], 0 }
   0xa   :  { %28 = vsyncpa [#allocation4 + $0x1], 0  ;;  %s2988_s27 = smov 0   ;;  %s2990_s28 = smov 0  }
   0xb   :  { %s2992_s29 = smov 0   ;;  %s2994_s30 = smov 0  }
   0xc LB: > { %3542 = sst [smem:[#allocation15_spill]] %s2864_s27  ;;  %s3009_s0 = sadd.s32 4294967295, %s2876_s30   ;;  %s2876_s30 = sphi %s2994_s30, %s3572_s30   ;;  %s2872_s29 = sphi %s2992_s29, %s3574_s29   ;;  %s2868_s28 = sphi %s2990_s28, %s3576_s28   ;;  %s2864_s27 = sphi %s2988_s27, %s3575_s27  }
   0xd   : > { %3543 = sst [smem:[#allocation16_spill]] %s2872_s29  ;;  %s2336_s19 = sadd.s32 4294967294, %s2876_s30  }
   0xe   : > { %3544 = sst [smem:[#allocation17_spill]] %s2876_s30  ;;  %s3013_s1 = sadd.s32 1, %s2876_s30  }
   0xf   : > { %3545 = sst [smem:[#allocation18_spill]] %s3013_s1  ;;  %s429_s20 = sadd.s32 1, %s2872_s29 }
  0x10   : > { %s426_s21 = ssub.s32 %s2876_s30, %s3013_s1  ;;  %p439_p0 = scmp.ne.s32.totalorder %s2872_s29, %s2868_s28 }
  0x11   : > { %p427_p1 = scmp.eq.s32.totalorder %s426_s21, 0  ;;  %p440_p2 = scmp.eq.s32.totalorder %s3009_s0, 1 }
  0x12   : > { %p445_p3 = scmp.ne.s32.totalorder %s2868_s28, %s2864_s27  ;;  %p446_p4 = scmp.eq.s32.totalorder %s2336_s19, 1 }
  0x13   : > { %s3024_s22 = scalar_select %p427_p1, %s2872_s29, %s429_s20  }
  0x14   : > { %p3026_p5 = por %p440_p2, %p439_p0  ;;  %p3030_p6 = por %p446_p4, %p445_p3 }
  0x15   : > { %3546 = sst [smem:[#allocation19_spill]] %s3024_s22  ;;  %p2337_p7 = scmp.ge.s32.totalorder %s2876_s30, 1 }
  0x16   : > { %s3547_s2 = scalar_select %p3026_p5, 1, 0 }
  0x17   : > { %s3549_s23 = scalar_select %p3030_p6, 1, 0 }
  0x18   : > { %3548 = sst [smem:[#allocation20_spill]] %s3547_s2  ;;  %p453_p8 = scmp.lt.s32.totalorder %s2876_s30, 3 }
  0x19   : > { %3550 = sst [smem:[#allocation21_spill]] %s3549_s23  ;;  %p3532_p9 = scmp.eq.s32.totalorder %s3009_s0, 0 }
  0x1a   : > { %p3037_p10 = pnand %p2337_p7, %p453_p8  ;;  %s2878_s25 = smov [#allocation5]  }
  0x1b   : > { %s483_s26 = sshll.u32 %s2878_s25, 4  ;;  %s2879_s19 = smov [#allocation2]   ;;  %s484_s26 = int_to_ptr.vmem [resolvable:$true] %s483_s26 }
  0x1c   : > { %s3551_s24 = scalar_select %p3037_p10, 1, 0 }
  0x1d   : > { %p2570_p11 = pneg %p3037_p10  ;;  %s469_s20 = sshll.u32 %s2879_s19, 4  ;;  %s3049_s20 = int_to_ptr.vmem [resolvable:$true] %s469_s20 }
  0x1e   : > { %s2880_s22 = smov [#allocation7]   ;;  %s2690_s25 = scalar_lea.hbm %s3510_s5, 16 }
  0x1f   : > { %p3045_p12 = pnand %p3532_p9, %p2570_p11  ;;  %s497_s29 = sshll.u32 %s2880_s22, 4  ;;  %s3051_s29 = int_to_ptr.vmem [resolvable:$true] %s497_s29 }
  0x20   : > { %p2691_p13 = scmp.ne.s32.totalorder %s3510_s5, %s2690_s25  ;;  %p2697_p3 = scmp.lt.u32.totalorder %s2690_s25, %s3510_s5 }
  0x21   : > { %p3061_p0 = pneg %p3045_p12 }
  0x23   : > { %p2693_p1 = pnand %p3061_p0, %p2691_p13 }
  0x25   : > { %p2694_p2 = pneg %p2693_p1 }
  0x27   : > { %p2699_p4 = pnand %p2697_p3, %p2694_p2 }
  0x29   : > { %2702 = shalt.err (!%p2699_p4)
}
  0x2a   : > { %s2703_s1 = scalar_lea.vmem %s484_s26, 16  ;;  %s2710_s27 = scalar_lea.vmem %s484_s26, 32 }
  0x2b   : > { %p2704_p7 = scmp.ne.s32.totalorder %s484_s26, %s2703_s1  ;;  %p2711_p9 = scmp.lt.s32.totalorder %s484_s26, %s484_s26 }
  0x2c   : > { %p2712_p6 = scmp.lt.s32.totalorder %s2710_s27, %s2703_s1 }
  0x2d   : > { %p2706_p8 = pnand %p2704_p7, %p3061_p0 }
  0x2e   : > { %p2713_p5 = por %p2712_p6, %p2711_p9 }
  0x2f   : > { %p2707_p11 = pneg %p2706_p8 }
  0x31   : > { %p2714_p10 = pnand %p2713_p5, %p2707_p11 }
  0x33   : > { %2717 = shalt.err (!%p2714_p10)
}
  0x34   : > { %2576 = dma.hbm_to_vmem [thread:$0]  (!%p3045_p12), %s3510_s5, 16, %s484_s26, [#allocation6]  }
  0x35   : > { %s2718_s22 = scalar_lea.hbm %s3508_s3, 16 }
  0x36   : > { %p2719_p13 = scmp.ne.s32.totalorder %s3508_s3, %s2718_s22  ;;  %p2725_p5 = scmp.lt.u32.totalorder %s2718_s22, %s3508_s3 }
  0x38   : > { %p2721_p1 = pnand %p2719_p13, %p3061_p0 }
  0x3a   : > { %p2722_p6 = pneg %p2721_p1 }
  0x3c   : > { %p2727_p9 = pnand %p2725_p5, %p2722_p6 }
  0x3e   : > { %2730 = shalt.err (!%p2727_p9)
}
  0x3f   : > { %s2731_s26 = scalar_lea.vmem %s3049_s20, 16  ;;  %s2738_s15 = scalar_lea.vmem %s3049_s20, 32 }
  0x40   : > { %p2732_p10 = scmp.ne.s32.totalorder %s3049_s20, %s2731_s26  ;;  %p2739_p4 = scmp.lt.s32.totalorder %s3049_s20, %s3049_s20 }
  0x41   : > { %p2740_p7 = scmp.lt.s32.totalorder %s2738_s15, %s2731_s26 }
  0x42   : > { %p2734_p2 = pnand %p2732_p10, %p3061_p0 }
  0x43   : > { %p2741_p8 = por %p2740_p7, %p2739_p4 }
  0x44   : > { %p2735_p3 = pneg %p2734_p2 }
  0x46   : > { %p2742_p11 = pnand %p2741_p8, %p2735_p3 }
  0x48   : > { %2745 = shalt.err (!%p2742_p11)
}
  0x49   : > { %2573 = dma.hbm_to_vmem [thread:$0]  (!%p3045_p12), %s3508_s3, 16, %s3049_s20, [#allocation3]  }
  0x4a   : > { %s2746_s25 = scalar_lea.hbm %s3512_s7, 16 }
  0x4b   : > { %p2747_p13 = scmp.ne.s32.totalorder %s3512_s7, %s2746_s25  ;;  %p2753_p5 = scmp.lt.u32.totalorder %s2746_s25, %s3512_s7 }
  0x4d   : > { %p2749_p1 = pnand %p2747_p13, %p3061_p0 }
  0x4f   : > { %p2750_p6 = pneg %p2749_p1 }
  0x51   : > { %p2755_p9 = pnand %p2753_p5, %p2750_p6 }
  0x53   : > { %2758 = shalt.err (!%p2755_p9)
}
  0x54   : > { %s2759_s20 = scalar_lea.vmem %s3051_s29, 16  ;;  %s2766_s15 = scalar_lea.vmem %s3051_s29, 32 }
  0x55   : > { %p2760_p10 = scmp.ne.s32.totalorder %s3051_s29, %s2759_s20  ;;  %p2767_p4 = scmp.lt.s32.totalorder %s3051_s29, %s3051_s29 }
  0x56   : > { %p2768_p7 = scmp.lt.s32.totalorder %s2766_s15, %s2759_s20 }
  0x57   : > { %p2762_p2 = pnand %p2760_p10, %p3061_p0 }
  0x58   : > { %p2769_p8 = por %p2768_p7, %p2767_p4 }
  0x59   : > { %p2763_p3 = pneg %p2762_p2 }
  0x5b   : > { %p2770_p11 = pnand %p2769_p8, %p2763_p3 }
  0x5d   : > { %2773 = shalt.err (!%p2770_p11)
}
  0x5e   : > { %2579 = dma.hbm_to_vmem [thread:$0]  (!%p3045_p12), %s3512_s7, 16, %s3051_s29, [#allocation6]  }
  0x5f   : > { %s2881_s23 = smov [#allocation8]   ;;  %s2774_s1 = scalar_lea.hbm %s3514_s9, 16 }
  0x60   : > { %s511_s18 = sshll.u32 %s2881_s23, 4  ;;  %p2775_p13 = scmp.ne.s32.totalorder %s3514_s9, %s2774_s1  ;;  %s512_s18 = int_to_ptr.vmem [resolvable:$true] %s511_s18 }
  0x61   : > { %p2781_p5 = scmp.lt.u32.totalorder %s2774_s1, %s3514_s9 }
  0x62   : > { %p2777_p1 = pnand %p2775_p13, %p3061_p0 }
  0x64   : > { %p2778_p6 = pneg %p2777_p1 }
  0x66   : > { %p2783_p9 = pnand %p2781_p5, %p2778_p6 }
  0x68   : > { %2786 = shalt.err (!%p2783_p9)
}
  0x69   : > { %s2787_s29 = scalar_lea.vmem %s512_s18, 16  ;;  %s2794_s2 = scalar_lea.vmem %s512_s18, 32 }
  0x6a   : > { %p2788_p10 = scmp.ne.s32.totalorder %s512_s18, %s2787_s29  ;;  %p2795_p4 = scmp.lt.s32.totalorder %s512_s18, %s512_s18 }
  0x6b   : > { %p2796_p7 = scmp.lt.s32.totalorder %s2794_s2, %s2787_s29 }
  0x6c   : > { %p2790_p2 = pnand %p2788_p10, %p3061_p0 }
  0x6d   : > { %p2797_p8 = por %p2796_p7, %p2795_p4 }
  0x6e   : > { %p2791_p3 = pneg %p2790_p2 }
  0x70   : > { %p2798_p11 = pnand %p2797_p8, %p2791_p3 }
  0x72   : > { %2801 = shalt.err (!%p2798_p11)
}
  0x73   : > { %2582 = dma.hbm_to_vmem [thread:$0]  (!%p3045_p12), %s3514_s9, 16, %s512_s18, [#allocation9]  }
  0x74   : > { %p3554_p13 = scmp.ne.s32.totalorder %s3551_s24, 0 }
  0x75   : > { %p3555_p1 = scmp.eq.s32.totalorder (!%p3554_p13), %s3009_s0, 0 }
  0x76   : > { %561 = sbr.rel (%p3554_p13) target bundleno = 2639 (0xa4f), region = 92 }
  0x7d   : > { %2847 = dma.done.wait (%p3555_p1), [#allocation3], 16   ;;  %p3556_p0 = pmov %p3555_p1 }
  0x7f   : > { %2849 = vsyncadd (%p3556_p0), [#allocation3], 4294967280  ;;  %p3557_p6 = pmov %p3556_p0 }
  0x80   : > { %p3558_p5 = pmov %p3556_p0 }
  0x81   : > { %2851 = dma.done.wait (%p3557_p6), [#allocation6], 32  }
  0x82   : > { %2853 = vsyncadd (%p3558_p5), [#allocation6], 4294967264  ;;  %p3559_p9 = pmov %p3556_p0 }
  0x83   : > { %p3560_p12 = pmov %p3556_p0 }
  0x84   : > { %2855 = dma.done.wait (%p3559_p9), [#allocation9], 16  }
  0x85   : > { %2857 = vsyncadd (%p3560_p12), [#allocation9], 4294967280  ;;  %p629_p10 = scmp.lt.s32.totalorder %s3009_s0, 1  ;;  %s3561_s25 = sld [smem:[#allocation22_spill]]  ;;  %vm645_vm0 = vcmask 261120   ;;  %v2882_v8 = vmov 0.0   ;;  %v879_v42 = vlaneseq }
  0x86   : > { %s3562_s26 = sld [smem:[#allocation24_spill]]  ;;  %2444 = vmatprep.subr.bf16.mxu0 %v2882_v8  ;;  %vm2883_vm1 = vmmov 0   ;;  %2468 = vmatprep.subr.bf16.mxu1 %v2882_v8  ;;  %v2350_v14 = vld [vmem:[%s3515_s10] ss:$0 sm:$0xff]  ;;  %v2645_v21 = vld [vmem:[%s3509_s4 + $0x8] sm:$0xff]   ;;  %s2884_s15 = smov 104  }
  0x87   : > { %s3159_s24 = scalar_select %p629_p10, %s3009_s0, 1  ;;  %2448 = vmatprep.mubr.msk.bf16.mxu0 %vm2883_vm1, %v2882_v8  ;;  %2470 = vmatprep.mubr.msk.bf16.mxu1 %vm2883_vm1, %v2882_v8  ;;  %v2351_v16 = vld [vmem:[%s3516_s11] ss:$0 sm:$0xff]  ;;  %v2647_v23 = vld [vmem:[%s3511_s6 + $0x8] sm:$0xff]   ;;  %v2356_v28 = vld [vmem:[#allocation5] ss:$0 sm:$0xff] }
  0x88   : > { %v2644_v19 = vld [vmem:[%s3509_s4] sm:$0xff]   ;;  %s2885_s29 = smov 120   ;;  %s2886_s2 = smov 112   ;;  %v2887_v40 = vmov 1983009808   ;;  %v880_v46 = vshrl.u32 %v879_v42, 7 }
  0x89   : > { %s2349_s21 = sshll.u32 %s3159_s24, 3  ;;  %v2646_v22 = vld [vmem:[%s3511_s6] sm:$0xff]   ;;  %v877_v41 = vunpack.c.l.s4 %v2887_v40  ;;  %v2888_v43 = vmov 1934713408   ;;  %vm1314_vm2 = vcmask 64512   ;;  %vm1580_vm3 = vcmask 1043456  }
  0x8a   : > { %v2352_v34 = vld [vmem:[#allocation2] ss:$0 sm:$0xff]  ;;  %v909_v44 = vunpack.c.l.s4 %v2888_v43  ;;  %s2889_s1 = smov 16   ;;  %s2890_s27 = smov 8   ;;  %vm1923_vm4 = vcmask 130048   ;;  %vm1925_vm5 = vcmask 195584  }
  0x8b   : > { %s632_s22 = scalar_lea.vmem %s3561_s25, %s2349_s21  ;;  %v878_v45 = vunpack.c.0.s8 %v877_v41  ;;  %s3563_s21 = sld [smem:[#allocation23_spill]] }
  0x8c   : > { %v3165_v0 = vld [vmem:[%s632_s22] sm:$0xff]  ;;  %v2643_v9 = vld [vmem:[%s3562_s26 + $0x8] sm:$0xff]   ;;  %v910_v49 = vunpack.c.0.s8 %v909_v44  ;;  %s2891_s20 = smov 24   ;;  %s3565_s30 = sld [smem:[#allocation20_spill]] }
  0x8d   : > { %v646_v1 = vsel %vm645_vm0, %v3165_v0, 0.0  ;;  %v2642_v7 = vld [vmem:[%s3562_s26] sm:$0xff]   ;;  %v3224_v50 = vsub.s32 %v878_v45, %v880_v46  ;;  %s2401_s23 = sshll.u32 %s3009_s0, 7  ;;  %s3566_s25 = sld [smem:[#allocation26_spill]] }
  0x8e   : > { %647 = vadd.xlane.f32.xlu0 %v646_v1  ;;  %2445 = vmatpush3.bf16.msra.mxu0 %v2642_v7  ;;  %v3226_v56 = vsub.s32 %v910_v49, %v880_v46 }
  0x8f   : > { %2446 = vmatprep.subr.bf16.mxu0 %v2882_v8 }
  0x91   : > { %s635_s19 = scalar_lea.vmem %s3563_s21, %s3159_s24 }
  0x92   : > { %2447 = vmatpush3.bf16.msra.mxu0 %v2643_v9  ;;  %p3567_p3 = scmp.ne.s32.totalorder %s3565_s30, 0 }
  0x93   : > { %2452 = vmatprep.subr.bf16.mxu0 %v2882_v8  ;;  %s3462_s22 = scalar_lea.hbm %s3566_s25, %s2401_s23 }
 0x11b   : > { %v648_v2 = vpop.xlane.xlu0 %647 }
 0x11c   : > { %v650_v3 = vmul.f32 0.03125, %v648_v2 }
 0x11e   : > { %v651_v4 = vsub.f32 %v3165_v0, %v650_v3 }
 0x120   : > { %v652_v5 = vmul.f32 %v651_v4, %v651_v4 }
 0x122   : > { %v653_v6 = vsel %vm645_vm0, %v652_v5, 0.0 }
 0x123   : > { %654 = vadd.xlane.f32.xlu0 %v653_v6 }
 0x1b0   : > { %v655_v10 = vpop.xlane.xlu0 %654 }
 0x1b1   : > { %v656_v11 = vmul.f32 0.03125, %v655_v10 }
 0x1b3   : > { %v657_v12 = vadd.f32 1e-05, %v656_v11 }
 0x1b5   : > { %2660 = vrsqrt.f32 %v657_v12 }
 0x1bf   : > { %v2661_v13 = vpop.eup %2660 }
 0x1c0   : > { %v659_v15 = vmul.f32 %v2661_v13, %v651_v4 }
 0x1c2   : > { %v666_v17 = vmul.f32 %v2350_v14, %v659_v15 }
 0x1c4   : > { %v673_v18 = vadd.f32 %v2351_v16, %v666_v17 }
 0x1c6   : > { %v674_v20 = vpack.c.bf16 %v673_v18, %v673_v18 }
 0x1c8   : > { %2449 = vmatmul.mubr.msk.bf16.vlgmr.msra.gmra.mrb[0].mxu0 %vm645_vm0, %v674_v20 }
 0x1c9   : > { %2453 = vmatpush3.bf16.msra.mxu0 %v2644_v19  ;;  %2456 = vmatprep.mubr.msk.bf16.mxu0 %vm2883_vm1, %v2882_v8 }
 0x1ca   : > { %2454 = vmatprep.subr.bf16.mxu0 %v2882_v8 }
 0x1cd   : > { %2455 = vmatpush3.bf16.msra.mxu0 %v2645_v21 }
 0x1ce   : > { %2460 = vmatprep.subr.bf16.mxu0 %v2882_v8 }
 0x1d0   : > { %2457 = vmatmul.mubr.msk.bf16.vlgmr.msra.gmra.mrb[4].mxu0 %vm645_vm0, %v674_v20 }
 0x1d1   : > { %2461 = vmatpush3.bf16.msra.mxu0 %v2646_v22  ;;  %2464 = vmatprep.mubr.msk.bf16.mxu0 %vm2883_vm1, %v2882_v8 }
 0x1d2   : > { %2462 = vmatprep.subr.bf16.mxu0 %v2882_v8 }
 0x1d5   : > { %2463 = vmatpush3.bf16.msra.mxu0 %v2647_v23 }
 0x1d6   : > { %2474 = vmatprep.subr.bf16.mxu0 %v2882_v8 }
 0x1d8   : > { %2465 = vmatmul.mubr.msk.bf16.vlgmr.msra.gmra.mrb[8].mxu0 %vm645_vm0, %v674_v20 }
 0x1d9   : > { %2476 = vmatprep.mubr.msk.bf16.mxu0 %vm2883_vm1, %v2882_v8 }
 0x29b   : > { %v734_v24 = vpop.f32.mrb[0].mxu0 }
 0x29c   : > { %v2450_v25 = vpop.f32.mrb[1].mxu0  ;;  %v735_v36 = vadd.f32 %v2352_v34, %v734_v24 }
 0x29d   : > { %v737_v26 = vpop.f32.mrb[2].mxu0 }
 0x29e   : > { %v2451_v27 = vpop.f32.mrb[3].mxu0 }
 0x2a3   : > { %v796_v29 = vpop.f32.mrb[4].mxu0 }
 0x2a4   : > { %v797_v30 = vadd.f32 %v2356_v28, %v796_v29  ;;  %v2458_v31 = vpop.f32.mrb[5].mxu0 }
 0x2a5   : > { %v799_v32 = vpop.f32.mrb[6].mxu0 }
 0x2a6   : > { %1021 = vrot.lane.b32.xlu0 %v797_v30, %s2884_s15  ;;  %1015 = vrot.lane.b32.xlu1 %v797_v30, %s2885_s29  ;;  %v2459_v33 = vpop.f32.mrb[7].mxu0 }
 0x2aa   : > { %1018 = vrot.lane.b32.xlu1 %v797_v30, %s2886_s2 }
 0x2ab   : > { %v3219_v35 = vpop.f32.mrb[8].mxu0 }
 0x2ac   : > { %v2466_v37 = vpop.f32.mrb[9].mxu0 }
 0x2ad   : > { %v861_v38 = vpop.f32.mrb[10].mxu0 }
 0x2ae   : > { %865 = vrot.lane.b32.xlu1 %v735_v36, %s2885_s29  ;;  %v2467_v39 = vpop.f32.mrb[11].mxu0 }
 0x2b2   : > { %868 = vrot.lane.b32.xlu1 %v735_v36, %s2886_s2 }
 0x2b6   : > { %871 = vrot.lane.b32.xlu1 %v735_v36, %s2884_s15 }
 0x318   : > { %v1022_v47 = vpop.permute.xlu0 %1021  ;;  %v1016_v48 = vpop.permute.xlu1 %1015 }
 0x319   : > { %v1040_v51 = vcombine.low %v1016_v48, %v1022_v47  ;;  %v1041_v52 = vcombine.high %v1016_v48, %v1022_v47 }
 0x31b   : > { %v1048_v57 = vrot.slane %v1040_v51, %v3224_v50  ;;  %v1055_v58 = vrot.slane %v1041_v52, %v3224_v50 }
 0x31c   : > { %v1019_v53 = vpop.permute.xlu1 %1018 }
 0x31d   : > { %v1024_v54 = vcombine.low %v797_v30, %v1019_v53  ;;  %v1025_v55 = vcombine.high %v797_v30, %v1019_v53 }
 0x31f   : > { %v1032_v59 = vrot.slane %v1024_v54, %v3224_v50  ;;  %v1039_v60 = vrot.slane %v1025_v55, %v3224_v50 }
 0x320   : > { %v866_v61 = vpop.permute.xlu1 %865 }
 0x321   : > { %v1056_v62 = vcombine.low %v1032_v59, %v1048_v57  ;;  %v1057_v63 = vcombine.high %v1032_v59, %v1048_v57  ;;  %v1072_v1 = vcombine.low %v1039_v60, %v1055_v58  ;;  %v1073_v2 = vcombine.high %v1039_v60, %v1055_v58 }
 0x323   : > { %v1064_v3 = vrot.slane %v1056_v62, %v3226_v56  ;;  %v1071_v4 = vrot.slane %v1057_v63, %v3226_v56  ;;  %v1080_v5 = vrot.slane %v1072_v1, %v3226_v56  ;;  %v1087_v6 = vrot.slane %v1073_v2, %v3226_v56 }
 0x324   : > { %v869_v7 = vpop.permute.xlu1 %868 }
 0x325   : > { %v1092_v9 = vcombine.low %v1064_v3, %v1071_v4  ;;  %v2366_v10 = vcombine.high %v1064_v3, %v1071_v4  ;;  %v1108_v11 = vcombine.low %v1080_v5, %v1087_v6  ;;  %v2367_v12 = vcombine.high %v1080_v5, %v1087_v6 }
 0x326   : > { %v874_v13 = vcombine.low %v735_v36, %v869_v7  ;;  %v875_v14 = vcombine.high %v735_v36, %v869_v7 }
 0x327   : > { %v1099_v15 = vrot.slane %v1092_v9, %v3224_v50  ;;  %v1107_v16 = vrot.slane %v2366_v10, %v3224_v50  ;;  %v1115_v17 = vrot.slane %v1108_v11, %v3224_v50  ;;  %v1123_v18 = vrot.slane %v2367_v12, %v3224_v50 }
 0x328   : > { %v872_v19 = vpop.permute.xlu1 %871  ;;  %v882_v24 = vrot.slane %v874_v13, %v3224_v50  ;;  %v889_v25 = vrot.slane %v875_v14, %v3224_v50 }
 0x329   : > { %v890_v20 = vcombine.low %v866_v61, %v872_v19  ;;  %v891_v21 = vcombine.high %v866_v61, %v872_v19  ;;  %v1124_v22 = vcombine.low %v1099_v15, %v1107_v16  ;;  %v1140_v23 = vcombine.low %v1115_v17, %v1123_v18 }
 0x32a   : > { %v1125_v30 = vcombine.high %v1099_v15, %v1107_v16  ;;  %v1141_v31 = vcombine.high %v1115_v17, %v1123_v18 }
 0x32b   : > { %v898_v26 = vrot.slane %v890_v20, %v3224_v50  ;;  %v905_v27 = vrot.slane %v891_v21, %v3224_v50  ;;  %v1132_v28 = vrot.slane %v1124_v22, %v3226_v56  ;;  %v1148_v29 = vrot.slane %v1140_v23, %v3226_v56  ;;  %v2374_v21 = vld [vmem:[%s635_s19] ss:$0 sm:$0xff] }
 0x32c   : > { %v1139_v45 = vrot.slane %v1125_v30, %v3226_v56  ;;  %v1155_v46 = vrot.slane %v1141_v31, %v3226_v56 }
 0x32d   : > { %v906_v32 = vcombine.low %v882_v24, %v898_v26  ;;  %v907_v33 = vcombine.high %v882_v24, %v898_v26  ;;  %v922_v34 = vcombine.low %v889_v25, %v905_v27  ;;  %v923_v36 = vcombine.high %v889_v25, %v905_v27 }
 0x32e   : > { %v1156_v37 = vcombine.low %v1132_v28, %v1148_v29  ;;  %v1157_v38 = vcombine.high %v1132_v28, %v1148_v29  ;;  %v1158_v61 = vcombine.low %v1139_v45, %v1155_v46  ;;  %v1159_v62 = vcombine.high %v1139_v45, %v1155_v46 }
 0x32f   : > { %v914_v39 = vrot.slane %v906_v32, %v3226_v56  ;;  %v921_v40 = vrot.slane %v907_v33, %v3226_v56  ;;  %v930_v41 = vrot.slane %v922_v34, %v3226_v56  ;;  %v937_v42 = vrot.slane %v923_v36, %v3226_v56 }
 0x330   : > { %v1160_v43 = vpack.c.bf16 %v1156_v37, %v1156_v37  ;;  %v1161_v44 = vpack.c.bf16 %v1157_v38, %v1157_v38  ;;  %v1162_v6 = vpack.c.bf16 %v1158_v61, %v1158_v61  ;;  %v1163_v7 = vpack.c.bf16 %v1159_v62, %v1159_v62 }
 0x331   : > { %v942_v47 = vcombine.low %v914_v39, %v921_v40  ;;  %v2364_v48 = vcombine.high %v914_v39, %v921_v40  ;;  %v958_v49 = vcombine.low %v930_v41, %v937_v42  ;;  %v2365_v51 = vcombine.high %v930_v41, %v937_v42 }
 0x332   : > { %v1319_v52 = vsel %vm1314_vm2, %v1160_v43, 0  ;;  %v1365_v53 = vsel %vm1314_vm2, %v1161_v44, 0  ;;  %v1411_v13 = vsel %vm1314_vm2, %v1162_v6, 0  ;;  %v1457_v14 = vsel %vm1314_vm2, %v1163_v7, 0 }
 0x333   : > { %v949_v54 = vrot.slane %v942_v47, %v3224_v50  ;;  %v957_v55 = vrot.slane %v2364_v48, %v3224_v50  ;;  %v965_v57 = vrot.slane %v958_v49, %v3224_v50  ;;  %v973_v58 = vrot.slane %v2365_v51, %v3224_v50  ;;  %2469 = vmatpush3.bf16.xpose.msra.mxu1 %v1319_v52  ;;  %v2360_v47 = vld [vmem:[#allocation7] ss:$0 sm:$0xff] }
 0x334   : > { %2475 = vmatpush3.bf16.xpose.msra.mxu0 %v1365_v53  ;;  %2480 = vmatprep.subr.bf16.mxu1 %v2882_v8  ;;  %v859_v48 = vadd.f32 %v2360_v47, %v3219_v35 }
 0x335   : > { %2486 = vmatprep.subr.bf16.mxu0 %v2882_v8  ;;  %v974_v59 = vcombine.low %v949_v54, %v957_v55  ;;  %v990_v60 = vcombine.low %v965_v57, %v973_v58  ;;  %v975_v63 = vcombine.high %v949_v54, %v957_v55  ;;  %v991_v1 = vcombine.high %v965_v57, %v973_v58 }
 0x337   : > { %v982_v2 = vrot.slane %v974_v59, %v3226_v56  ;;  %v998_v3 = vrot.slane %v990_v60, %v3226_v56  ;;  %v989_v11 = vrot.slane %v975_v63, %v3226_v56  ;;  %v1005_v12 = vrot.slane %v991_v1, %v3226_v56 }
 0x339   : > { %v1006_v4 = vcombine.low %v982_v2, %v998_v3  ;;  %v1007_v5 = vcombine.high %v982_v2, %v998_v3  ;;  %v1008_v15 = vcombine.low %v989_v11, %v1005_v12  ;;  %v1009_v16 = vcombine.high %v989_v11, %v1005_v12 }
 0x33b   : > { %v1010_v9 = vpack.c.bf16 %v1006_v4, %v1006_v4  ;;  %v1011_v10 = vpack.c.bf16 %v1007_v5, %v1007_v5  ;;  %v1012_v17 = vpack.c.bf16 %v1008_v15, %v1008_v15  ;;  %v1013_v18 = vpack.c.bf16 %v1009_v16, %v1009_v16 }
 0x33d   : > { %2471 = vmatmul.mubr.msk.bf16.vlgmr.msra.gmra.mrb[0].mxu1 %vm1314_vm2, %v1010_v9  ;;  %2477 = vmatmul.mubr.msk.bf16.vlgmr.msra.gmra.mrb[12].mxu0 %vm1314_vm2, %v1011_v10 }
 0x33e   : > { %2481 = vmatpush3.bf16.xpose.msra.mxu1 %v1411_v13  ;;  %2487 = vmatpush3.bf16.xpose.msra.mxu0 %v1457_v14 }
 0x33f   : > { %2482 = vmatprep.mubr.msk.bf16.mxu1 %vm2883_vm1, %v2882_v8  ;;  %2488 = vmatprep.mubr.msk.bf16.mxu0 %vm2883_vm1, %v2882_v8 }
 0x340   : > { %2492 = vmatprep.subr.bf16.mxu1 %v2882_v8  ;;  %2498 = vmatprep.subr.bf16.mxu0 %v2882_v8 }
 0x345   : > { %2483 = vmatmul.mubr.msk.bf16.vlgmr.msra.gmra.mrb[4].mxu1 %vm1314_vm2, %v1012_v17  ;;  %2489 = vmatmul.mubr.msk.bf16.vlgmr.msra.gmra.mrb[16].mxu0 %vm1314_vm2, %v1013_v18 }
 0x346   : > { %2494 = vmatprep.mubr.msk.bf16.mxu1 %vm2883_vm1, %v2882_v8  ;;  %2500 = vmatprep.mubr.msk.bf16.mxu0 %vm2883_vm1, %v2882_v8 }
 0x410   : > { %v1355_v19 = vpop.f32.mrb[0].mxu1  ;;  %v1401_v20 = vpop.f32.mrb[12].mxu0 }
 0x411   : > { %v1499_v22 = vmul.f32 0.35355338, %v1355_v19  ;;  %v1500_v23 = vmul.f32 0.35355338, %v1401_v20  ;;  %v2472_v24 = vpop.f32.mrb[1].mxu1  ;;  %v2478_v25 = vpop.f32.mrb[13].mxu0 }
 0x412   : > { %v1358_v26 = vpop.f32.mrb[2].mxu1  ;;  %v1404_v27 = vpop.f32.mrb[14].mxu0 }
 0x413   : > { %v2473_v28 = vpop.f32.mrb[3].mxu1  ;;  %v2479_v29 = vpop.f32.mrb[15].mxu0  ;;  %v1509_v30 = vadd.f32 %v2374_v21, %v1499_v22  ;;  %v1510_v31 = vadd.f32 %v2374_v21, %v1500_v23 }
 0x415   : > { %v1513_v32 = vsel %vm1314_vm2, %v1509_v30, -inf  ;;  %v1516_v33 = vsel %vm1314_vm2, %v1510_v31, -inf }
 0x416   : > { %1514 = vmax.xlane.f32.xlu1 %v1513_v32  ;;  %1517 = vmax.xlane.f32.xlu0 %v1516_v33 }
 0x418   : > { %v1447_v34 = vpop.f32.mrb[4].mxu1  ;;  %v1493_v36 = vpop.f32.mrb[16].mxu0 }
 0x419   : > { %v1501_v37 = vmul.f32 0.35355338, %v1447_v34  ;;  %v1502_v38 = vmul.f32 0.35355338, %v1493_v36  ;;  %v2484_v39 = vpop.f32.mrb[5].mxu1  ;;  %v2490_v40 = vpop.f32.mrb[17].mxu0 }
 0x41a   : > { %v1450_v41 = vpop.f32.mrb[6].mxu1  ;;  %v1496_v42 = vpop.f32.mrb[18].mxu0 }
 0x41b   : > { %v2485_v43 = vpop.f32.mrb[7].mxu1  ;;  %v2491_v44 = vpop.f32.mrb[19].mxu0  ;;  %v1511_v45 = vadd.f32 %v2374_v21, %v1501_v37  ;;  %v1512_v46 = vadd.f32 %v2374_v21, %v1502_v38 }
 0x41d   : > { %v1519_v49 = vsel %vm1314_vm2, %v1511_v45, -inf  ;;  %v1522_v51 = vsel %vm1314_vm2, %v1512_v46, -inf }
 0x427   : > { %1168 = vrot.lane.b32.xlu1 %v859_v48, %s2886_s2  ;;  %s3564_s2 = sld [smem:[#allocation25_spill]] }
 0x42c   : > { %1165 = vrot.lane.b32.xlu0 %v859_v48, %s2885_s29 }
 0x44b   : > { %1520 = vmax.xlane.f32.xlu1 %v1519_v49 }
 0x44f   : > { %1523 = vmax.xlane.f32.xlu1 %v1522_v51 }
 0x460   : > { %1171 = vrot.lane.b32.xlu1 %v859_v48, %s2884_s15 }
 0x4a3   : > { %v3292_v52 = vpop.xlane.xlu1 %1514  ;;  %v3294_v53 = vpop.xlane.xlu0 %1517 }
 0x4a4   : > { %v1525_v54 = vmax.f32 %v3292_v52, -1e+30  ;;  %v1526_v35 = vmax.f32 %v3294_v53, -1e+30 }
 0x4a6   : > { %v1541_v55 = vsub.f32 %v1509_v30, %v1525_v54  ;;  %v1542_v57 = vsub.f32 %v1510_v31, %v1526_v35 }
 0x4a7   : > { %v1169_v1 = vpop.permute.xlu1 %1168  ;;  %v1166_v12 = vpop.permute.xlu0 %1165 }
 0x4a8   : > { %v1545_v58 = vmul.f32 1.442695, %v1541_v55  ;;  %v1547_v59 = vmul.f32 1.442695, %v1542_v57  ;;  %v1174_v9 = vcombine.low %v859_v48, %v1169_v1  ;;  %v1175_v10 = vcombine.high %v859_v48, %v1169_v1 }
 0x4aa   : > { %2662 = vpow2.f32 %v1545_v58  ;;  %v1182_v17 = vrot.slane %v1174_v9, %v3224_v50  ;;  %v1189_v18 = vrot.slane %v1175_v10, %v3224_v50 }
 0x4ab   : > { %2664 = vpow2.f32 %v1547_v59 }
 0x4b4   : > { %v3302_v60 = vpop.eup %2662 }
 0x4b5   : > { %v1557_v61 = vsel %vm1314_vm2, %v3302_v60, 0.0  ;;  %v3306_v62 = vpop.eup %2664  ;;  %v1573_v9 = vpack.c.bf16 %v3302_v60, %v3302_v60 }
 0x4b6   : > { %1558 = vadd.xlane.f32.xlu0 %v1557_v61  ;;  %v1560_v63 = vsel %vm1314_vm2, %v3306_v62, 0.0  ;;  %v1574_v10 = vpack.c.bf16 %v3306_v62, %v3306_v62 }
 0x4b7   : > { %1561 = vadd.xlane.f32.xlu1 %v1560_v63 }
 0x4d8   : > { %v3310_v2 = vpop.xlane.xlu1 %1520 }
 0x4d9   : > { %v1527_v3 = vmax.f32 %v3310_v2, -1e+30 }
 0x4db   : > { %v1543_v4 = vsub.f32 %v1511_v45, %v1527_v3 }
 0x4dc   : > { %v3315_v5 = vpop.xlane.xlu1 %1523 }
 0x4dd   : > { %v1549_v6 = vmul.f32 1.442695, %v1543_v4  ;;  %v1528_v7 = vmax.f32 %v3315_v5, -1e+30 }
 0x4df   : > { %v1544_v11 = vsub.f32 %v1512_v46, %v1528_v7  ;;  %2666 = vpow2.f32 %v1549_v6 }
 0x4e0   : > { %v1172_v13 = vpop.permute.xlu1 %1171 }
 0x4e1   : > { %v1551_v14 = vmul.f32 1.442695, %v1544_v11  ;;  %v1190_v15 = vcombine.low %v1166_v12, %v1172_v13  ;;  %v1191_v16 = vcombine.high %v1166_v12, %v1172_v13  ;;  %v1529_v13 = vsub.f32 -1e+30, %v1525_v54 }
 0x4e3   : > { %v1198_v19 = vrot.slane %v1190_v15, %v3224_v50  ;;  %v1205_v20 = vrot.slane %v1191_v16, %v3224_v50  ;;  %2668 = vpow2.f32 %v1551_v14  ;;  %v1530_v14 = vsub.f32 -1e+30, %v1526_v35 }
 0x4e4   : > { %v1533_v15 = vmul.f32 1.442695, %v1529_v13 }
 0x4e5   : > { %v1206_v21 = vcombine.low %v1182_v17, %v1198_v19  ;;  %v1207_v22 = vcombine.high %v1182_v17, %v1198_v19  ;;  %v1222_v23 = vcombine.low %v1189_v18, %v1205_v20  ;;  %v1223_v24 = vcombine.high %v1189_v18, %v1205_v20 }
 0x4e6   : > { %v1535_v16 = vmul.f32 1.442695, %v1530_v14  ;;  %2670 = vpow2.f32 %v1533_v15  ;;  %v1531_v17 = vsub.f32 -1e+30, %v1527_v3  ;;  %v1532_v18 = vsub.f32 -1e+30, %v1528_v7 }
 0x4e7   : > { %v1214_v25 = vrot.slane %v1206_v21, %v3226_v56  ;;  %v1221_v26 = vrot.slane %v1207_v22, %v3226_v56  ;;  %v1230_v27 = vrot.slane %v1222_v23, %v3226_v56  ;;  %v1237_v28 = vrot.slane %v1223_v24, %v3226_v56 }
 0x4e8   : > { %2672 = vpow2.f32 %v1535_v16  ;;  %v1537_v19 = vmul.f32 1.442695, %v1531_v17  ;;  %v1539_v20 = vmul.f32 1.442695, %v1532_v18  ;;  %v2648_v17 = vld [vmem:[%s3513_s8] sm:$0xff]  }
 0x4e9   : > { %v1242_v29 = vcombine.low %v1214_v25, %v1221_v26  ;;  %v2368_v30 = vcombine.high %v1214_v25, %v1221_v26  ;;  %v1258_v31 = vcombine.low %v1230_v27, %v1237_v28  ;;  %v2369_v32 = vcombine.high %v1230_v27, %v1237_v28  ;;  %v2667_v33 = vpop.eup %2666 }
 0x4ea   : > { %v1563_v39 = vsel %vm1314_vm2, %v2667_v33, 0.0  ;;  %v1575_v60 = vpack.c.bf16 %v2667_v33, %v2667_v33  ;;  %2674 = vpow2.f32 %v1537_v19 }
 0x4eb   : > { %v1249_v34 = vrot.slane %v1242_v29, %v3224_v50  ;;  %v1257_v36 = vrot.slane %v2368_v30, %v3224_v50  ;;  %v1265_v37 = vrot.slane %v1258_v31, %v3224_v50  ;;  %v1273_v38 = vrot.slane %v2369_v32, %v3224_v50  ;;  %1564 = vadd.xlane.f32.xlu0 %v1563_v39 }
 0x4ec   : > { %2676 = vpow2.f32 %v1539_v20 }
 0x4ed   : > { %v1274_v40 = vcombine.low %v1249_v34, %v1257_v36  ;;  %v1290_v41 = vcombine.low %v1265_v37, %v1273_v38  ;;  %v1275_v42 = vcombine.high %v1249_v34, %v1257_v36  ;;  %v1291_v43 = vcombine.high %v1265_v37, %v1273_v38  ;;  %v2669_v44 = vpop.eup %2668 }
 0x4ee   : > { %v1566_v45 = vsel %vm1314_vm2, %v2669_v44, 0.0  ;;  %v1576_v62 = vpack.c.bf16 %v2669_v44, %v2669_v44 }
 0x4ef   : > { %v1282_v46 = vrot.slane %v1274_v40, %v3226_v56  ;;  %v1298_v47 = vrot.slane %v1290_v41, %v3226_v56  ;;  %v1289_v48 = vrot.slane %v1275_v42, %v3226_v56  ;;  %v1305_v49 = vrot.slane %v1291_v43, %v3226_v56  ;;  %1567 = vadd.xlane.f32.xlu0 %v1566_v45 }
 0x4f0   : > { %v2671_v21 = vpop.eup %2670 }
 0x4f1   : > { %v1306_v51 = vcombine.low %v1282_v46, %v1298_v47  ;;  %v1307_v55 = vcombine.high %v1282_v46, %v1298_v47  ;;  %v1308_v57 = vcombine.low %v1289_v48, %v1305_v49  ;;  %v1309_v58 = vcombine.high %v1289_v48, %v1305_v49 }
 0x4f2   : > { %v2673_v52 = vpop.eup %2672  ;;  %v1553_v22 = vmul.f32 0.0, %v2671_v21 }
 0x4f3   : > { %v1310_v59 = vpack.c.bf16 %v1306_v51, %v1306_v51  ;;  %v1311_v61 = vpack.c.bf16 %v1307_v55, %v1307_v55  ;;  %v1312_v4 = vpack.c.bf16 %v1308_v57, %v1308_v57  ;;  %v1313_v6 = vpack.c.bf16 %v1309_v58, %v1309_v58 }
 0x4f4   : > { %v1554_v35 = vmul.f32 0.0, %v2673_v52  ;;  %v2675_v26 = vpop.eup %2674 }
 0x4f5   : > { %v1582_v63 = vsel %vm1580_vm3, %v1310_v59, 0  ;;  %v1628_v1 = vsel %vm1580_vm3, %v1311_v61, 0  ;;  %v1674_v11 = vsel %vm1580_vm3, %v1312_v4, 0  ;;  %v1720_v12 = vsel %vm1580_vm3, %v1313_v6, 0 }
 0x4f6   : > { %2493 = vmatpush3.bf16.msra.mxu1 %v1582_v63  ;;  %2499 = vmatpush3.bf16.msra.mxu0 %v1628_v1  ;;  %v2677_v2 = vpop.eup %2676  ;;  %v1555_v3 = vmul.f32 0.0, %v2675_v26  ;;  %v2649_v26 = vld [vmem:[%s3513_s8 + $0x8] sm:$0xff]  }
 0x4f7   : > { %2504 = vmatprep.subr.bf16.mxu1 %v2882_v8  ;;  %2510 = vmatprep.subr.bf16.mxu0 %v2882_v8  ;;  %v1556_v7 = vmul.f32 0.0, %v2677_v2 }
 0x4f9   : > { %2495 = vmatmul.mubr.msk.bf16.vlgmr.msra.gmra.mrb[8].mxu1 %vm1314_vm2, %v1573_v9  ;;  %2501 = vmatmul.mubr.msk.bf16.vlgmr.msra.gmra.mrb[20].mxu0 %vm1314_vm2, %v1574_v10 }
 0x4fa   : > { %2505 = vmatpush3.bf16.msra.mxu1 %v1674_v11  ;;  %2511 = vmatpush3.bf16.msra.mxu0 %v1720_v12 }
 0x4fb   : > { %2506 = vmatprep.mubr.msk.bf16.mxu1 %vm2883_vm1, %v2882_v8  ;;  %2512 = vmatprep.mubr.msk.bf16.mxu0 %vm2883_vm1, %v2882_v8 }
 0x4fc   : > { %2516 = vmatprep.subr.bf16.mxu1 %v2882_v8  ;;  %2524 = vmatprep.subr.bf16.mxu0 %v2882_v8 }
 0x501   : > { %2507 = vmatmul.mubr.msk.bf16.vlgmr.msra.gmra.mrb[12].mxu1 %vm1314_vm2, %v1575_v60  ;;  %2513 = vmatmul.mubr.msk.bf16.vlgmr.msra.gmra.mrb[24].mxu0 %vm1314_vm2, %v1576_v62 }
 0x502   : > { %2520 = vmatprep.mubr.msk.bf16.mxu1 %vm2883_vm1, %v2882_v8  ;;  %2528 = vmatprep.mubr.msk.bf16.mxu0 %vm2883_vm1, %v2882_v8 }
 0x503   : > { %2517 = vmatpush3.bf16.msra.mxu1 %v2648_v17  ;;  %v2657_v17 = vld [vmem:[%s3519_s14 + $0x28] sm:$0xff]  }
 0x504   : > { %2518 = vmatprep.subr.bf16.mxu1 %v2882_v8 }
 0x507   : > { %2519 = vmatpush3.bf16.msra.mxu1 %v2649_v26 }
 0x508   : > { %2532 = vmatprep.subr.bf16.mxu1 %v2882_v8 }
 0x543   : > { %v1559_v54 = vpop.xlane.xlu0 %1558 }
 0x544   : > { %v1562_v53 = vpop.xlane.xlu1 %1561  ;;  %v1569_v23 = vadd.f32 %v1559_v54, %v1553_v22 }
 0x545   : > { %v1570_v25 = vadd.f32 %v1562_v53, %v1554_v35 }
 0x546   : > { %2678 = vrcp.f32 %v1569_v23 }
 0x547   : > { %2680 = vrcp.f32 %v1570_v25 }
 0x550   : > { %v2679_v31 = vpop.eup %2678 }
 0x551   : > { %v2681_v37 = vpop.eup %2680 }
 0x578   : > { %v1565_v24 = vpop.xlane.xlu0 %1564 }
 0x579   : > { %v1571_v27 = vadd.f32 %v1565_v24, %v1555_v3 }
 0x57b   : > { %2682 = vrcp.f32 %v1571_v27 }
 0x57c   : > { %v1568_v5 = vpop.xlane.xlu0 %1567 }
 0x57d   : > { %v1572_v28 = vadd.f32 %v1568_v5, %v1556_v7 }
 0x57f   : > { %2684 = vrcp.f32 %v1572_v28 }
 0x585   : > { %v2683_v46 = vpop.eup %2682 }
 0x589   : > { %v2685_v55 = vpop.eup %2684 }
 0x5cc   : > { %v1618_v29 = vpop.f32.mrb[8].mxu1  ;;  %v1664_v30 = vpop.f32.mrb[20].mxu0 }
 0x5cd   : > { %v1762_v32 = vadd.f32 %v1618_v29, %v1553_v22  ;;  %v1763_v33 = vadd.f32 %v1664_v30, %v1554_v35  ;;  %v2496_v34 = vpop.f32.mrb[9].mxu1  ;;  %v2502_v36 = vpop.f32.mrb[21].mxu0 }
 0x5ce   : > { %v1621_v38 = vpop.f32.mrb[10].mxu1  ;;  %v1667_v39 = vpop.f32.mrb[22].mxu0 }
 0x5cf   : > { %v1770_v40 = vmul.f32 %v2679_v31, %v1762_v32  ;;  %v1771_v41 = vmul.f32 %v2681_v37, %v1763_v33  ;;  %v2497_v42 = vpop.f32.mrb[11].mxu1  ;;  %v2503_v43 = vpop.f32.mrb[23].mxu0 }
 0x5d4   : > { %v1710_v44 = vpop.f32.mrb[12].mxu1  ;;  %v1756_v45 = vpop.f32.mrb[24].mxu0 }
 0x5d5   : > { %v1764_v47 = vadd.f32 %v1710_v44, %v1555_v3  ;;  %v1765_v48 = vadd.f32 %v1756_v45, %v1556_v7  ;;  %v2508_v49 = vpop.f32.mrb[13].mxu1  ;;  %v2514_v51 = vpop.f32.mrb[25].mxu0 }
 0x5d6   : > { %v1713_v57 = vpop.f32.mrb[14].mxu1  ;;  %v1759_v58 = vpop.f32.mrb[26].mxu0 }
 0x5d7   : > { %v1772_v59 = vmul.f32 %v2683_v46, %v1764_v47  ;;  %v1773_v61 = vmul.f32 %v2685_v55, %v1765_v48  ;;  %v2509_v63 = vpop.f32.mrb[15].mxu1  ;;  %v2515_v1 = vpop.f32.mrb[27].mxu0 }
 0x5d9   : > { %v1774_v4 = vcombine.low %v1770_v40, %v1772_v59  ;;  %v1775_v6 = vcombine.high %v1770_v40, %v1772_v59  ;;  %v1790_v9 = vcombine.low %v1771_v41, %v1773_v61  ;;  %v1791_v10 = vcombine.high %v1771_v41, %v1773_v61  ;;  %v2381_v41 = vld [vmem:[#allocation8] ss:$0 sm:$0xff] }
 0x5da   : > { %v2650_v59 = vld [vmem:[%s3517_s12] sm:$0xff]  }
 0x5db   : > { %v1782_v11 = vrot.slane %v1774_v4, %v3224_v50  ;;  %v1789_v12 = vrot.slane %v1775_v6, %v3224_v50  ;;  %v1798_v60 = vrot.slane %v1790_v9, %v3224_v50  ;;  %v1805_v62 = vrot.slane %v1791_v10, %v3224_v50  ;;  %2525 = vmatpush3.bf16.msra.mxu0 %v2650_v59  ;;  %v2652_v61 = vld [vmem:[%s3519_s14] sm:$0xff]  }
 0x5dc   : > { %2526 = vmatprep.subr.bf16.mxu0 %v2882_v8  ;;  %v2385_v9 = vld [vmem:[%s3521_s16] ss:$0 sm:$0xff] }
 0x5dd   : > { %v1806_v13 = vcombine.low %v1782_v11, %v1798_v60  ;;  %v1807_v14 = vcombine.high %v1782_v11, %v1798_v60  ;;  %v1822_v15 = vcombine.low %v1789_v12, %v1805_v62  ;;  %v1823_v16 = vcombine.high %v1789_v12, %v1805_v62  ;;  %v2386_v11 = vld [vmem:[%s3522_s17] ss:$0 sm:$0xff] }
 0x5df   : > { %v1814_v18 = vrot.slane %v1806_v13, %v3226_v56  ;;  %v1821_v19 = vrot.slane %v1807_v14, %v3226_v56  ;;  %v1830_v20 = vrot.slane %v1822_v15, %v3226_v56  ;;  %v1837_v21 = vrot.slane %v1823_v16, %v3226_v56  ;;  %v2653_v13 = vld [vmem:[%s3519_s14 + $0x8] sm:$0xff]   ;;  %v2654_v14 = vld [vmem:[%s3519_s14 + $0x10] sm:$0xff]   ;;  %v2655_v15 = vld [vmem:[%s3519_s14 + $0x18] sm:$0xff]  }
 0x5e0   : > { %v2656_v16 = vld [vmem:[%s3519_s14 + $0x20] sm:$0xff]  }
 0x5e1   : > { %v1842_v52 = vcombine.low %v1814_v18, %v1821_v19  ;;  %v2379_v54 = vcombine.high %v1814_v18, %v1821_v19  ;;  %v1858_v22 = vcombine.low %v1830_v20, %v1837_v21  ;;  %v2380_v53 = vcombine.high %v1830_v20, %v1837_v21  ;;  %v2658_v18 = vld [vmem:[%s3519_s14 + $0x30] sm:$0xff]   ;;  %v2659_v19 = vld [vmem:[%s3519_s14 + $0x38] sm:$0xff]   ;;  %v2387_v20 = vld [vmem:[%s3518_s13] ss:$0 sm:$0xff] }
 0x5e3   : > { %v1849_v35 = vrot.slane %v1842_v52, %v3224_v50  ;;  %v1857_v23 = vrot.slane %v2379_v54, %v3224_v50  ;;  %v1865_v24 = vrot.slane %v1858_v22, %v3224_v50  ;;  %v1873_v25 = vrot.slane %v2380_v53, %v3224_v50 }
 0x5e5   : > { %v1875_v2 = vcombine.high %v1849_v35, %v1857_v23  ;;  %v1891_v3 = vcombine.high %v1865_v24, %v1873_v25  ;;  %v1874_v5 = vcombine.low %v1849_v35, %v1857_v23  ;;  %v1890_v7 = vcombine.low %v1865_v24, %v1873_v25 }
 0x5e7   : > { %v1889_v27 = vrot.slane %v1875_v2, %v3226_v56  ;;  %v1905_v28 = vrot.slane %v1891_v3, %v3226_v56  ;;  %v1882_v29 = vrot.slane %v1874_v5, %v3226_v56  ;;  %v1898_v30 = vrot.slane %v1890_v7, %v3226_v56 }
 0x5e9   : > { %v1908_v50 = vcombine.low %v1889_v27, %v1905_v28  ;;  %v1907_v31 = vcombine.high %v1882_v29, %v1898_v30  ;;  %v1909_v32 = vcombine.high %v1889_v27, %v1905_v28  ;;  %v1906_v33 = vcombine.low %v1882_v29, %v1898_v30  ;;  %v2391_v27 = vld [vmem:[%s3564_s2] ss:$0 sm:$0xff] }
 0x5eb   : > { %1915 = vrot.lane.b32.xlu0 %v1908_v50, %s2889_s1  ;;  %1911 = vrot.lane.b32.xlu1 %v1907_v31, %s2890_s27  ;;  %s626_s27 = sand.u32 1, %s2868_s28  }
 0x5ec   : > { %s2214_s0 = scalar_lea.sflag [#allocation4], %s626_s27 }
 0x5ef   : > { %1919 = vrot.lane.b32.xlu1 %v1909_v32, %s2891_s20  ;;  %s2348_s20 = sshll.u32 %s626_s27, 3 }
 0x5f0   : > { %s628_s21 = scalar_lea.vmem [#allocation10], %s2348_s20  ;;  %s2892_s20 = smov [#allocation10]  }
 0x5f1   : > { %s2227_s19 = sshll.u32 %s628_s21, 4  ;;  %s2806_s15 = sshll.u32 %s2892_s20, 4  ;;  %s3464_s19 = int_to_ptr.vmem [resolvable:$true] %s2227_s19  ;;  %s2807_s15 = int_to_ptr.vmem [resolvable:$false] %s2806_s15 }
 0x5f2   : > { %s2802_s1 = scalar_lea.vmem %s3464_s19, 128  ;;  %s2808_s29 = scalar_lea.vmem %s2807_s15, 256 }
 0x5f3   : > { %p2803_p2 = scmp.ne.s32.totalorder %s3464_s19, %s2802_s1  ;;  %p2809_p8 = scmp.lt.s32.totalorder %s3464_s19, %s2807_s15 }
 0x5f4   : > { %p2810_p11 = scmp.lt.s32.totalorder %s2808_s29, %s2802_s1 }
 0x5f5   : > { %p2804_p4 = pnand %p2803_p2, %p3567_p3 }
 0x5f6   : > { %p2811_p13 = por %p2810_p11, %p2809_p8 }
 0x5f7   : > { %p2805_p7 = pneg %p2804_p4 }
 0x5f9   : > { %p2812_p1 = pnand %p2811_p13, %p2805_p7 }
 0x65d   : > { %v1912_v34 = vpop.permute.xlu1 %1911  ;;  %v1916_v36 = vpop.permute.xlu0 %1915 }
 0x65e   : > { %v1922_v37 = vsel %vm1314_vm2, %v1906_v33, %v1912_v34 }
 0x65f   : > { %v1924_v39 = vsel %vm1923_vm4, %v1922_v37, %v1916_v36 }
 0x661   : > { %v1920_v38 = vpop.permute.xlu1 %1919 }
 0x662   : > { %v1926_v40 = vsel %vm1925_vm5, %v1924_v39, %v1920_v38 }
 0x663   : > { %v1927_v56 = vpack.c.bf16 %v1926_v40, %v1926_v40 }
 0x665   : > { %2521 = vmatmul.mubr.msk.bf16.vlgmr.msra.gmra.mrb[16].mxu1 %vm645_vm0, %v1927_v56 }
 0x666   : > { %2548 = vmatprep.mubr.msk.bf16.mxu1 %vm2883_vm1, %v2882_v8  ;;  %2533 = vmatpush3.bf16.msra.mxu1 %v2652_v61 }
 0x667   : > { %2534 = vmatprep.subr.bf16.mxu1 %v2882_v8 }
 0x66a   : > { %2535 = vmatpush3.bf16.msra.mxu1 %v2653_v13 }
 0x66b   : > { %2536 = vmatprep.subr.bf16.mxu1 %v2882_v8 }
 0x66e   : > { %2537 = vmatpush3.bf16.msra.mxu1 %v2654_v14 }
 0x66f   : > { %2538 = vmatprep.subr.bf16.mxu1 %v2882_v8 }
 0x672   : > { %2539 = vmatpush3.bf16.msra.mxu1 %v2655_v15 }
 0x673   : > { %2540 = vmatprep.subr.bf16.mxu1 %v2882_v8 }
 0x676   : > { %2541 = vmatpush3.bf16.msra.mxu1 %v2656_v16 }
 0x677   : > { %2542 = vmatprep.subr.bf16.mxu1 %v2882_v8 }
 0x67a   : > { %2543 = vmatpush3.bf16.msra.mxu1 %v2657_v17 }
 0x67b   : > { %2544 = vmatprep.subr.bf16.mxu1 %v2882_v8 }
 0x67e   : > { %2545 = vmatpush3.bf16.msra.mxu1 %v2658_v18 }
 0x67f   : > { %2546 = vmatprep.subr.bf16.mxu1 %v2882_v8 }
 0x682   : > { %2547 = vmatpush3.bf16.msra.mxu1 %v2659_v19 }
 0x738   : > { %v1987_v42 = vpop.f32.mrb[16].mxu1 }
 0x739   : > { %v1988_v43 = vadd.f32 %v2381_v41, %v1987_v42  ;;  %v2522_v44 = vpop.f32.mrb[17].mxu1 }
 0x73a   : > { %v1990_v45 = vpop.f32.mrb[18].mxu1 }
 0x73b   : > { %v3399_v46 = vadd.f32 %v1988_v43, %v3165_v0  ;;  %v2523_v47 = vpop.f32.mrb[19].mxu1  ;;  %v2651_v0 = vld [vmem:[%s3517_s12 + $0x8] sm:$0xff]  }
 0x73c   : > { %2527 = vmatpush3.bf16.msra.mxu0 %v2651_v0 }
 0x73d   : > { %v1996_v48 = vsel %vm645_vm0, %v3399_v46, 0.0 }
 0x73e   : > { %1997 = vadd.xlane.f32.xlu1 %v1996_v48 }
 0x7cb   : > { %v1998_v49 = vpop.xlane.xlu1 %1997 }
 0x7cc   : > { %v1999_v51 = vmul.f32 0.03125, %v1998_v49 }
 0x7ce   : > { %v2000_v55 = vsub.f32 %v3399_v46, %v1999_v51 }
 0x7d0   : > { %v2001_v57 = vmul.f32 %v2000_v55, %v2000_v55 }
 0x7d2   : > { %v2002_v58 = vsel %vm645_vm0, %v2001_v57, 0.0 }
 0x7d3   : > { %2003 = vadd.xlane.f32.xlu0 %v2002_v58 }
 0x860   : > { %v2004_v63 = vpop.xlane.xlu0 %2003 }
 0x861   : > { %v2005_v1 = vmul.f32 0.03125, %v2004_v63 }
 0x863   : > { %v2006_v4 = vadd.f32 1e-05, %v2005_v1 }
 0x865   : > { %2686 = vrsqrt.f32 %v2006_v4 }
 0x86f   : > { %v2687_v6 = vpop.eup %2686 }
 0x870   : > { %v2008_v10 = vmul.f32 %v2687_v6, %v2000_v55 }
 0x872   : > { %v2015_v12 = vmul.f32 %v2385_v9, %v2008_v10 }
 0x874   : > { %v2022_v60 = vadd.f32 %v2386_v11, %v2015_v12 }
 0x876   : > { %v2023_v62 = vpack.c.bf16 %v2022_v60, %v2022_v60 }
 0x878   : > { %2529 = vmatmul.mubr.msk.bf16.vlgmr.msra.gmra.mrb[28].mxu0 %vm645_vm0, %v2023_v62 }
 0x94b   : > { %v2084_v21 = vpop.f32.mrb[28].mxu0 }
 0x94c   : > { %v2085_v52 = vadd.f32 %v2387_v20, %v2084_v21  ;;  %v2530_v54 = vpop.f32.mrb[29].mxu0 }
 0x94d   : > { %v2087_v22 = vpop.f32.mrb[30].mxu0 }
 0x94e   : > { %v2091_v53 = vmul.f32 0.044715, %v2085_v52  ;;  %v2531_v35 = vpop.f32.mrb[31].mxu0  ;;  %v2090_v8 = vmul.f32 0.5, %v2085_v52 }
 0x950   : > { %v2092_v23 = vmul.f32 %v2091_v53, %v2085_v52 }
 0x952   : > { %v2093_v24 = vmul.f32 %v2092_v23, %v2085_v52 }
 0x954   : > { %v2094_v25 = vadd.f32 %v2093_v24, %v2085_v52 }
 0x956   : > { %v2095_v26 = vmul.f32 0.7978846, %v2094_v25 }
 0x958   : > { %2688 = vtanh.f32 %v2095_v26 }
 0x962   : > { %v2689_v2 = vpop.eup %2688 }
 0x963   : > { %v2097_v3 = vadd.f32 1.0, %v2689_v2 }
 0x965   : > { %v2098_v5 = vmul.f32 %v2097_v3, %v2090_v8 }
 0x967   : > { %v2099_v7 = vpack.c.bf16 %v2098_v5, %v2098_v5 }
 0x969   : > { %2549 = vmatmul.mubr.bf16.vlgmr.msra.gmra.mrb[20].mxu1 %v2099_v7 }
 0xa3c   : > { %v2205_v28 = vpop.f32.mrb[20].mxu1 }
 0xa3d   : > { %v2206_v29 = vadd.f32 %v2391_v27, %v2205_v28  ;;  %v2550_v30 = vpop.f32.mrb[21].mxu1 }
 0xa3e   : > { %v2208_v50 = vpop.f32.mrb[22].mxu1 }
 0xa3f   : > { %v2211_v31 = vadd.f32 %v2206_v29, %v3399_v46  ;;  %v2551_v32 = vpop.f32.mrb[23].mxu1 }
 0xa41   : > { %2212 = vst.msk [vmem:[%s628_s21] sm:$0xff] %vm645_vm0, %v2211_v31 }
 0xa42   : > { %2815 = shalt.err (!%p2812_p1)
}
 0xa43   : > { %s2816_s27 = scalar_lea.hbm %s3462_s22, 128  ;;  %s2820_s21 = scalar_lea.hbm %s3566_s25, 256 }
 0xa44   : > { %p2817_p0 = scmp.ne.s32.totalorder %s3462_s22, %s2816_s27  ;;  %p2821_p9 = scmp.lt.u32.totalorder %s3462_s22, %s3566_s25 }
 0xa45   : > { %p2822_p12 = scmp.lt.u32.totalorder %s2820_s21, %s2816_s27  ;;  %p2824_p2 = scmp.lt.u32.totalorder %s2816_s27, %s3462_s22 }
 0xa46   : > { %p2818_p6 = pnand %p2817_p0, %p3567_p3 }
 0xa47   : > { %p2823_p10 = por %p2822_p12, %p2821_p9 }
 0xa48   : > { %p2819_p5 = pneg %p2818_p6 }
 0xa49   : > { %p2825_p4 = por %p2824_p2, %p2823_p10 }
 0xa4b   : > { %p2826_p7 = pnand %p2825_p4, %p2819_p5 }
 0xa4d   : > { %2829 = shalt.err (!%p2826_p7)
}
 0xa4e   : > { %2568 = dma.vmem_to_hbm [thread:$0]  (%p3567_p3), %s3464_s19, 128, %s3462_s22, %s2214_s0  }
 0xa4f PF: > { %s3568_s1 = sld [smem:[#allocation17_spill]]  ;;  %s3569_s20 = sld [smem:[#allocation15_spill]] }
 0xa50   : > { %s3570_s15 = sld [smem:[#allocation21_spill]] }
 0xa55   : > { %p2595_p8 = scmp.ge.s32.totalorder %s3568_s1, 2  ;;  %s2239_s29 = sand.u32 1, %s3569_s20  }
 0xa56   : > { %p3571_p11 = scmp.ne.s32.totalorder %s3570_s15, 0  ;;  %s2240_s2 = scalar_lea.sflag [#allocation4], %s2239_s29 }
 0xa58   : > { %p2584_p13 = pnand %p2595_p8, %p3571_p11 }
 0xa5a   : > { %2859 = dma.done.wait (!%p2584_p13), %s2240_s2, 128  }
 0xa5b   : > { %2861 = vsyncadd (!%p2584_p13), %s2240_s2, 4294967168  ;;  %s3572_s30 = sld [smem:[#allocation18_spill]]  ;;  %s3573_s23 = sld [smem:[#allocation16_spill]] }
 0xa5c   : > { %s3574_s29 = sld [smem:[#allocation19_spill]]  ;;  %s3575_s27 = smov %s2868_s28 }
 0xa61   : > { %p31_p1 = scmp.ge.s32.totalorder %s3572_s30, 4   ;;  %s3576_s28 = smov %s3573_s23 }
 0xa63   :  { %33 = sbr.rel (!%p31_p1) target bundleno = 12 (0xc), region = 147 }
 0xa6a   :  { %2245 = vsyncpa [#allocation3], 1 }
 0xa6b   :  { %2247 = vsyncpa [#allocation3 + $0x1], 1 }
 0xa6c   :  { %2248 = vsyncpa [#allocation6], 1 }
 0xa6d   :  { %2249 = vsyncpa [#allocation9], 1 }
 0xa6e   :  { %2250 = vsyncpa [#allocation4], 1 }
 0xa6f   :  { %2252 = vsyncpa [#allocation4 + $0x1], 1 }

// kernel: tpu_custom_call.1
= control target key start
LH: loop header
LB: loop body
LE: loop exit
PB: predicated region body
PF: predicated region fallthrough
CT: control target
= control target key end

     0   :  { %s3505_s0 = inlined_call_operand.vmem [shape: f32[2,8,32], index: 0, kind: input, shape index: {}]   ;;  %s3506_s1 = inlined_call_operand.vmem [shape: f32[2,1,8], index: 1, kind: input, shape index: {}]   ;;  %s3507_s2 = inlined_call_operand.vmem [shape: bf16[32,32], index: 2, kind: input, shape index: {}]   ;;  %s3508_s3 = inlined_call_operand.hbm [shape: f32[1,32], index: 3, kind: input, shape index: {}]   ;;  %s3509_s4 = inlined_call_operand.vmem [shape: bf16[32,32], index: 4, kind: input, shape index: {}]   ;;  %s3510_s5 = inlined_call_operand.hbm [shape: f32[1,32], index: 5, kind: input, shape index: {}]   ;;  %s3511_s6 = inlined_call_operand.vmem [shape: bf16[32,32], index: 6, kind: input, shape index: {}]   ;;  %s3512_s7 = inlined_call_operand.hbm [shape: f32[1,32], index: 7, kind: input, shape index: {}]   ;;  %s3513_s8 = inlined_call_operand.vmem [shape: bf16[32,32], index: 8, kind: input, shape index: {}]   ;;  %s3514_s9 = inlined_call_operand.hbm [shape: f32[1,32], index: 9, kind: input, shape index: {}]   ;;  %s3515_s10 = inlined_call_operand.vmem [shape: f32[1,32], index: 10, kind: input, shape index: {}]   ;;  %s3516_s11 = inlined_call_operand.vmem [shape: f32[1,32], index: 11, kind: input, shape index: {}]   ;;  %s3517_s12 = inlined_call_operand.vmem [shape: bf16[32,128], index: 12, kind: input, shape index: {}]   ;;  %s3518_s13 = inlined_call_operand.vmem [shape: f32[1,128], index: 13, kind: input, shape index: {}]   ;;  %s3519_s14 = inlined_call_operand.vmem [shape: bf16[128,32], index: 14, kind: input, shape index: {}]   ;;  %s3520_s15 = inlined_call_operand.vmem [shape: f32[1,32], index: 15, kind: input, shape index: {}]   ;;  %s3521_s16 = inlined_call_operand.vmem [shape: f32[1,32], index: 16, kind: input, shape index: {}]   ;;  %s3522_s17 = inlined_call_operand.vmem [shape: f32[1,32], index: 17, kind: input, shape index: {}]   ;;  %s3523_s18 = inlined_call_operand.hbm [shape: f32[2,8,32], index: 18, kind: output, shape index: {}]  }
   0x1   :  { %3537 = sst [smem:[#allocation22_spill]] %s3505_s0 }
   0x2   :  { %3538 = sst [smem:[#allocation23_spill]] %s3506_s1 }
   0x3   :  { %3539 = sst [smem:[#allocation24_spill]] %s3507_s2 }
   0x4   :  { %3540 = sst [smem:[#allocation25_spill]] %s3520_s15 }
   0x5   :  { %3541 = sst [smem:[#allocation26_spill]] %s3523_s18 }
   0x6   :  { %23 = vsyncpa [#allocation3], 0 }
   0x7   :  { %24 = vsyncpa [#allocation6], 0 }
   0x8   :  { %25 = vsyncpa [#allocation9], 0 }
   0x9   :  { %26 = vsyncpa [#allocation4], 0 }
   0xa   :  { %28 = vsyncpa [#allocation4 + $0x1], 0  ;;  %s2988_s27 = smov 0   ;;  %s2990_s28 = smov 0  }
   0xb   :  { %s2992_s29 = smov 0   ;;  %s2994_s30 = smov 0  }
   0xc LB: > { %3542 = sst [smem:[#allocation15_spill]] %s2864_s27  ;;  %s3009_s0 = sadd.s32 4294967295, %s2876_s30   ;;  %s2876_s30 = sphi %s2994_s30, %s3572_s30   ;;  %s2872_s29 = sphi %s2992_s29, %s3574_s29   ;;  %s2868_s28 = sphi %s2990_s28, %s3576_s28   ;;  %s2864_s27 = sphi %s2988_s27, %s3575_s27  }
   0xd   : > { %3543 = sst [smem:[#allocation16_spill]] %s2872_s29  ;;  %s2336_s19 = sadd.s32 4294967294, %s2876_s30  }
   0xe   : > { %3544 = sst [smem:[#allocation17_spill]] %s2876_s30  ;;  %s3013_s1 = sadd.s32 1, %s2876_s30  }
   0xf   : > { %3545 = sst [smem:[#allocation18_spill]] %s3013_s1  ;;  %s429_s20 = sadd.s32 1, %s2872_s29 }
  0x10   : > { %s426_s21 = ssub.s32 %s2876_s30, %s3013_s1  ;;  %p439_p0 = scmp.ne.s32.totalorder %s2872_s29, %s2868_s28 }
  0x11   : > { %p427_p1 = scmp.eq.s32.totalorder %s426_s21, 0  ;;  %p440_p2 = scmp.eq.s32.totalorder %s3009_s0, 1 }
  0x12   : > { %p445_p3 = scmp.ne.s32.totalorder %s2868_s28, %s2864_s27  ;;  %p446_p4 = scmp.eq.s32.totalorder %s2336_s19, 1 }
  0x13   : > { %s3024_s22 = scalar_select %p427_p1, %s2872_s29, %s429_s20  }
  0x14   : > { %p3026_p5 = por %p440_p2, %p439_p0  ;;  %p3030_p6 = por %p446_p4, %p445_p3 }
  0x15   : > { %3546 = sst [smem:[#allocation19_spill]] %s3024_s22  ;;  %p2337_p7 = scmp.ge.s32.totalorder %s2876_s30, 1 }
  0x16   : > { %s3547_s2 = scalar_select %p3026_p5, 1, 0 }
  0x17   : > { %s3549_s23 = scalar_select %p3030_p6, 1, 0 }
  0x18   : > { %3548 = sst [smem:[#allocation20_spill]] %s3547_s2  ;;  %p453_p8 = scmp.lt.s32.totalorder %s2876_s30, 3 }
  0x19   : > { %3550 = sst [smem:[#allocation21_spill]] %s3549_s23  ;;  %p3532_p9 = scmp.eq.s32.totalorder %s3009_s0, 0 }
  0x1a   : > { %p3037_p10 = pnand %p2337_p7, %p453_p8  ;;  %s2878_s25 = smov [#allocation5]  }
  0x1b   : > { %s483_s26 = sshll.u32 %s2878_s25, 4  ;;  %s2879_s19 = smov [#allocation2]   ;;  %s484_s26 = int_to_ptr.vmem [resolvable:$true] %s483_s26 }
  0x1c   : > { %s3551_s24 = scalar_select %p3037_p10, 1, 0 }
  0x1d   : > { %p2570_p11 = pneg %p3037_p10  ;;  %s469_s20 = sshll.u32 %s2879_s19, 4  ;;  %s3049_s20 = int_to_ptr.vmem [resolvable:$true] %s469_s20 }
  0x1e   : > { %s2880_s22 = smov [#allocation7]   ;;  %s2690_s25 = scalar_lea.hbm %s3510_s5, 16 }
  0x1f   : > { %p3045_p12 = pnand %p3532_p9, %p2570_p11  ;;  %s497_s29 = sshll.u32 %s2880_s22, 4  ;;  %s3051_s29 = int_to_ptr.vmem [resolvable:$true] %s497_s29 }
  0x20   : > { %p2691_p13 = scmp.ne.s32.totalorder %s3510_s5, %s2690_s25  ;;  %p2697_p3 = scmp.lt.u32.totalorder %s2690_s25, %s3510_s5 }
  0x21   : > { %p3061_p0 = pneg %p3045_p12 }
  0x23   : > { %p2693_p1 = pnand %p3061_p0, %p2691_p13 }
  0x25   : > { %p2694_p2 = pneg %p2693_p1 }
  0x27   : > { %p2699_p4 = pnand %p2697_p3, %p2694_p2 }
  0x29   : > { %2702 = shalt.err (!%p2699_p4)
}
  0x2a   : > { %s2703_s1 = scalar_lea.vmem %s484_s26, 16  ;;  %s2710_s27 = scalar_lea.vmem %s484_s26, 32 }
  0x2b   : > { %p2704_p7 = scmp.ne.s32.totalorder %s484_s26, %s2703_s1  ;;  %p2711_p9 = scmp.lt.s32.totalorder %s484_s26, %s484_s26 }
  0x2c   : > { %p2712_p6 = scmp.lt.s32.totalorder %s2710_s27, %s2703_s1 }
  0x2d   : > { %p2706_p8 = pnand %p2704_p7, %p3061_p0 }
  0x2e   : > { %p2713_p5 = por %p2712_p6, %p2711_p9 }
  0x2f   : > { %p2707_p11 = pneg %p2706_p8 }
  0x31   : > { %p2714_p10 = pnand %p2713_p5, %p2707_p11 }
  0x33   : > { %2717 = shalt.err (!%p2714_p10)
}
  0x34   : > { %2576 = dma.hbm_to_vmem [thread:$0]  (!%p3045_p12), %s3510_s5, 16, %s484_s26, [#allocation6]  }
  0x35   : > { %s2718_s22 = scalar_lea.hbm %s3508_s3, 16 }
  0x36   : > { %p2719_p13 = scmp.ne.s32.totalorder %s3508_s3, %s2718_s22  ;;  %p2725_p5 = scmp.lt.u32.totalorder %s2718_s22, %s3508_s3 }
  0x38   : > { %p2721_p1 = pnand %p2719_p13, %p3061_p0 }
  0x3a   : > { %p2722_p6 = pneg %p2721_p1 }
  0x3c   : > { %p2727_p9 = pnand %p2725_p5, %p2722_p6 }
  0x3e   : > { %2730 = shalt.err (!%p2727_p9)
}
  0x3f   : > { %s2731_s26 = scalar_lea.vmem %s3049_s20, 16  ;;  %s2738_s15 = scalar_lea.vmem %s3049_s20, 32 }
  0x40   : > { %p2732_p10 = scmp.ne.s32.totalorder %s3049_s20, %s2731_s26  ;;  %p2739_p4 = scmp.lt.s32.totalorder %s3049_s20, %s3049_s20 }
  0x41   : > { %p2740_p7 = scmp.lt.s32.totalorder %s2738_s15, %s2731_s26 }
  0x42   : > { %p2734_p2 = pnand %p2732_p10, %p3061_p0 }
  0x43   : > { %p2741_p8 = por %p2740_p7, %p2739_p4 }
  0x44   : > { %p2735_p3 = pneg %p2734_p2 }
  0x46   : > { %p2742_p11 = pnand %p2741_p8, %p2735_p3 }
  0x48   : > { %2745 = shalt.err (!%p2742_p11)
}
  0x49   : > { %2573 = dma.hbm_to_vmem [thread:$0]  (!%p3045_p12), %s3508_s3, 16, %s3049_s20, [#allocation3]  }
  0x4a   : > { %s2746_s25 = scalar_lea.hbm %s3512_s7, 16 }
  0x4b   : > { %p2747_p13 = scmp.ne.s32.totalorder %s3512_s7, %s2746_s25  ;;  %p2753_p5 = scmp.lt.u32.totalorder %s2746_s25, %s3512_s7 }
  0x4d   : > { %p2749_p1 = pnand %p2747_p13, %p3061_p0 }
  0x4f   : > { %p2750_p6 = pneg %p2749_p1 }
  0x51   : > { %p2755_p9 = pnand %p2753_p5, %p2750_p6 }
  0x53   : > { %2758 = shalt.err (!%p2755_p9)
}
  0x54   : > { %s2759_s20 = scalar_lea.vmem %s3051_s29, 16  ;;  %s2766_s15 = scalar_lea.vmem %s3051_s29, 32 }
  0x55   : > { %p2760_p10 = scmp.ne.s32.totalorder %s3051_s29, %s2759_s20  ;;  %p2767_p4 = scmp.lt.s32.totalorder %s3051_s29, %s3051_s29 }
  0x56   : > { %p2768_p7 = scmp.lt.s32.totalorder %s2766_s15, %s2759_s20 }
  0x57   : > { %p2762_p2 = pnand %p2760_p10, %p3061_p0 }
  0x58   : > { %p2769_p8 = por %p2768_p7, %p2767_p4 }
  0x59   : > { %p2763_p3 = pneg %p2762_p2 }
  0x5b   : > { %p2770_p11 = pnand %p2769_p8, %p2763_p3 }
  0x5d   : > { %2773 = shalt.err (!%p2770_p11)
}
  0x5e   : > { %2579 = dma.hbm_to_vmem [thread:$0]  (!%p3045_p12), %s3512_s7, 16, %s3051_s29, [#allocation6]  }
  0x5f   : > { %s2881_s23 = smov [#allocation8]   ;;  %s2774_s1 = scalar_lea.hbm %s3514_s9, 16 }
  0x60   : > { %s511_s18 = sshll.u32 %s2881_s23, 4  ;;  %p2775_p13 = scmp.ne.s32.totalorder %s3514_s9, %s2774_s1  ;;  %s512_s18 = int_to_ptr.vmem [resolvable:$true] %s511_s18 }
  0x61   : > { %p2781_p5 = scmp.lt.u32.totalorder %s2774_s1, %s3514_s9 }
  0x62   : > { %p2777_p1 = pnand %p2775_p13, %p3061_p0 }
  0x64   : > { %p2778_p6 = pneg %p2777_p1 }
  0x66   : > { %p2783_p9 = pnand %p2781_p5, %p2778_p6 }
  0x68   : > { %2786 = shalt.err (!%p2783_p9)
}
  0x69   : > { %s2787_s29 = scalar_lea.vmem %s512_s18, 16  ;;  %s2794_s2 = scalar_lea.vmem %s512_s18, 32 }
  0x6a   : > { %p2788_p10 = scmp.ne.s32.totalorder %s512_s18, %s2787_s29  ;;  %p2795_p4 = scmp.lt.s32.totalorder %s512_s18, %s512_s18 }
  0x6b   : > { %p2796_p7 = scmp.lt.s32.totalorder %s2794_s2, %s2787_s29 }
  0x6c   : > { %p2790_p2 = pnand %p2788_p10, %p3061_p0 }
  0x6d   : > { %p2797_p8 = por %p2796_p7, %p2795_p4 }
  0x6e   : > { %p2791_p3 = pneg %p2790_p2 }
  0x70   : > { %p2798_p11 = pnand %p2797_p8, %p2791_p3 }
  0x72   : > { %2801 = shalt.err (!%p2798_p11)
}
  0x73   : > { %2582 = dma.hbm_to_vmem [thread:$0]  (!%p3045_p12), %s3514_s9, 16, %s512_s18, [#allocation9]  }
  0x74   : > { %p3554_p13 = scmp.ne.s32.totalorder %s3551_s24, 0 }
  0x75   : > { %p3555_p1 = scmp.eq.s32.totalorder (!%p3554_p13), %s3009_s0, 0 }
  0x76   : > { %561 = sbr.rel (%p3554_p13) target bundleno = 2639 (0xa4f), region = 92 }
  0x7d   : > { %2847 = dma.done.wait (%p3555_p1), [#allocation3], 16   ;;  %p3556_p0 = pmov %p3555_p1 }
  0x7f   : > { %2849 = vsyncadd (%p3556_p0), [#allocation3], 4294967280  ;;  %p3557_p6 = pmov %p3556_p0 }
  0x80   : > { %p3558_p5 = pmov %p3556_p0 }
  0x81   : > { %2851 = dma.done.wait (%p3557_p6), [#allocation6], 32  }
  0x82   : > { %2853 = vsyncadd (%p3558_p5), [#allocation6], 4294967264  ;;  %p3559_p9 = pmov %p3556_p0 }
  0x83   : > { %p3560_p12 = pmov %p3556_p0 }
  0x84   : > { %2855 = dma.done.wait (%p3559_p9), [#allocation9], 16  }
  0x85   : > { %2857 = vsyncadd (%p3560_p12), [#allocation9], 4294967280  ;;  %p629_p10 = scmp.lt.s32.totalorder %s3009_s0, 1  ;;  %s3561_s25 = sld [smem:[#allocation22_spill]]  ;;  %vm645_vm0 = vcmask 261120   ;;  %v2882_v8 = vmov 0.0   ;;  %v879_v42 = vlaneseq }
  0x86   : > { %s3562_s26 = sld [smem:[#allocation24_spill]]  ;;  %2444 = vmatprep.subr.bf16.mxu0 %v2882_v8  ;;  %vm2883_vm1 = vmmov 0   ;;  %2468 = vmatprep.subr.bf16.mxu1 %v2882_v8  ;;  %v2350_v14 = vld [vmem:[%s3515_s10] ss:$0 sm:$0xff]  ;;  %v2645_v21 = vld [vmem:[%s3509_s4 + $0x8] sm:$0xff]   ;;  %s2884_s15 = smov 104  }
  0x87   : > { %s3159_s24 = scalar_select %p629_p10, %s3009_s0, 1  ;;  %2448 = vmatprep.mubr.msk.bf16.mxu0 %vm2883_vm1, %v2882_v8  ;;  %2470 = vmatprep.mubr.msk.bf16.mxu1 %vm2883_vm1, %v2882_v8  ;;  %v2351_v16 = vld [vmem:[%s3516_s11] ss:$0 sm:$0xff]  ;;  %v2647_v23 = vld [vmem:[%s3511_s6 + $0x8] sm:$0xff]   ;;  %v2356_v28 = vld [vmem:[#allocation5] ss:$0 sm:$0xff] }
  0x88   : > { %v2644_v19 = vld [vmem:[%s3509_s4] sm:$0xff]   ;;  %s2885_s29 = smov 120   ;;  %s2886_s2 = smov 112   ;;  %v2887_v40 = vmov 1983009808   ;;  %v880_v46 = vshrl.u32 %v879_v42, 7 }
  0x89   : > { %s2349_s21 = sshll.u32 %s3159_s24, 3  ;;  %v2646_v22 = vld [vmem:[%s3511_s6] sm:$0xff]   ;;  %v877_v41 = vunpack.c.l.s4 %v2887_v40  ;;  %v2888_v43 = vmov 1934713408   ;;  %vm1314_vm2 = vcmask 64512   ;;  %vm1580_vm3 = vcmask 1043456  }
  0x8a   : > { %v2352_v34 = vld [vmem:[#allocation2] ss:$0 sm:$0xff]  ;;  %v909_v44 = vunpack.c.l.s4 %v2888_v43  ;;  %s2889_s1 = smov 16   ;;  %s2890_s27 = smov 8   ;;  %vm1923_vm4 = vcmask 130048   ;;  %vm1925_vm5 = vcmask 195584  }
  0x8b   : > { %s632_s22 = scalar_lea.vmem %s3561_s25, %s2349_s21  ;;  %v878_v45 = vunpack.c.0.s8 %v877_v41  ;;  %s3563_s21 = sld [smem:[#allocation23_spill]] }
  0x8c   : > { %v3165_v0 = vld [vmem:[%s632_s22] sm:$0xff]  ;;  %v2643_v9 = vld [vmem:[%s3562_s26 + $0x8] sm:$0xff]   ;;  %v910_v49 = vunpack.c.0.s8 %v909_v44  ;;  %s2891_s20 = smov 24   ;;  %s3565_s30 = sld [smem:[#allocation20_spill]] }
  0x8d   : > { %v646_v1 = vsel %vm645_vm0, %v3165_v0, 0.0  ;;  %v2642_v7 = vld [vmem:[%s3562_s26] sm:$0xff]   ;;  %v3224_v50 = vsub.s32 %v878_v45, %v880_v46  ;;  %s2401_s23 = sshll.u32 %s3009_s0, 7  ;;  %s3566_s25 = sld [smem:[#allocation26_spill]] }
  0x8e   : > { %647 = vadd.xlane.f32.xlu0 %v646_v1  ;;  %2445 = vmatpush3.bf16.msra.mxu0 %v2642_v7  ;;  %v3226_v56 = vsub.s32 %v910_v49, %v880_v46 }
  0x8f   : > { %2446 = vmatprep.subr.bf16.mxu0 %v2882_v8 }
  0x91   : > { %s635_s19 = scalar_lea.vmem %s3563_s21, %s3159_s24 }
  0x92   : > { %2447 = vmatpush3.bf16.msra.mxu0 %v2643_v9  ;;  %p3567_p3 = scmp.ne.s32.totalorder %s3565_s30, 0 }
  0x93   : > { %2452 = vmatprep.subr.bf16.mxu0 %v2882_v8  ;;  %s3462_s22 = scalar_lea.hbm %s3566_s25, %s2401_s23 }
 0x11b   : > { %v648_v2 = vpop.xlane.xlu0 %647 }
 0x11c   : > { %v650_v3 = vmul.f32 0.03125, %v648_v2 }
 0x11e   : > { %v651_v4 = vsub.f32 %v3165_v0, %v650_v3 }
 0x120   : > { %v652_v5 = vmul.f32 %v651_v4, %v651_v4 }
 0x122   : > { %v653_v6 = vsel %vm645_vm0, %v652_v5, 0.0 }
 0x123   : > { %654 = vadd.xlane.f32.xlu0 %v653_v6 }
 0x1b0   : > { %v655_v10 = vpop.xlane.xlu0 %654 }
 0x1b1   : > { %v656_v11 = vmul.f32 0.03125, %v655_v10 }
 0x1b3   : > { %v657_v12 = vadd.f32 1e-05, %v656_v11 }
 0x1b5   : > { %2660 = vrsqrt.f32 %v657_v12 }
 0x1bf   : > { %v2661_v13 = vpop.eup %2660 }
 0x1c0   : > { %v659_v15 = vmul.f32 %v2661_v13, %v651_v4 }
 0x1c2   : > { %v666_v17 = vmul.f32 %v2350_v14, %v659_v15 }
 0x1c4   : > { %v673_v18 = vadd.f32 %v2351_v16, %v666_v17 }
 0x1c6   : > { %v674_v20 = vpack.c.bf16 %v673_v18, %v673_v18 }
 0x1c8   : > { %2449 = vmatmul.mubr.msk.bf16.vlgmr.msra.gmra.mrb[0].mxu0 %vm645_vm0, %v674_v20 }
 0x1c9   : > { %2453 = vmatpush3.bf16.msra.mxu0 %v2644_v19  ;;  %2456 = vmatprep.mubr.msk.bf16.mxu0 %vm2883_vm1, %v2882_v8 }
 0x1ca   : > { %2454 = vmatprep.subr.bf16.mxu0 %v2882_v8 }
 0x1cd   : > { %2455 = vmatpush3.bf16.msra.mxu0 %v2645_v21 }
 0x1ce   : > { %2460 = vmatprep.subr.bf16.mxu0 %v2882_v8 }
 0x1d0   : > { %2457 = vmatmul.mubr.msk.bf16.vlgmr.msra.gmra.mrb[4].mxu0 %vm645_vm0, %v674_v20 }
 0x1d1   : > { %2461 = vmatpush3.bf16.msra.mxu0 %v2646_v22  ;;  %2464 = vmatprep.mubr.msk.bf16.mxu0 %vm2883_vm1, %v2882_v8 }
 0x1d2   : > { %2462 = vmatprep.subr.bf16.mxu0 %v2882_v8 }
 0x1d5   : > { %2463 = vmatpush3.bf16.msra.mxu0 %v2647_v23 }
 0x1d6   : > { %2474 = vmatprep.subr.bf16.mxu0 %v2882_v8 }
 0x1d8   : > { %2465 = vmatmul.mubr.msk.bf16.vlgmr.msra.gmra.mrb[8].mxu0 %vm645_vm0, %v674_v20 }
 0x1d9   : > { %2476 = vmatprep.mubr.msk.bf16.mxu0 %vm2883_vm1, %v2882_v8 }
 0x29b   : > { %v734_v24 = vpop.f32.mrb[0].mxu0 }
 0x29c   : > { %v2450_v25 = vpop.f32.mrb[1].mxu0  ;;  %v735_v36 = vadd.f32 %v2352_v34, %v734_v24 }
 0x29d   : > { %v737_v26 = vpop.f32.mrb[2].mxu0 }
 0x29e   : > { %v2451_v27 = vpop.f32.mrb[3].mxu0 }
 0x2a3   : > { %v796_v29 = vpop.f32.mrb[4].mxu0 }
 0x2a4   : > { %v797_v30 = vadd.f32 %v2356_v28, %v796_v29  ;;  %v2458_v31 = vpop.f32.mrb[5].mxu0 }
 0x2a5   : > { %v799_v32 = vpop.f32.mrb[6].mxu0 }
 0x2a6   : > { %1021 = vrot.lane.b32.xlu0 %v797_v30, %s2884_s15  ;;  %1015 = vrot.lane.b32.xlu1 %v797_v30, %s2885_s29  ;;  %v2459_v33 = vpop.f32.mrb[7].mxu0 }
 0x2aa   : > { %1018 = vrot.lane.b32.xlu1 %v797_v30, %s2886_s2 }
 0x2ab   : > { %v3219_v35 = vpop.f32.mrb[8].mxu0 }
 0x2ac   : > { %v2466_v37 = vpop.f32.mrb[9].mxu0 }
 0x2ad   : > { %v861_v38 = vpop.f32.mrb[10].mxu0 }
 0x2ae   : > { %865 = vrot.lane.b32.xlu1 %v735_v36, %s2885_s29  ;;  %v2467_v39 = vpop.f32.mrb[11].mxu0 }
 0x2b2   : > { %868 = vrot.lane.b32.xlu1 %v735_v36, %s2886_s2 }
 0x2b6   : > { %871 = vrot.lane.b32.xlu1 %v735_v36, %s2884_s15 }
 0x318   : > { %v1022_v47 = vpop.permute.xlu0 %1021  ;;  %v1016_v48 = vpop.permute.xlu1 %1015 }
 0x319   : > { %v1040_v51 = vcombine.low %v1016_v48, %v1022_v47  ;;  %v1041_v52 = vcombine.high %v1016_v48, %v1022_v47 }
 0x31b   : > { %v1048_v57 = vrot.slane %v1040_v51, %v3224_v50  ;;  %v1055_v58 = vrot.slane %v1041_v52, %v3224_v50 }
 0x31c   : > { %v1019_v53 = vpop.permute.xlu1 %1018 }
 0x31d   : > { %v1024_v54 = vcombine.low %v797_v30, %v1019_v53  ;;  %v1025_v55 = vcombine.high %v797_v30, %v1019_v53 }
 0x31f   : > { %v1032_v59 = vrot.slane %v1024_v54, %v3224_v50  ;;  %v1039_v60 = vrot.slane %v1025_v55, %v3224_v50 }
 0x320   : > { %v866_v61 = vpop.permute.xlu1 %865 }
 0x321   : > { %v1056_v62 = vcombine.low %v1032_v59, %v1048_v57  ;;  %v1057_v63 = vcombine.high %v1032_v59, %v1048_v57  ;;  %v1072_v1 = vcombine.low %v1039_v60, %v1055_v58  ;;  %v1073_v2 = vcombine.high %v1039_v60, %v1055_v58 }
 0x323   : > { %v1064_v3 = vrot.slane %v1056_v62, %v3226_v56  ;;  %v1071_v4 = vrot.slane %v1057_v63, %v3226_v56  ;;  %v1080_v5 = vrot.slane %v1072_v1, %v3226_v56  ;;  %v1087_v6 = vrot.slane %v1073_v2, %v3226_v56 }
 0x324   : > { %v869_v7 = vpop.permute.xlu1 %868 }
 0x325   : > { %v1092_v9 = vcombine.low %v1064_v3, %v1071_v4  ;;  %v2366_v10 = vcombine.high %v1064_v3, %v1071_v4  ;;  %v1108_v11 = vcombine.low %v1080_v5, %v1087_v6  ;;  %v2367_v12 = vcombine.high %v1080_v5, %v1087_v6 }
 0x326   : > { %v874_v13 = vcombine.low %v735_v36, %v869_v7  ;;  %v875_v14 = vcombine.high %v735_v36, %v869_v7 }
 0x327   : > { %v1099_v15 = vrot.slane %v1092_v9, %v3224_v50  ;;  %v1107_v16 = vrot.slane %v2366_v10, %v3224_v50  ;;  %v1115_v17 = vrot.slane %v1108_v11, %v3224_v50  ;;  %v1123_v18 = vrot.slane %v2367_v12, %v3224_v50 }
 0x328   : > { %v872_v19 = vpop.permute.xlu1 %871  ;;  %v882_v24 = vrot.slane %v874_v13, %v3224_v50  ;;  %v889_v25 = vrot.slane %v875_v14, %v3224_v50 }
 0x329   : > { %v890_v20 = vcombine.low %v866_v61, %v872_v19  ;;  %v891_v21 = vcombine.high %v866_v61, %v872_v19  ;;  %v1124_v22 = vcombine.low %v1099_v15, %v1107_v16  ;;  %v1140_v23 = vcombine.low %v1115_v17, %v1123_v18 }
 0x32a   : > { %v1125_v30 = vcombine.high %v1099_v15, %v1107_v16  ;;  %v1141_v31 = vcombine.high %v1115_v17, %v1123_v18 }
 0x32b   : > { %v898_v26 = vrot.slane %v890_v20, %v3224_v50  ;;  %v905_v27 = vrot.slane %v891_v21, %v3224_v50  ;;  %v1132_v28 = vrot.slane %v1124_v22, %v3226_v56  ;;  %v1148_v29 = vrot.slane %v1140_v23, %v3226_v56  ;;  %v2374_v21 = vld [vmem:[%s635_s19] ss:$0 sm:$0xff] }
 0x32c   : > { %v1139_v45 = vrot.slane %v1125_v30, %v3226_v56  ;;  %v1155_v46 = vrot.slane %v1141_v31, %v3226_v56 }
 0x32d   : > { %v906_v32 = vcombine.low %v882_v24, %v898_v26  ;;  %v907_v33 = vcombine.high %v882_v24, %v898_v26  ;;  %v922_v34 = vcombine.low %v889_v25, %v905_v27  ;;  %v923_v36 = vcombine.high %v889_v25, %v905_v27 }
 0x32e   : > { %v1156_v37 = vcombine.low %v1132_v28, %v1148_v29  ;;  %v1157_v38 = vcombine.high %v1132_v28, %v1148_v29  ;;  %v1158_v61 = vcombine.low %v1139_v45, %v1155_v46  ;;  %v1159_v62 = vcombine.high %v1139_v45, %v1155_v46 }
 0x32f   : > { %v914_v39 = vrot.slane %v906_v32, %v3226_v56  ;;  %v921_v40 = vrot.slane %v907_v33, %v3226_v56  ;;  %v930_v41 = vrot.slane %v922_v34, %v3226_v56  ;;  %v937_v42 = vrot.slane %v923_v36, %v3226_v56 }
 0x330   : > { %v1160_v43 = vpack.c.bf16 %v1156_v37, %v1156_v37  ;;  %v1161_v44 = vpack.c.bf16 %v1157_v38, %v1157_v38  ;;  %v1162_v6 = vpack.c.bf16 %v1158_v61, %v1158_v61  ;;  %v1163_v7 = vpack.c.bf16 %v1159_v62, %v1159_v62 }
 0x331   : > { %v942_v47 = vcombine.low %v914_v39, %v921_v40  ;;  %v2364_v48 = vcombine.high %v914_v39, %v921_v40  ;;  %v958_v49 = vcombine.low %v930_v41, %v937_v42  ;;  %v2365_v51 = vcombine.high %v930_v41, %v937_v42 }
 0x332   : > { %v1319_v52 = vsel %vm1314_vm2, %v1160_v43, 0  ;;  %v1365_v53 = vsel %vm1314_vm2, %v1161_v44, 0  ;;  %v1411_v13 = vsel %vm1314_vm2, %v1162_v6, 0  ;;  %v1457_v14 = vsel %vm1314_vm2, %v1163_v7, 0 }
 0x333   : > { %v949_v54 = vrot.slane %v942_v47, %v3224_v50  ;;  %v957_v55 = vrot.slane %v2364_v48, %v3224_v50  ;;  %v965_v57 = vrot.slane %v958_v49, %v3224_v50  ;;  %v973_v58 = vrot.slane %v2365_v51, %v3224_v50  ;;  %2469 = vmatpush3.bf16.xpose.msra.mxu1 %v1319_v52  ;;  %v2360_v47 = vld [vmem:[#allocation7] ss:$0 sm:$0xff] }
 0x334   : > { %2475 = vmatpush3.bf16.xpose.msra.mxu0 %v1365_v53  ;;  %2480 = vmatprep.subr.bf16.mxu1 %v2882_v8  ;;  %v859_v48 = vadd.f32 %v2360_v47, %v3219_v35 }
 0x335   : > { %2486 = vmatprep.subr.bf16.mxu0 %v2882_v8  ;;  %v974_v59 = vcombine.low %v949_v54, %v957_v55  ;;  %v990_v60 = vcombine.low %v965_v57, %v973_v58  ;;  %v975_v63 = vcombine.high %v949_v54, %v957_v55  ;;  %v991_v1 = vcombine.high %v965_v57, %v973_v58 }
 0x337   : > { %v982_v2 = vrot.slane %v974_v59, %v3226_v56  ;;  %v998_v3 = vrot.slane %v990_v60, %v3226_v56  ;;  %v989_v11 = vrot.slane %v975_v63, %v3226_v56  ;;  %v1005_v12 = vrot.slane %v991_v1, %v3226_v56 }
 0x339   : > { %v1006_v4 = vcombine.low %v982_v2, %v998_v3  ;;  %v1007_v5 = vcombine.high %v982_v2, %v998_v3  ;;  %v1008_v15 = vcombine.low %v989_v11, %v1005_v12  ;;  %v1009_v16 = vcombine.high %v989_v11, %v1005_v12 }
 0x33b   : > { %v1010_v9 = vpack.c.bf16 %v1006_v4, %v1006_v4  ;;  %v1011_v10 = vpack.c.bf16 %v1007_v5, %v1007_v5  ;;  %v1012_v17 = vpack.c.bf16 %v1008_v15, %v1008_v15  ;;  %v1013_v18 = vpack.c.bf16 %v1009_v16, %v1009_v16 }
 0x33d   : > { %2471 = vmatmul.mubr.msk.bf16.vlgmr.msra.gmra.mrb[0].mxu1 %vm1314_vm2, %v1010_v9  ;;  %2477 = vmatmul.mubr.msk.bf16.vlgmr.msra.gmra.mrb[12].mxu0 %vm1314_vm2, %v1011_v10 }
 0x33e   : > { %2481 = vmatpush3.bf16.xpose.msra.mxu1 %v1411_v13  ;;  %2487 = vmatpush3.bf16.xpose.msra.mxu0 %v1457_v14 }
 0x33f   : > { %2482 = vmatprep.mubr.msk.bf16.mxu1 %vm2883_vm1, %v2882_v8  ;;  %2488 = vmatprep.mubr.msk.bf16.mxu0 %vm2883_vm1, %v2882_v8 }
 0x340   : > { %2492 = vmatprep.subr.bf16.mxu1 %v2882_v8  ;;  %2498 = vmatprep.subr.bf16.mxu0 %v2882_v8 }
 0x345   : > { %2483 = vmatmul.mubr.msk.bf16.vlgmr.msra.gmra.mrb[4].mxu1 %vm1314_vm2, %v1012_v17  ;;  %2489 = vmatmul.mubr.msk.bf16.vlgmr.msra.gmra.mrb[16].mxu0 %vm1314_vm2, %v1013_v18 }
 0x346   : > { %2494 = vmatprep.mubr.msk.bf16.mxu1 %vm2883_vm1, %v2882_v8  ;;  %2500 = vmatprep.mubr.msk.bf16.mxu0 %vm2883_vm1, %v2882_v8 }
 0x410   : > { %v1355_v19 = vpop.f32.mrb[0].mxu1  ;;  %v1401_v20 = vpop.f32.mrb[12].mxu0 }
 0x411   : > { %v1499_v22 = vmul.f32 0.35355338, %v1355_v19  ;;  %v1500_v23 = vmul.f32 0.35355338, %v1401_v20  ;;  %v2472_v24 = vpop.f32.mrb[1].mxu1  ;;  %v2478_v25 = vpop.f32.mrb[13].mxu0 }
 0x412   : > { %v1358_v26 = vpop.f32.mrb[2].mxu1  ;;  %v1404_v27 = vpop.f32.mrb[14].mxu0 }
 0x413   : > { %v2473_v28 = vpop.f32.mrb[3].mxu1  ;;  %v2479_v29 = vpop.f32.mrb[15].mxu0  ;;  %v1509_v30 = vadd.f32 %v2374_v21, %v1499_v22  ;;  %v1510_v31 = vadd.f32 %v2374_v21, %v1500_v23 }
 0x415   : > { %v1513_v32 = vsel %vm1314_vm2, %v1509_v30, -inf  ;;  %v1516_v33 = vsel %vm1314_vm2, %v1510_v31, -inf }
 0x416   : > { %1514 = vmax.xlane.f32.xlu1 %v1513_v32  ;;  %1517 = vmax.xlane.f32.xlu0 %v1516_v33 }
 0x418   : > { %v1447_v34 = vpop.f32.mrb[4].mxu1  ;;  %v1493_v36 = vpop.f32.mrb[16].mxu0 }
 0x419   : > { %v1501_v37 = vmul.f32 0.35355338, %v1447_v34  ;;  %v1502_v38 = vmul.f32 0.35355338, %v1493_v36  ;;  %v2484_v39 = vpop.f32.mrb[5].mxu1  ;;  %v2490_v40 = vpop.f32.mrb[17].mxu0 }
 0x41a   : > { %v1450_v41 = vpop.f32.mrb[6].mxu1  ;;  %v1496_v42 = vpop.f32.mrb[18].mxu0 }
 0x41b   : > { %v2485_v43 = vpop.f32.mrb[7].mxu1  ;;  %v2491_v44 = vpop.f32.mrb[19].mxu0  ;;  %v1511_v45 = vadd.f32 %v2374_v21, %v1501_v37  ;;  %v1512_v46 = vadd.f32 %v2374_v21, %v1502_v38 }
 0x41d   : > { %v1519_v49 = vsel %vm1314_vm2, %v1511_v45, -inf  ;;  %v1522_v51 = vsel %vm1314_vm2, %v1512_v46, -inf }
 0x427   : > { %1168 = vrot.lane.b32.xlu1 %v859_v48, %s2886_s2  ;;  %s3564_s2 = sld [smem:[#allocation25_spill]] }
 0x42c   : > { %1165 = vrot.lane.b32.xlu0 %v859_v48, %s2885_s29 }
 0x44b   : > { %1520 = vmax.xlane.f32.xlu1 %v1519_v49 }
 0x44f   : > { %1523 = vmax.xlane.f32.xlu1 %v1522_v51 }
 0x460   : > { %1171 = vrot.lane.b32.xlu1 %v859_v48, %s2884_s15 }
 0x4a3   : > { %v3292_v52 = vpop.xlane.xlu1 %1514  ;;  %v3294_v53 = vpop.xlane.xlu0 %1517 }
 0x4a4   : > { %v1525_v54 = vmax.f32 %v3292_v52, -1e+30  ;;  %v1526_v35 = vmax.f32 %v3294_v53, -1e+30 }
 0x4a6   : > { %v1541_v55 = vsub.f32 %v1509_v30, %v1525_v54  ;;  %v1542_v57 = vsub.f32 %v1510_v31, %v1526_v35 }
 0x4a7   : > { %v1169_v1 = vpop.permute.xlu1 %1168  ;;  %v1166_v12 = vpop.permute.xlu0 %1165 }
 0x4a8   : > { %v1545_v58 = vmul.f32 1.442695, %v1541_v55  ;;  %v1547_v59 = vmul.f32 1.442695, %v1542_v57  ;;  %v1174_v9 = vcombine.low %v859_v48, %v1169_v1  ;;  %v1175_v10 = vcombine.high %v859_v48, %v1169_v1 }
 0x4aa   : > { %2662 = vpow2.f32 %v1545_v58  ;;  %v1182_v17 = vrot.slane %v1174_v9, %v3224_v50  ;;  %v1189_v18 = vrot.slane %v1175_v10, %v3224_v50 }
 0x4ab   : > { %2664 = vpow2.f32 %v1547_v59 }
 0x4b4   : > { %v3302_v60 = vpop.eup %2662 }
 0x4b5   : > { %v1557_v61 = vsel %vm1314_vm2, %v3302_v60, 0.0  ;;  %v3306_v62 = vpop.eup %2664  ;;  %v1573_v9 = vpack.c.bf16 %v3302_v60, %v3302_v60 }
 0x4b6   : > { %1558 = vadd.xlane.f32.xlu0 %v1557_v61  ;;  %v1560_v63 = vsel %vm1314_vm2, %v3306_v62, 0.0  ;;  %v1574_v10 = vpack.c.bf16 %v3306_v62, %v3306_v62 }
 0x4b7   : > { %1561 = vadd.xlane.f32.xlu1 %v1560_v63 }
 0x4d8   : > { %v3310_v2 = vpop.xlane.xlu1 %1520 }
 0x4d9   : > { %v1527_v3 = vmax.f32 %v3310_v2, -1e+30 }
 0x4db   : > { %v1543_v4 = vsub.f32 %v1511_v45, %v1527_v3 }
 0x4dc   : > { %v3315_v5 = vpop.xlane.xlu1 %1523 }
 0x4dd   : > { %v1549_v6 = vmul.f32 1.442695, %v1543_v4  ;;  %v1528_v7 = vmax.f32 %v3315_v5, -1e+30 }
 0x4df   : > { %v1544_v11 = vsub.f32 %v1512_v46, %v1528_v7  ;;  %2666 = vpow2.f32 %v1549_v6 }
 0x4e0   : > { %v1172_v13 = vpop.permute.xlu1 %1171 }
 0x4e1   : > { %v1551_v14 = vmul.f32 1.442695, %v1544_v11  ;;  %v1190_v15 = vcombine.low %v1166_v12, %v1172_v13  ;;  %v1191_v16 = vcombine.high %v1166_v12, %v1172_v13  ;;  %v1529_v13 = vsub.f32 -1e+30, %v1525_v54 }
 0x4e3   : > { %v1198_v19 = vrot.slane %v1190_v15, %v3224_v50  ;;  %v1205_v20 = vrot.slane %v1191_v16, %v3224_v50  ;;  %2668 = vpow2.f32 %v1551_v14  ;;  %v1530_v14 = vsub.f32 -1e+30, %v1526_v35 }
 0x4e4   : > { %v1533_v15 = vmul.f32 1.442695, %v1529_v13 }
 0x4e5   : > { %v1206_v21 = vcombine.low %v1182_v17, %v1198_v19  ;;  %v1207_v22 = vcombine.high %v1182_v17, %v1198_v19  ;;  %v1222_v23 = vcombine.low %v1189_v18, %v1205_v20  ;;  %v1223_v24 = vcombine.high %v1189_v18, %v1205_v20 }
 0x4e6   : > { %v1535_v16 = vmul.f32 1.442695, %v1530_v14  ;;  %2670 = vpow2.f32 %v1533_v15  ;;  %v1531_v17 = vsub.f32 -1e+30, %v1527_v3  ;;  %v1532_v18 = vsub.f32 -1e+30, %v1528_v7 }
 0x4e7   : > { %v1214_v25 = vrot.slane %v1206_v21, %v3226_v56  ;;  %v1221_v26 = vrot.slane %v1207_v22, %v3226_v56  ;;  %v1230_v27 = vrot.slane %v1222_v23, %v3226_v56  ;;  %v1237_v28 = vrot.slane %v1223_v24, %v3226_v56 }
 0x4e8   : > { %2672 = vpow2.f32 %v1535_v16  ;;  %v1537_v19 = vmul.f32 1.442695, %v1531_v17  ;;  %v1539_v20 = vmul.f32 1.442695, %v1532_v18  ;;  %v2648_v17 = vld [vmem:[%s3513_s8] sm:$0xff]  }
 0x4e9   : > { %v1242_v29 = vcombine.low %v1214_v25, %v1221_v26  ;;  %v2368_v30 = vcombine.high %v1214_v25, %v1221_v26  ;;  %v1258_v31 = vcombine.low %v1230_v27, %v1237_v28  ;;  %v2369_v32 = vcombine.high %v1230_v27, %v1237_v28  ;;  %v2667_v33 = vpop.eup %2666 }
 0x4ea   : > { %v1563_v39 = vsel %vm1314_vm2, %v2667_v33, 0.0  ;;  %v1575_v60 = vpack.c.bf16 %v2667_v33, %v2667_v33  ;;  %2674 = vpow2.f32 %v1537_v19 }
 0x4eb   : > { %v1249_v34 = vrot.slane %v1242_v29, %v3224_v50  ;;  %v1257_v36 = vrot.slane %v2368_v30, %v3224_v50  ;;  %v1265_v37 = vrot.slane %v1258_v31, %v3224_v50  ;;  %v1273_v38 = vrot.slane %v2369_v32, %v3224_v50  ;;  %1564 = vadd.xlane.f32.xlu0 %v1563_v39 }
 0x4ec   : > { %2676 = vpow2.f32 %v1539_v20 }
 0x4ed   : > { %v1274_v40 = vcombine.low %v1249_v34, %v1257_v36  ;;  %v1290_v41 = vcombine.low %v1265_v37, %v1273_v38  ;;  %v1275_v42 = vcombine.high %v1249_v34, %v1257_v36  ;;  %v1291_v43 = vcombine.high %v1265_v37, %v1273_v38  ;;  %v2669_v44 = vpop.eup %2668 }
 0x4ee   : > { %v1566_v45 = vsel %vm1314_vm2, %v2669_v44, 0.0  ;;  %v1576_v62 = vpack.c.bf16 %v2669_v44, %v2669_v44 }
 0x4ef   : > { %v1282_v46 = vrot.slane %v1274_v40, %v3226_v56  ;;  %v1298_v47 = vrot.slane %v1290_v41, %v3226_v56  ;;  %v1289_v48 = vrot.slane %v1275_v42, %v3226_v56  ;;  %v1305_v49 = vrot.slane %v1291_v43, %v3226_v56  ;;  %1567 = vadd.xlane.f32.xlu0 %v1566_v45 }
 0x4f0   : > { %v2671_v21 = vpop.eup %2670 }
 0x4f1   : > { %v1306_v51 = vcombine.low %v1282_v46, %v1298_v47  ;;  %v1307_v55 = vcombine.high %v1282_v46, %v1298_v47  ;;  %v1308_v57 = vcombine.low %v1289_v48, %v1305_v49  ;;  %v1309_v58 = vcombine.high %v1289_v48, %v1305_v49 }
 0x4f2   : > { %v2673_v52 = vpop.eup %2672  ;;  %v1553_v22 = vmul.f32 0.0, %v2671_v21 }
 0x4f3   : > { %v1310_v59 = vpack.c.bf16 %v1306_v51, %v1306_v51  ;;  %v1311_v61 = vpack.c.bf16 %v1307_v55, %v1307_v55  ;;  %v1312_v4 = vpack.c.bf16 %v1308_v57, %v1308_v57  ;;  %v1313_v6 = vpack.c.bf16 %v1309_v58, %v1309_v58 }
 0x4f4   : > { %v1554_v35 = vmul.f32 0.0, %v2673_v52  ;;  %v2675_v26 = vpop.eup %2674 }
 0x4f5   : > { %v1582_v63 = vsel %vm1580_vm3, %v1310_v59, 0  ;;  %v1628_v1 = vsel %vm1580_vm3, %v1311_v61, 0  ;;  %v1674_v11 = vsel %vm1580_vm3, %v1312_v4, 0  ;;  %v1720_v12 = vsel %vm1580_vm3, %v1313_v6, 0 }
 0x4f6   : > { %2493 = vmatpush3.bf16.msra.mxu1 %v1582_v63  ;;  %2499 = vmatpush3.bf16.msra.mxu0 %v1628_v1  ;;  %v2677_v2 = vpop.eup %2676  ;;  %v1555_v3 = vmul.f32 0.0, %v2675_v26  ;;  %v2649_v26 = vld [vmem:[%s3513_s8 + $0x8] sm:$0xff]  }
 0x4f7   : > { %2504 = vmatprep.subr.bf16.mxu1 %v2882_v8  ;;  %2510 = vmatprep.subr.bf16.mxu0 %v2882_v8  ;;  %v1556_v7 = vmul.f32 0.0, %v2677_v2 }
 0x4f9   : > { %2495 = vmatmul.mubr.msk.bf16.vlgmr.msra.gmra.mrb[8].mxu1 %vm1314_vm2, %v1573_v9  ;;  %2501 = vmatmul.mubr.msk.bf16.vlgmr.msra.gmra.mrb[20].mxu0 %vm1314_vm2, %v1574_v10 }
 0x4fa   : > { %2505 = vmatpush3.bf16.msra.mxu1 %v1674_v11  ;;  %2511 = vmatpush3.bf16.msra.mxu0 %v1720_v12 }
 0x4fb   : > { %2506 = vmatprep.mubr.msk.bf16.mxu1 %vm2883_vm1, %v2882_v8  ;;  %2512 = vmatprep.mubr.msk.bf16.mxu0 %vm2883_vm1, %v2882_v8 }
 0x4fc   : > { %2516 = vmatprep.subr.bf16.mxu1 %v2882_v8  ;;  %2524 = vmatprep.subr.bf16.mxu0 %v2882_v8 }
 0x501   : > { %2507 = vmatmul.mubr.msk.bf16.vlgmr.msra.gmra.mrb[12].mxu1 %vm1314_vm2, %v1575_v60  ;;  %2513 = vmatmul.mubr.msk.bf16.vlgmr.msra.gmra.mrb[24].mxu0 %vm1314_vm2, %v1576_v62 }
 0x502   : > { %2520 = vmatprep.mubr.msk.bf16.mxu1 %vm2883_vm1, %v2882_v8  ;;  %2528 = vmatprep.mubr.msk.bf16.mxu0 %vm2883_vm1, %v2882_v8 }
 0x503   : > { %2517 = vmatpush3.bf16.msra.mxu1 %v2648_v17  ;;  %v2657_v17 = vld [vmem:[%s3519_s14 + $0x28] sm:$0xff]  }
 0x504   : > { %2518 = vmatprep.subr.bf16.mxu1 %v2882_v8 }
 0x507   : > { %2519 = vmatpush3.bf16.msra.mxu1 %v2649_v26 }
 0x508   : > { %2532 = vmatprep.subr.bf16.mxu1 %v2882_v8 }
 0x543   : > { %v1559_v54 = vpop.xlane.xlu0 %1558 }
 0x544   : > { %v1562_v53 = vpop.xlane.xlu1 %1561  ;;  %v1569_v23 = vadd.f32 %v1559_v54, %v1553_v22 }
 0x545   : > { %v1570_v25 = vadd.f32 %v1562_v53, %v1554_v35 }
 0x546   : > { %2678 = vrcp.f32 %v1569_v23 }
 0x547   : > { %2680 = vrcp.f32 %v1570_v25 }
 0x550   : > { %v2679_v31 = vpop.eup %2678 }
 0x551   : > { %v2681_v37 = vpop.eup %2680 }
 0x578   : > { %v1565_v24 = vpop.xlane.xlu0 %1564 }
 0x579   : > { %v1571_v27 = vadd.f32 %v1565_v24, %v1555_v3 }
 0x57b   : > { %2682 = vrcp.f32 %v1571_v27 }
 0x57c   : > { %v1568_v5 = vpop.xlane.xlu0 %1567 }
 0x57d   : > { %v1572_v28 = vadd.f32 %v1568_v5, %v1556_v7 }
 0x57f   : > { %2684 = vrcp.f32 %v1572_v28 }
 0x585   : > { %v2683_v46 = vpop.eup %2682 }
 0x589   : > { %v2685_v55 = vpop.eup %2684 }
 0x5cc   : > { %v1618_v29 = vpop.f32.mrb[8].mxu1  ;;  %v1664_v30 = vpop.f32.mrb[20].mxu0 }
 0x5cd   : > { %v1762_v32 = vadd.f32 %v1618_v29, %v1553_v22  ;;  %v1763_v33 = vadd.f32 %v1664_v30, %v1554_v35  ;;  %v2496_v34 = vpop.f32.mrb[9].mxu1  ;;  %v2502_v36 = vpop.f32.mrb[21].mxu0 }
 0x5ce   : > { %v1621_v38 = vpop.f32.mrb[10].mxu1  ;;  %v1667_v39 = vpop.f32.mrb[22].mxu0 }
 0x5cf   : > { %v1770_v40 = vmul.f32 %v2679_v31, %v1762_v32  ;;  %v1771_v41 = vmul.f32 %v2681_v37, %v1763_v33  ;;  %v2497_v42 = vpop.f32.mrb[11].mxu1  ;;  %v2503_v43 = vpop.f32.mrb[23].mxu0 }
 0x5d4   : > { %v1710_v44 = vpop.f32.mrb[12].mxu1  ;;  %v1756_v45 = vpop.f32.mrb[24].mxu0 }
 0x5d5   : > { %v1764_v47 = vadd.f32 %v1710_v44, %v1555_v3  ;;  %v1765_v48 = vadd.f32 %v1756_v45, %v1556_v7  ;;  %v2508_v49 = vpop.f32.mrb[13].mxu1  ;;  %v2514_v51 = vpop.f32.mrb[25].mxu0 }
 0x5d6   : > { %v1713_v57 = vpop.f32.mrb[14].mxu1  ;;  %v1759_v58 = vpop.f32.mrb[26].mxu0 }
 0x5d7   : > { %v1772_v59 = vmul.f32 %v2683_v46, %v1764_v47  ;;  %v1773_v61 = vmul.f32 %v2685_v55, %v1765_v48  ;;  %v2509_v63 = vpop.f32.mrb[15].mxu1  ;;  %v2515_v1 = vpop.f32.mrb[27].mxu0 }
 0x5d9   : > { %v1774_v4 = vcombine.low %v1770_v40, %v1772_v59  ;;  %v1775_v6 = vcombine.high %v1770_v40, %v1772_v59  ;;  %v1790_v9 = vcombine.low %v1771_v41, %v1773_v61  ;;  %v1791_v10 = vcombine.high %v1771_v41, %v1773_v61  ;;  %v2381_v41 = vld [vmem:[#allocation8] ss:$0 sm:$0xff] }
 0x5da   : > { %v2650_v59 = vld [vmem:[%s3517_s12] sm:$0xff]  }
 0x5db   : > { %v1782_v11 = vrot.slane %v1774_v4, %v3224_v50  ;;  %v1789_v12 = vrot.slane %v1775_v6, %v3224_v50  ;;  %v1798_v60 = vrot.slane %v1790_v9, %v3224_v50  ;;  %v1805_v62 = vrot.slane %v1791_v10, %v3224_v50  ;;  %2525 = vmatpush3.bf16.msra.mxu0 %v2650_v59  ;;  %v2652_v61 = vld [vmem:[%s3519_s14] sm:$0xff]  }
 0x5dc   : > { %2526 = vmatprep.subr.bf16.mxu0 %v2882_v8  ;;  %v2385_v9 = vld [vmem:[%s3521_s16] ss:$0 sm:$0xff] }
 0x5dd   : > { %v1806_v13 = vcombine.low %v1782_v11, %v1798_v60  ;;  %v1807_v14 = vcombine.high %v1782_v11, %v1798_v60  ;;  %v1822_v15 = vcombine.low %v1789_v12, %v1805_v62  ;;  %v1823_v16 = vcombine.high %v1789_v12, %v1805_v62  ;;  %v2386_v11 = vld [vmem:[%s3522_s17] ss:$0 sm:$0xff] }
 0x5df   : > { %v1814_v18 = vrot.slane %v1806_v13, %v3226_v56  ;;  %v1821_v19 = vrot.slane %v1807_v14, %v3226_v56  ;;  %v1830_v20 = vrot.slane %v1822_v15, %v3226_v56  ;;  %v1837_v21 = vrot.slane %v1823_v16, %v3226_v56  ;;  %v2653_v13 = vld [vmem:[%s3519_s14 + $0x8] sm:$0xff]   ;;  %v2654_v14 = vld [vmem:[%s3519_s14 + $0x10] sm:$0xff]   ;;  %v2655_v15 = vld [vmem:[%s3519_s14 + $0x18] sm:$0xff]  }
 0x5e0   : > { %v2656_v16 = vld [vmem:[%s3519_s14 + $0x20] sm:$0xff]  }
 0x5e1   : > { %v1842_v52 = vcombine.low %v1814_v18, %v1821_v19  ;;  %v2379_v54 = vcombine.high %v1814_v18, %v1821_v19  ;;  %v1858_v22 = vcombine.low %v1830_v20, %v1837_v21  ;;  %v2380_v53 = vcombine.high %v1830_v20, %v1837_v21  ;;  %v2658_v18 = vld [vmem:[%s3519_s14 + $0x30] sm:$0xff]   ;;  %v2659_v19 = vld [vmem:[%s3519_s14 + $0x38] sm:$0xff]   ;;  %v2387_v20 = vld [vmem:[%s3518_s13] ss:$0 sm:$0xff] }
 0x5e3   : > { %v1849_v35 = vrot.slane %v1842_v52, %v3224_v50  ;;  %v1857_v23 = vrot.slane %v2379_v54, %v3224_v50  ;;  %v1865_v24 = vrot.slane %v1858_v22, %v3224_v50  ;;  %v1873_v25 = vrot.slane %v2380_v53, %v3224_v50 }
 0x5e5   : > { %v1875_v2 = vcombine.high %v1849_v35, %v1857_v23  ;;  %v1891_v3 = vcombine.high %v1865_v24, %v1873_v25  ;;  %v1874_v5 = vcombine.low %v1849_v35, %v1857_v23  ;;  %v1890_v7 = vcombine.low %v1865_v24, %v1873_v25 }
 0x5e7   : > { %v1889_v27 = vrot.slane %v1875_v2, %v3226_v56  ;;  %v1905_v28 = vrot.slane %v1891_v3, %v3226_v56  ;;  %v1882_v29 = vrot.slane %v1874_v5, %v3226_v56  ;;  %v1898_v30 = vrot.slane %v1890_v7, %v3226_v56 }
 0x5e9   : > { %v1908_v50 = vcombine.low %v1889_v27, %v1905_v28  ;;  %v1907_v31 = vcombine.high %v1882_v29, %v1898_v30  ;;  %v1909_v32 = vcombine.high %v1889_v27, %v1905_v28  ;;  %v1906_v33 = vcombine.low %v1882_v29, %v1898_v30  ;;  %v2391_v27 = vld [vmem:[%s3564_s2] ss:$0 sm:$0xff] }
 0x5eb   : > { %1915 = vrot.lane.b32.xlu0 %v1908_v50, %s2889_s1  ;;  %1911 = vrot.lane.b32.xlu1 %v1907_v31, %s2890_s27  ;;  %s626_s27 = sand.u32 1, %s2868_s28  }
 0x5ec   : > { %s2214_s0 = scalar_lea.sflag [#allocation4], %s626_s27 }
 0x5ef   : > { %1919 = vrot.lane.b32.xlu1 %v1909_v32, %s2891_s20  ;;  %s2348_s20 = sshll.u32 %s626_s27, 3 }
 0x5f0   : > { %s628_s21 = scalar_lea.vmem [#allocation10], %s2348_s20  ;;  %s2892_s20 = smov [#allocation10]  }
 0x5f1   : > { %s2227_s19 = sshll.u32 %s628_s21, 4  ;;  %s2806_s15 = sshll.u32 %s2892_s20, 4  ;;  %s3464_s19 = int_to_ptr.vmem [resolvable:$true] %s2227_s19  ;;  %s2807_s15 = int_to_ptr.vmem [resolvable:$false] %s2806_s15 }
 0x5f2   : > { %s2802_s1 = scalar_lea.vmem %s3464_s19, 128  ;;  %s2808_s29 = scalar_lea.vmem %s2807_s15, 256 }
 0x5f3   : > { %p2803_p2 = scmp.ne.s32.totalorder %s3464_s19, %s2802_s1  ;;  %p2809_p8 = scmp.lt.s32.totalorder %s3464_s19, %s2807_s15 }
 0x5f4   : > { %p2810_p11 = scmp.lt.s32.totalorder %s2808_s29, %s2802_s1 }
 0x5f5   : > { %p2804_p4 = pnand %p2803_p2, %p3567_p3 }
 0x5f6   : > { %p2811_p13 = por %p2810_p11, %p2809_p8 }
 0x5f7   : > { %p2805_p7 = pneg %p2804_p4 }
 0x5f9   : > { %p2812_p1 = pnand %p2811_p13, %p2805_p7 }
 0x65d   : > { %v1912_v34 = vpop.permute.xlu1 %1911  ;;  %v1916_v36 = vpop.permute.xlu0 %1915 }
 0x65e   : > { %v1922_v37 = vsel %vm1314_vm2, %v1906_v33, %v1912_v34 }
 0x65f   : > { %v1924_v39 = vsel %vm1923_vm4, %v1922_v37, %v1916_v36 }
 0x661   : > { %v1920_v38 = vpop.permute.xlu1 %1919 }
 0x662   : > { %v1926_v40 = vsel %vm1925_vm5, %v1924_v39, %v1920_v38 }
 0x663   : > { %v1927_v56 = vpack.c.bf16 %v1926_v40, %v1926_v40 }
 0x665   : > { %2521 = vmatmul.mubr.msk.bf16.vlgmr.msra.gmra.mrb[16].mxu1 %vm645_vm0, %v1927_v56 }
 0x666   : > { %2548 = vmatprep.mubr.msk.bf16.mxu1 %vm2883_vm1, %v2882_v8  ;;  %2533 = vmatpush3.bf16.msra.mxu1 %v2652_v61 }
 0x667   : > { %2534 = vmatprep.subr.bf16.mxu1 %v2882_v8 }
 0x66a   : > { %2535 = vmatpush3.bf16.msra.mxu1 %v2653_v13 }
 0x66b   : > { %2536 = vmatprep.subr.bf16.mxu1 %v2882_v8 }
 0x66e   : > { %2537 = vmatpush3.bf16.msra.mxu1 %v2654_v14 }
 0x66f   : > { %2538 = vmatprep.subr.bf16.mxu1 %v2882_v8 }
 0x672   : > { %2539 = vmatpush3.bf16.msra.mxu1 %v2655_v15 }
 0x673   : > { %2540 = vmatprep.subr.bf16.mxu1 %v2882_v8 }
 0x676   : > { %2541 = vmatpush3.bf16.msra.mxu1 %v2656_v16 }
 0x677   : > { %2542 = vmatprep.subr.bf16.mxu1 %v2882_v8 }
 0x67a   : > { %2543 = vmatpush3.bf16.msra.mxu1 %v2657_v17 }
 0x67b   : > { %2544 = vmatprep.subr.bf16.mxu1 %v2882_v8 }
 0x67e   : > { %2545 = vmatpush3.bf16.msra.mxu1 %v2658_v18 }
 0x67f   : > { %2546 = vmatprep.subr.bf16.mxu1 %v2882_v8 }
 0x682   : > { %2547 = vmatpush3.bf16.msra.mxu1 %v2659_v19 }
 0x738   : > { %v1987_v42 = vpop.f32.mrb[16].mxu1 }
 0x739   : > { %v1988_v43 = vadd.f32 %v2381_v41, %v1987_v42  ;;  %v2522_v44 = vpop.f32.mrb[17].mxu1 }
 0x73a   : > { %v1990_v45 = vpop.f32.mrb[18].mxu1 }
 0x73b   : > { %v3399_v46 = vadd.f32 %v1988_v43, %v3165_v0  ;;  %v2523_v47 = vpop.f32.mrb[19].mxu1  ;;  %v2651_v0 = vld [vmem:[%s3517_s12 + $0x8] sm:$0xff]  }
 0x73c   : > { %2527 = vmatpush3.bf16.msra.mxu0 %v2651_v0 }
 0x73d   : > { %v1996_v48 = vsel %vm645_vm0, %v3399_v46, 0.0 }
 0x73e   : > { %1997 = vadd.xlane.f32.xlu1 %v1996_v48 }
 0x7cb   : > { %v1998_v49 = vpop.xlane.xlu1 %1997 }
 0x7cc   : > { %v1999_v51 = vmul.f32 0.03125, %v1998_v49 }
 0x7ce   : > { %v2000_v55 = vsub.f32 %v3399_v46, %v1999_v51 }
 0x7d0   : > { %v2001_v57 = vmul.f32 %v2000_v55, %v2000_v55 }
 0x7d2   : > { %v2002_v58 = vsel %vm645_vm0, %v2001_v57, 0.0 }
 0x7d3   : > { %2003 = vadd.xlane.f32.xlu0 %v2002_v58 }
 0x860   : > { %v2004_v63 = vpop.xlane.xlu0 %2003 }
 0x861   : > { %v2005_v1 = vmul.f32 0.03125, %v2004_v63 }
 0x863   : > { %v2006_v4 = vadd.f32 1e-05, %v2005_v1 }
 0x865   : > { %2686 = vrsqrt.f32 %v2006_v4 }
 0x86f   : > { %v2687_v6 = vpop.eup %2686 }
 0x870   : > { %v2008_v10 = vmul.f32 %v2687_v6, %v2000_v55 }
 0x872   : > { %v2015_v12 = vmul.f32 %v2385_v9, %v2008_v10 }
 0x874   : > { %v2022_v60 = vadd.f32 %v2386_v11, %v2015_v12 }
 0x876   : > { %v2023_v62 = vpack.c.bf16 %v2022_v60, %v2022_v60 }
 0x878   : > { %2529 = vmatmul.mubr.msk.bf16.vlgmr.msra.gmra.mrb[28].mxu0 %vm645_vm0, %v2023_v62 }
 0x94b   : > { %v2084_v21 = vpop.f32.mrb[28].mxu0 }
 0x94c   : > { %v2085_v52 = vadd.f32 %v2387_v20, %v2084_v21  ;;  %v2530_v54 = vpop.f32.mrb[29].mxu0 }
 0x94d   : > { %v2087_v22 = vpop.f32.mrb[30].mxu0 }
 0x94e   : > { %v2091_v53 = vmul.f32 0.044715, %v2085_v52  ;;  %v2531_v35 = vpop.f32.mrb[31].mxu0  ;;  %v2090_v8 = vmul.f32 0.5, %v2085_v52 }
 0x950   : > { %v2092_v23 = vmul.f32 %v2091_v53, %v2085_v52 }
 0x952   : > { %v2093_v24 = vmul.f32 %v2092_v23, %v2085_v52 }
 0x954   : > { %v2094_v25 = vadd.f32 %v2093_v24, %v2085_v52 }
 0x956   : > { %v2095_v26 = vmul.f32 0.7978846, %v2094_v25 }
 0x958   : > { %2688 = vtanh.f32 %v2095_v26 }
 0x962   : > { %v2689_v2 = vpop.eup %2688 }
 0x963   : > { %v2097_v3 = vadd.f32 1.0, %v2689_v2 }
 0x965   : > { %v2098_v5 = vmul.f32 %v2097_v3, %v2090_v8 }
 0x967   : > { %v2099_v7 = vpack.c.bf16 %v2098_v5, %v2098_v5 }
 0x969   : > { %2549 = vmatmul.mubr.bf16.vlgmr.msra.gmra.mrb[20].mxu1 %v2099_v7 }
 0xa3c   : > { %v2205_v28 = vpop.f32.mrb[20].mxu1 }
 0xa3d   : > { %v2206_v29 = vadd.f32 %v2391_v27, %v2205_v28  ;;  %v2550_v30 = vpop.f32.mrb[21].mxu1 }
 0xa3e   : > { %v2208_v50 = vpop.f32.mrb[22].mxu1 }
 0xa3f   : > { %v2211_v31 = vadd.f32 %v2206_v29, %v3399_v46  ;;  %v2551_v32 = vpop.f32.mrb[23].mxu1 }
 0xa41   : > { %2212 = vst.msk [vmem:[%s628_s21] sm:$0xff] %vm645_vm0, %v2211_v31 }
 0xa42   : > { %2815 = shalt.err (!%p2812_p1)
}
 0xa43   : > { %s2816_s27 = scalar_lea.hbm %s3462_s22, 128  ;;  %s2820_s21 = scalar_lea.hbm %s3566_s25, 256 }
 0xa44   : > { %p2817_p0 = scmp.ne.s32.totalorder %s3462_s22, %s2816_s27  ;;  %p2821_p9 = scmp.lt.u32.totalorder %s3462_s22, %s3566_s25 }
 0xa45   : > { %p2822_p12 = scmp.lt.u32.totalorder %s2820_s21, %s2816_s27  ;;  %p2824_p2 = scmp.lt.u32.totalorder %s2816_s27, %s3462_s22 }
 0xa46   : > { %p2818_p6 = pnand %p2817_p0, %p3567_p3 }
 0xa47   : > { %p2823_p10 = por %p2822_p12, %p2821_p9 }
 0xa48   : > { %p2819_p5 = pneg %p2818_p6 }
 0xa49   : > { %p2825_p4 = por %p2824_p2, %p2823_p10 }
 0xa4b   : > { %p2826_p7 = pnand %p2825_p4, %p2819_p5 }
 0xa4d   : > { %2829 = shalt.err (!%p2826_p7)
}
 0xa4e   : > { %2568 = dma.vmem_to_hbm [thread:$0]  (%p3567_p3), %s3464_s19, 128, %s3462_s22, %s2214_s0  }
 0xa4f PF: > { %s3568_s1 = sld [smem:[#allocation17_spill]]  ;;  %s3569_s20 = sld [smem:[#allocation15_spill]] }
 0xa50   : > { %s3570_s15 = sld [smem:[#allocation21_spill]] }
 0xa55   : > { %p2595_p8 = scmp.ge.s32.totalorder %s3568_s1, 2  ;;  %s2239_s29 = sand.u32 1, %s3569_s20  }
 0xa56   : > { %p3571_p11 = scmp.ne.s32.totalorder %s3570_s15, 0  ;;  %s2240_s2 = scalar_lea.sflag [#allocation4], %s2239_s29 }
 0xa58   : > { %p2584_p13 = pnand %p2595_p8, %p3571_p11 }
 0xa5a   : > { %2859 = dma.done.wait (!%p2584_p13), %s2240_s2, 128  }
 0xa5b   : > { %2861 = vsyncadd (!%p2584_p13), %s2240_s2, 4294967168  ;;  %s3572_s30 = sld [smem:[#allocation18_spill]]  ;;  %s3573_s23 = sld [smem:[#allocation16_spill]] }
 0xa5c   : > { %s3574_s29 = sld [smem:[#allocation19_spill]]  ;;  %s3575_s27 = smov %s2868_s28 }
 0xa61   : > { %p31_p1 = scmp.ge.s32.totalorder %s3572_s30, 4   ;;  %s3576_s28 = smov %s3573_s23 }
 0xa63   :  { %33 = sbr.rel (!%p31_p1) target bundleno = 12 (0xc), region = 147 }
 0xa6a   :  { %2245 = vsyncpa [#allocation3], 1 }
 0xa6b   :  { %2247 = vsyncpa [#allocation3 + $0x1], 1 }
 0xa6c   :  { %2248 = vsyncpa [#allocation6], 1 }
 0xa6d   :  { %2249 = vsyncpa [#allocation9], 1 }
 0xa6e   :  { %2250 = vsyncpa [#allocation4], 1 }
 0xa6f   :  { %2252 = vsyncpa [#allocation4 + $0x1], 1 }

</bundles_post_ra>
